<compile_context>
chip_gen: v7x
topology: tpu7x:2x2x1
jax: 0.10.0
libtpu: 0.0.40
codegen_flags: <defaults>
</compile_context>

<pallas_src>
import math

import jax
import jax.numpy as jnp
from jax.experimental import pallas as pl
from jax.experimental.pallas import tpu as pltpu


def _round_up(n, m):
    return ((n + m - 1) // m) * m


def _pad2d(a, rows, cols):
    r, c = a.shape
    if r == rows and c == cols:
        return a
    return jnp.pad(a, ((0, rows - r), (0, cols - c)))


# ----------------------------- kernels --------------------------------------


def fcn3_fused_kernel(x_ref, w1_ref, b1_ref, w2_ref, b2_ref, w3_ref, b3_ref,
                      out_ref):
    """Whole forward for one batch tile; all weights VMEM-resident. grid=(nb,)."""
    h1 = jnp.dot(x_ref[...], w1_ref[...], preferred_element_type=jnp.float32)
    h1 = jnp.maximum(h1 + b1_ref[...], 0.0)
    h2 = jnp.dot(h1.astype(w2_ref.dtype), w2_ref[...],
                 preferred_element_type=jnp.float32)
    h2 = jnp.maximum(h2 + b2_ref[...], 0.0)
    out = jnp.dot(h2.astype(w3_ref.dtype), w3_ref[...],
                  preferred_element_type=jnp.float32)
    out_ref[...] = out + b3_ref[...]


def fcn3_ktiled_kernel(x_ref, w1_ref, b1_ref, w2_ref, b2_ref, w3_ref, b3_ref,
                       out_ref, acc_ref):
    """Fallback for very large input_features: fc1 reduction tiled on grid axis 1."""
    k = pl.program_id(1)

    @pl.when(k == 0)
    def _init():
        acc_ref[...] = jnp.zeros_like(acc_ref)

    acc_ref[...] += jnp.dot(x_ref[...], w1_ref[...],
                            preferred_element_type=jnp.float32)

    @pl.when(k == pl.num_programs(1) - 1)
    def _finalize():
        h1 = jnp.maximum(acc_ref[...] + b1_ref[...], 0.0)
        h2 = jnp.dot(h1.astype(w2_ref.dtype), w2_ref[...],
                     preferred_element_type=jnp.float32)
        h2 = jnp.maximum(h2 + b2_ref[...], 0.0)
        out = jnp.dot(h2.astype(w3_ref.dtype), w3_ref[...],
                      preferred_element_type=jnp.float32)
        out_ref[...] = out + b3_ref[...]


# --------------------------- host-side wrapper -------------------------------


def prepare_params(params, input_features):
    """One-time weight padding + bf16 cast. Call once and reuse across forwards."""
    w1, b1 = params["w1"], params["b1"]
    w2, b2 = params["w2"], params["b2"]
    w3, b3 = params["w3"], params["b3"]
    H1, H2, num_classes = w1.shape[1], w2.shape[1], w3.shape[1]

    K_pad = _round_up(input_features, 128)
    H1_pad = _round_up(H1, 128)          # 1000 -> 1024
    H2_pad = _round_up(H2, 128)          # 100  -> 128
    C_pad = _round_up(num_classes, 128)  # 10   -> 128

    return {
        "w1": _pad2d(w1, K_pad, H1_pad).astype(jnp.bfloat16),
        "w2": _pad2d(w2, H1_pad, H2_pad).astype(jnp.bfloat16),
        "w3": _pad2d(w3, H2_pad, C_pad).astype(jnp.bfloat16),
        "b1": _pad2d(b1.astype(jnp.float32), 1, H1_pad),
        "b2": _pad2d(b2.astype(jnp.float32), 1, H2_pad),
        "b3": _pad2d(b3.astype(jnp.float32), 1, C_pad),
        "dims": (input_features, num_classes, K_pad, H1_pad, H2_pad, C_pad),
    }


def fcn3_forward(x, prep):
    """x: (B, C, H, W). prep: output of prepare_params. Returns (B, num_classes) f32."""
    B = x.shape[0]
    x_flat = x.reshape(B, -1)  # same as torch reshape(B, -1)
    K_in, num_classes, K_pad, H1_pad, H2_pad, C_pad = prep["dims"]
    assert x_flat.shape[1] == K_in

    # Batch tiling: multiples of 16 (bf16 (16,128) sublane packing); aim for
    # nb >= 2 so the "parallel" axis shards across v7x's two TensorCores; cap
    # the tile at 256 rows to fill the 256-wide v6e/v7x MXU.
    B16 = _round_up(B, 16)
    if B16 <= 16:
        tb = B16
    elif B16 <= 512:
        tb = _round_up(B16 // 2, 16)
    else:
        tb = 256
    B_pad = _round_up(B, tb)
    nb = B_pad // tb

    xp = _pad2d(x_flat.astype(jnp.float32), B_pad, K_pad).astype(jnp.bfloat16)
    w1p, b1p = prep["w1"], prep["b1"]
    w2p, b2p = prep["w2"], prep["b2"]
    w3p, b3p = prep["w3"], prep["b3"]

    flops = 2 * B_pad * (K_pad * H1_pad + H1_pad * H2_pad + H2_pad * C_pad)
    bytes_accessed = (
        B_pad * K_pad * 2                                  # x (bf16)
        + (K_pad * H1_pad + H1_pad * H2_pad + H2_pad * C_pad) * 2   # weights (bf16)
        + (H1_pad + H2_pad + C_pad) * 4                    # biases (f32)
        + B_pad * C_pad * 4)                               # output (f32)
    cost = pl.CostEstimate(flops=flops, transcendentals=0,
                           bytes_accessed=bytes_accessed)

    w1_bytes = K_pad * H1_pad * 2
    if w1_bytes <= 6 * 1024 * 1024:
        # Fast path: weights fully VMEM-resident, single grid axis over batch.
        out_padded = pl.pallas_call(
            fcn3_fused_kernel,
            out_shape=jax.ShapeDtypeStruct((B_pad, C_pad), jnp.float32),
            grid_spec=pltpu.PrefetchScalarGridSpec(
                num_scalar_prefetch=0,
                grid=(nb,),
                in_specs=[
                    pl.BlockSpec((tb, K_pad), lambda i: (i, 0)),          # x tile
                    pl.BlockSpec((K_pad, H1_pad), lambda i: (0, 0)),      # w1 resident
                    pl.BlockSpec((1, H1_pad), lambda i: (0, 0)),          # b1
                    pl.BlockSpec((H1_pad, H2_pad), lambda i: (0, 0)),     # w2 resident
                    pl.BlockSpec((1, H2_pad), lambda i: (0, 0)),          # b2
                    pl.BlockSpec((H2_pad, C_pad), lambda i: (0, 0)),      # w3 resident
                    pl.BlockSpec((1, C_pad), lambda i: (0, 0)),           # b3
                ],
                out_specs=pl.BlockSpec((tb, C_pad), lambda i: (i, 0)),
            ),
            compiler_params=pltpu.CompilerParams(
                dimension_semantics=("parallel",),
            ),
            cost_estimate=cost,
        )(xp, w1p, b1p, w2p, b2p, w3p, b3p)
    else:
        # Fallback: fc1 reduction tiled (very large input_features only).
        tk = next(c for c in (2048, 1024, 512, 256, 128) if K_pad % c == 0)
        nk = K_pad // tk
        out_padded = pl.pallas_call(
            fcn3_ktiled_kernel,
            out_shape=jax.ShapeDtypeStruct((B_pad, C_pad), jnp.float32),
            grid_spec=pltpu.PrefetchScalarGridSpec(
                num_scalar_prefetch=0,
                grid=(nb, nk),
                in_specs=[
                    pl.BlockSpec((tb, tk), lambda i, k: (i, k)),
                    pl.BlockSpec((tk, H1_pad), lambda i, k: (k, 0)),
                    pl.BlockSpec((1, H1_pad), lambda i, k: (0, 0)),
                    pl.BlockSpec((H1_pad, H2_pad), lambda i, k: (0, 0)),
                    pl.BlockSpec((1, H2_pad), lambda i, k: (0, 0)),
                    pl.BlockSpec((H2_pad, C_pad), lambda i, k: (0, 0)),
                    pl.BlockSpec((1, C_pad), lambda i, k: (0, 0)),
                ],
                out_specs=pl.BlockSpec((tb, C_pad), lambda i, k: (i, 0)),
                scratch_shapes=[pltpu.VMEM((tb, H1_pad), jnp.float32)],
            ),
            compiler_params=pltpu.CompilerParams(
                dimension_semantics=("parallel", "arbitrary"),
                vmem_limit_bytes=32 * 1024 * 1024,
            ),
            cost_estimate=cost,
        )(xp, w1p, b1p, w2p, b2p, w3p, b3p)

    # Strip the batch / class padding back off.
    return out_padded[:B, :num_classes]


def init_params(key, input_features, num_classes):
    """Matches nn.Linear default init U(-1/sqrt(fan_in), 1/sqrt(fan_in)).
    Weights stored transposed as (in_features, out_features); all f32."""
    dims = [(input_features, 1000), (1000, 100), (100, num_classes)]
    params = {}
    for i, (fin, fout) in enumerate(dims, start=1):
        key, kw, kb = jax.random.split(key, 3)
        bound = 1.0 / math.sqrt(fin)
        params[f"w{i}"] = jax.random.uniform(
            kw, (fin, fout), jnp.float32, minval=-bound, maxval=bound)
        params[f"b{i}"] = jax.random.uniform(
            kb, (1, fout), jnp.float32, minval=-bound, maxval=bound)
    return params


if __name__ == "__main__":
    # Module-consistent small shapes: batch=2, channels=4, spatial=16x16
    # => input_features = 4*16*16 = 1024, num_classes = 10.
    B, C, H, W = 2, 4, 16, 16
    input_features = C * H * W
    num_classes = 10

    key = jax.random.PRNGKey(0)
    key, kx = jax.random.split(key)
    x = jax.random.normal(kx, (B, C, H, W), dtype=jnp.float32)
    params = init_params(key, input_features, num_classes)

    prep = prepare_params(params, input_features)   # one-time weight prep
    out = fcn3_forward(x, prep)
    jax.block_until_ready(out)
    assert out.shape == (B, num_classes)

    # Same-precision reference (bf16 weights/activations, f32 accumulation),
    # mirroring the kernel math; zero padding contributes exactly zero.
    xb = x.reshape(B, -1).astype(jnp.bfloat16)
    w1b = params["w1"].astype(jnp.bfloat16)
    w2b = params["w2"].astype(jnp.bfloat16)
    w3b = params["w3"].astype(jnp.bfloat16)
    h1 = jnp.maximum(
        jnp.dot(xb, w1b, preferred_element_type=jnp.float32) + params["b1"], 0.0)
    h2 = jnp.maximum(
        jnp.dot(h1.astype(jnp.bfloat16), w2b,
                preferred_element_type=jnp.float32) + params["b2"], 0.0)
    ref = jnp.dot(h2.astype(jnp.bfloat16), w3b,
                  preferred_element_type=jnp.float32) + params["b3"]

    assert jnp.allclose(out, ref, atol=2e-2, rtol=2e-2), (
        f"max abs diff {float(jnp.max(jnp.abs(out - ref)))}")

    print("KERNEL_OK")
</pallas_src>

<mosaic_0001>
module attributes {stable_mosaic.version = 11 : i64} {
  func.func @fcn3_fused_kernel(%arg0: i32, %arg1: memref<16x1024xbf16, #tpu.memory_space<vmem>>, %arg2: memref<1024x1024xbf16, #tpu.memory_space<vmem>>, %arg3: memref<1x1024xf32, #tpu.memory_space<vmem>>, %arg4: memref<1024x128xbf16, #tpu.memory_space<vmem>>, %arg5: memref<1x128xf32, #tpu.memory_space<vmem>>, %arg6: memref<128x128xbf16, #tpu.memory_space<vmem>>, %arg7: memref<1x128xf32, #tpu.memory_space<vmem>>, %arg8: memref<16x128xf32, #tpu.memory_space<vmem>>) attributes {dimension_semantics = [#tpu.dimension_semantics<parallel>], iteration_bounds = array<i64: 1>, scalar_prefetch = 0 : i64, scratch_operands = 0 : i64, tpu.core_type = #tpu.core_type<tc>, window_params = [{transform_indices = @transform_0, window_bounds = array<i64: 16, 1024>}, {pipeline_mode = #tpu.pipeline_mode<synchronous>, transform_indices = @transform_1, window_bounds = array<i64: 1024, 1024>}, {pipeline_mode = #tpu.pipeline_mode<synchronous>, transform_indices = @transform_2, window_bounds = array<i64: 1, 1024>}, {pipeline_mode = #tpu.pipeline_mode<synchronous>, transform_indices = @transform_3, window_bounds = array<i64: 1024, 128>}, {pipeline_mode = #tpu.pipeline_mode<synchronous>, transform_indices = @transform_4, window_bounds = array<i64: 1, 128>}, {pipeline_mode = #tpu.pipeline_mode<synchronous>, transform_indices = @transform_5, window_bounds = array<i64: 128, 128>}, {pipeline_mode = #tpu.pipeline_mode<synchronous>, transform_indices = @transform_6, window_bounds = array<i64: 1, 128>}, {transform_indices = @transform_7, window_bounds = array<i64: 16, 128>}]} {
    %c0 = arith.constant 0 : index
    %c0_0 = arith.constant 0 : index
    %0 = vector.load %arg1[%c0, %c0_0] : memref<16x1024xbf16, #tpu.memory_space<vmem>>, vector<16x1024xbf16>
    %c0_1 = arith.constant 0 : index
    %c0_2 = arith.constant 0 : index
    %1 = vector.load %arg2[%c0_1, %c0_2] : memref<1024x1024xbf16, #tpu.memory_space<vmem>>, vector<1024x1024xbf16>
    %cst = arith.constant dense<0.000000e+00> : vector<16x1024xf32>
    %2 = tpu.matmul %0, %1, %cst {dimension_numbers = #tpu.dot_dimension_numbers<[1], [0], [0], [1], [0, 0, 1, 1], [], []>} : vector<16x1024xbf16>, vector<1024x1024xbf16>, vector<16x1024xf32> -> vector<16x1024xf32>
    %c0_3 = arith.constant 0 : index
    %c0_4 = arith.constant 0 : index
    %3 = vector.load %arg3[%c0_3, %c0_4] : memref<1x1024xf32, #tpu.memory_space<vmem>>, vector<1x1024xf32>
    %4 = vector.broadcast %3 : vector<1x1024xf32> to vector<16x1024xf32>
    %5 = arith.addf %2, %4 : vector<16x1024xf32>
    %cst_5 = arith.constant 0.000000e+00 : f32
    %6 = vector.broadcast %cst_5 : f32 to vector<16x1024xf32>
    %7 = arith.maximumf %5, %6 : vector<16x1024xf32>
    %8 = arith.truncf %7 : vector<16x1024xf32> to vector<16x1024xbf16>
    %c0_6 = arith.constant 0 : index
    %c0_7 = arith.constant 0 : index
    %9 = vector.load %arg4[%c0_6, %c0_7] : memref<1024x128xbf16, #tpu.memory_space<vmem>>, vector<1024x128xbf16>
    %cst_8 = arith.constant dense<0.000000e+00> : vector<16x128xf32>
    %10 = tpu.matmul %8, %9, %cst_8 {dimension_numbers = #tpu.dot_dimension_numbers<[1], [0], [0], [1], [0, 0, 1, 1], [], []>} : vector<16x1024xbf16>, vector<1024x128xbf16>, vector<16x128xf32> -> vector<16x128xf32>
    %c0_9 = arith.constant 0 : index
    %c0_10 = arith.constant 0 : index
    %11 = vector.load %arg5[%c0_9, %c0_10] : memref<1x128xf32, #tpu.memory_space<vmem>>, vector<1x128xf32>
    %12 = vector.broadcast %11 : vector<1x128xf32> to vector<16x128xf32>
    %13 = arith.addf %10, %12 : vector<16x128xf32>
    %cst_11 = arith.constant 0.000000e+00 : f32
    %14 = vector.broadcast %cst_11 : f32 to vector<16x128xf32>
    %15 = arith.maximumf %13, %14 : vector<16x128xf32>
    %16 = arith.truncf %15 : vector<16x128xf32> to vector<16x128xbf16>
    %c0_12 = arith.constant 0 : index
    %c0_13 = arith.constant 0 : index
    %17 = vector.load %arg6[%c0_12, %c0_13] : memref<128x128xbf16, #tpu.memory_space<vmem>>, vector<128x128xbf16>
    %cst_14 = arith.constant dense<0.000000e+00> : vector<16x128xf32>
    %18 = tpu.matmul %16, %17, %cst_14 {dimension_numbers = #tpu.dot_dimension_numbers<[1], [0], [0], [1], [0, 0, 1, 1], [], []>} : vector<16x128xbf16>, vector<128x128xbf16>, vector<16x128xf32> -> vector<16x128xf32>
    %c0_15 = arith.constant 0 : index
    %c0_16 = arith.constant 0 : index
    %19 = vector.load %arg7[%c0_15, %c0_16] : memref<1x128xf32, #tpu.memory_space<vmem>>, vector<1x128xf32>
    %20 = vector.broadcast %19 : vector<1x128xf32> to vector<16x128xf32>
    %21 = arith.addf %18, %20 : vector<16x128xf32>
    %c0_17 = arith.constant 0 : index
    %c0_18 = arith.constant 0 : index
    %22 = vector.load %arg8[%c0_17, %c0_18] : memref<16x128xf32, #tpu.memory_space<vmem>>, vector<16x128xf32>
    tpu.vector_store %arg8[%c0_17, %c0_18], %21 {strides = array<i32>} : memref<16x128xf32, #tpu.memory_space<vmem>>, vector<16x128xf32>,
    return
  }
  func.func @transform_0(%arg0: i32) -> (i32, i32) {
    %c0_i32 = arith.constant 0 : i32
    %c0_i32_0 = arith.constant 0 : i32
    return %arg0, %c0_i32 : i32, i32
  }
  func.func @transform_1(%arg0: i32) -> (i32, i32) {
    %c0_i32 = arith.constant 0 : i32
    %c0_i32_0 = arith.constant 0 : i32
    %c0_i32_1 = arith.constant 0 : i32
    return %c0_i32, %c0_i32_0 : i32, i32
  }
  func.func @transform_2(%arg0: i32) -> (i32, i32) {
    %c0_i32 = arith.constant 0 : i32
    %c0_i32_0 = arith.constant 0 : i32
    %c0_i32_1 = arith.constant 0 : i32
    return %c0_i32, %c0_i32_0 : i32, i32
  }
  func.func @transform_3(%arg0: i32) -> (i32, i32) {
    %c0_i32 = arith.constant 0 : i32
    %c0_i32_0 = arith.constant 0 : i32
    %c0_i32_1 = arith.constant 0 : i32
    return %c0_i32, %c0_i32_0 : i32, i32
  }
  func.func @transform_4(%arg0: i32) -> (i32, i32) {
    %c0_i32 = arith.constant 0 : i32
    %c0_i32_0 = arith.constant 0 : i32
    %c0_i32_1 = arith.constant 0 : i32
    return %c0_i32, %c0_i32_0 : i32, i32
  }
  func.func @transform_5(%arg0: i32) -> (i32, i32) {
    %c0_i32 = arith.constant 0 : i32
    %c0_i32_0 = arith.constant 0 : i32
    %c0_i32_1 = arith.constant 0 : i32
    return %c0_i32, %c0_i32_0 : i32, i32
  }
  func.func @transform_6(%arg0: i32) -> (i32, i32) {
    %c0_i32 = arith.constant 0 : i32
    %c0_i32_0 = arith.constant 0 : i32
    %c0_i32_1 = arith.constant 0 : i32
    return %c0_i32, %c0_i32_0 : i32, i32
  }
  func.func @transform_7(%arg0: i32) -> (i32, i32) {
    %c0_i32 = arith.constant 0 : i32
    %c0_i32_0 = arith.constant 0 : i32
    return %arg0, %c0_i32 : i32, i32
  }
}

</mosaic_0001>

<bundles_post_ra>
// kernel: tpu_custom_call.1
= control target key start
LH: loop header
LB: loop body
LE: loop exit
PB: predicated region body
PF: predicated region fallthrough
CT: control target
= control target key end

     0   :  { %12 = vsyncpa [#allocation3], 0  ;;  %s6153_s0 = inlined_call_operand.hbm [shape: bf16[16,1024], index: 0, kind: input, shape index: {}]   ;;  %s6154_s1 = inlined_call_operand.hbm [shape: bf16[1024,1024], index: 1, kind: input, shape index: {}]   ;;  %s6155_s2 = inlined_call_operand.hbm [shape: f32[1,1024], index: 2, kind: input, shape index: {}]   ;;  %s6156_s3 = inlined_call_operand.hbm [shape: bf16[1024,128], index: 3, kind: input, shape index: {}]   ;;  %s6157_s4 = inlined_call_operand.hbm [shape: f32[1,128], index: 4, kind: input, shape index: {}]   ;;  %s6158_s5 = inlined_call_operand.hbm [shape: bf16[128,128], index: 5, kind: input, shape index: {}]   ;;  %s6159_s6 = inlined_call_operand.hbm [shape: f32[1,128], index: 6, kind: input, shape index: {}]   ;;  %s6160_s7 = inlined_call_operand.hbm [shape: f32[16,128], index: 7, kind: output, shape index: {}]  }
   0x1   :  { %13 = vsyncpa [#allocation6], 0 }
   0x2   :  { %14 = vsyncpa [#allocation9], 0 }
   0x3   :  { %15 = vsyncpa [#allocation12], 0 }
   0x4   :  { %16 = vsyncpa [#allocation4], 0  ;;  %s5860_s24 = smov [#allocation5]   ;;  %s5861_s26 = smov [#allocation8]  }
   0x5   :  { %s34_s25 = sshll.u32 %s5860_s24, 4  ;;  %s56_s27 = sshll.u32 %s5861_s26, 4  ;;  %s35_s25 = int_to_ptr.vmem [resolvable:$true] %s34_s25  ;;  %s5916_s27 = int_to_ptr.vmem [resolvable:$true] %s56_s27 }
   0x6   :  { %s5674_s30 = scalar_lea.hbm %s6154_s1, 65536 }
   0x7   :  { %p5675_p0 = scmp.ne.s32.totalorder %s6154_s1, %s5674_s30  ;;  %p5678_p1 = scmp.lt.u32.totalorder %s5674_s30, %s6154_s1 }
   0x9   :  { %p5680_p2 = pnand %p5678_p1, %p5675_p0 }
   0xb   :  { %5683 = shalt.err (!%p5680_p2)
}
   0xc   :  { %s5684_s12 = scalar_lea.vmem %s35_s25, 65536  ;;  %p5689_p4 = scmp.lt.s32.totalorder %s35_s25, %s35_s25 }
   0xd   :  { %p5685_p3 = scmp.ne.s32.totalorder %s35_s25, %s5684_s12  ;;  %p5690_p5 = scmp.lt.s32.totalorder %s5684_s12, %s5684_s12 }
   0xf   :  { %p5691_p6 = por %p5690_p5, %p5689_p4 }
  0x11   :  { %p5692_p7 = pnand %p5691_p6, %p5685_p3 }
  0x13   :  { %5695 = shalt.err (!%p5692_p7)
}
  0x14   :  { %s5862_s13 = smov 512   ;;  %s5863_s14 = smov 32  }
  0x15   :  { %40 = dma.hbm_to_vmem [thread:$0]  %s6154_s1, 65536, %s35_s25, [#allocation6], %s5862_s13, %s5862_s13, %s5863_s14  }
  0x16   :  { %s5696_s19 = scalar_lea.hbm %s6156_s3, 8192 }
  0x17   :  { %p5697_p8 = scmp.ne.s32.totalorder %s6156_s3, %s5696_s19  ;;  %p5700_p9 = scmp.lt.u32.totalorder %s5696_s19, %s6156_s3 }
  0x19   :  { %p5702_p10 = pnand %p5700_p9, %p5697_p8 }
  0x1b   :  { %5705 = shalt.err (!%p5702_p10)
}
  0x1c   :  { %s5706_s24 = scalar_lea.vmem %s5916_s27, 8192  ;;  %p5711_p12 = scmp.lt.s32.totalorder %s5916_s27, %s5916_s27 }
  0x1d   :  { %p5707_p11 = scmp.ne.s32.totalorder %s5916_s27, %s5706_s24  ;;  %p5712_p13 = scmp.lt.s32.totalorder %s5706_s24, %s5706_s24 }
  0x1f   :  { %p5713_p0 = por %p5712_p13, %p5711_p12 }
  0x21   :  { %p5714_p1 = pnand %p5713_p0, %p5707_p11 }
  0x23   :  { %5717 = shalt.err (!%p5714_p1)
}
  0x24   :  { %s5864_s1 = smov 64   ;;  %s5865_s25 = smov 4  }
  0x25   :  { %62 = dma.hbm_to_vmem [thread:$0]  %s6156_s3, 8192, %s5916_s27, [#allocation9], %s5864_s1, %s5864_s1, %s5865_s25  }
  0x26   :  { %s5866_s29 = smov [#allocation11]   ;;  %s5867_s8 = smov [#allocation2]  }
  0x27   :  { %s78_s30 = sshll.u32 %s5866_s29, 4  ;;  %s22_s9 = sshll.u32 %s5867_s8, 4  ;;  %s79_s30 = int_to_ptr.vmem [resolvable:$true] %s78_s30  ;;  %s5950_s9 = int_to_ptr.vmem [resolvable:$true] %s22_s9 }
  0x28   :  { %s5718_s12 = scalar_lea.hbm %s6158_s5, 1024 }
  0x29   :  { %p5719_p2 = scmp.ne.s32.totalorder %s6158_s5, %s5718_s12  ;;  %p5722_p3 = scmp.lt.u32.totalorder %s5718_s12, %s6158_s5 }
  0x2b   :  { %p5724_p4 = pnand %p5722_p3, %p5719_p2 }
  0x2d   :  { %5727 = shalt.err (!%p5724_p4)
}
  0x2e   :  { %s5728_s3 = scalar_lea.vmem %s79_s30, 1024  ;;  %p5733_p6 = scmp.lt.s32.totalorder %s79_s30, %s79_s30 }
  0x2f   :  { %p5729_p5 = scmp.ne.s32.totalorder %s79_s30, %s5728_s3  ;;  %p5734_p7 = scmp.lt.s32.totalorder %s5728_s3, %s5728_s3 }
  0x31   :  { %p5735_p8 = por %p5734_p7, %p5733_p6 }
  0x33   :  { %p5736_p9 = pnand %p5735_p8, %p5729_p5 }
  0x35   :  { %5739 = shalt.err (!%p5736_p9)
}
  0x36   :  { %84 = dma.hbm_to_vmem [thread:$0]  %s6158_s5, 1024, %s79_s30, [#allocation12], %s5864_s1, %s5864_s1, %s5865_s25  }
  0x37   :  { %s5740_s22 = scalar_lea.hbm %s6153_s0, 1024 }
  0x38   :  { %p5741_p10 = scmp.ne.s32.totalorder %s6153_s0, %s5740_s22  ;;  %p5744_p11 = scmp.lt.u32.totalorder %s5740_s22, %s6153_s0 }
  0x3a   :  { %p5746_p12 = pnand %p5744_p11, %p5741_p10 }
  0x3c   :  { %5749 = shalt.err (!%p5746_p12)
}
  0x3d   :  { %s5750_s29 = scalar_lea.vmem %s5950_s9, 1024  ;;  %p5755_p0 = scmp.lt.s32.totalorder %s5950_s9, %s5950_s9 }
  0x3e   :  { %p5751_p13 = scmp.ne.s32.totalorder %s5950_s9, %s5750_s29  ;;  %p5756_p1 = scmp.lt.s32.totalorder %s5750_s29, %s5750_s29 }
  0x40   :  { %p5757_p2 = por %p5756_p1, %p5755_p0 }
  0x42   :  { %p5758_p3 = pnand %p5757_p2, %p5751_p13 }
  0x44   :  { %5761 = shalt.err (!%p5758_p3)
}
  0x45   :  { %28 = dma.hbm_to_vmem [thread:$0]  %s6153_s0, 1024, %s5950_s9, [#allocation3], %s5862_s13, %s5862_s13, %s5863_s14  }
  0x46   :  { %s5868_s25 = smov [#allocation7]   ;;  %s5869_s8 = smov [#allocation10]  }
  0x47   :  { %s47_s30 = sshll.u32 %s5868_s25, 4  ;;  %s69_s10 = sshll.u32 %s5869_s8, 4  ;;  %s48_s30 = int_to_ptr.vmem [resolvable:$true] %s47_s30  ;;  %s70_s10 = int_to_ptr.vmem [resolvable:$true] %s69_s10 }
  0x48   :  { %s5762_s15 = scalar_lea.hbm %s6155_s2, 128 }
  0x49   :  { %p5763_p4 = scmp.ne.s32.totalorder %s6155_s2, %s5762_s15  ;;  %p5766_p5 = scmp.lt.u32.totalorder %s5762_s15, %s6155_s2 }
  0x4b   :  { %p5768_p6 = pnand %p5766_p5, %p5763_p4 }
  0x4d   :  { %5771 = shalt.err (!%p5768_p6)
}
  0x4e   :  { %s5772_s0 = scalar_lea.vmem %s48_s30, 128  ;;  %p5777_p8 = scmp.lt.s32.totalorder %s48_s30, %s48_s30 }
  0x4f   :  { %p5773_p7 = scmp.ne.s32.totalorder %s48_s30, %s5772_s0  ;;  %p5778_p9 = scmp.lt.s32.totalorder %s5772_s0, %s5772_s0 }
  0x51   :  { %p5779_p10 = por %p5778_p9, %p5777_p8 }
  0x53   :  { %p5780_p11 = pnand %p5779_p10, %p5773_p7 }
  0x55   :  { %5783 = shalt.err (!%p5780_p11)
}
  0x56   :  { %50 = dma.hbm_to_vmem [thread:$0]  %s6155_s2, 128, %s48_s30, [#allocation6]  }
  0x57   :  { %s5784_s19 = scalar_lea.hbm %s6157_s4, 16 }
  0x58   :  { %p5785_p12 = scmp.ne.s32.totalorder %s6157_s4, %s5784_s19  ;;  %p5788_p13 = scmp.lt.u32.totalorder %s5784_s19, %s6157_s4 }
  0x5a   :  { %p5790_p0 = pnand %p5788_p13, %p5785_p12 }
  0x5c   :  { %5793 = shalt.err (!%p5790_p0)
}
  0x5d   :  { %s5794_s24 = scalar_lea.vmem %s70_s10, 16  ;;  %s5798_s26 = scalar_lea.vmem %s70_s10, 32 }
  0x5e   :  { %p5795_p1 = scmp.ne.s32.totalorder %s70_s10, %s5794_s24  ;;  %p5799_p2 = scmp.lt.s32.totalorder %s70_s10, %s70_s10 }
  0x5f   :  { %p5800_p3 = scmp.lt.s32.totalorder %s5798_s26, %s5794_s24 }
  0x61   :  { %p5801_p4 = por %p5800_p3, %p5799_p2 }
  0x63   :  { %p5802_p5 = pnand %p5801_p4, %p5795_p1 }
  0x65   :  { %5805 = shalt.err (!%p5802_p5)
}
  0x66   :  { %72 = dma.hbm_to_vmem [thread:$0]  %s6157_s4, 16, %s70_s10, [#allocation9]  }
  0x67   :  { %s5870_s29 = smov [#allocation13]   ;;  %s5806_s30 = scalar_lea.hbm %s6159_s6, 16 }
  0x68   :  { %s91_s5 = sshll.u32 %s5870_s29, 4  ;;  %p5807_p6 = scmp.ne.s32.totalorder %s6159_s6, %s5806_s30  ;;  %s92_s5 = int_to_ptr.vmem [resolvable:$true] %s91_s5 }
  0x69   :  { %p5810_p7 = scmp.lt.u32.totalorder %s5806_s30, %s6159_s6 }
  0x6b   :  { %p5812_p8 = pnand %p5810_p7, %p5807_p6 }
  0x6d   :  { %5815 = shalt.err (!%p5812_p8)
}
  0x6e   :  { %s5816_s16 = scalar_lea.vmem %s92_s5, 16  ;;  %s5820_s4 = scalar_lea.vmem %s92_s5, 32 }
  0x6f   :  { %p5817_p9 = scmp.ne.s32.totalorder %s92_s5, %s5816_s16  ;;  %p5821_p10 = scmp.lt.s32.totalorder %s92_s5, %s92_s5 }
  0x70   :  { %p5822_p11 = scmp.lt.s32.totalorder %s5820_s4, %s5816_s16 }
  0x72   :  { %p5823_p12 = por %p5822_p11, %p5821_p10 }
  0x74   :  { %p5824_p13 = pnand %p5823_p12, %p5817_p9 }
  0x76   :  { %5827 = shalt.err (!%p5824_p13)
}
  0x77   :  { %94 = dma.hbm_to_vmem [thread:$0]  %s6159_s6, 16, %s92_s5, [#allocation12]  }
  0x78   :  { %5850 = dma.done.wait [#allocation3], 1024  }
  0x79   :  { %5851 = vsyncadd [#allocation3], 4294966272 }
  0x7a   :  { %5852 = dma.done.wait [#allocation6], 65664  }
  0x7b   :  { %5853 = vsyncadd [#allocation6], 4294901632 }
  0x7c   :  { %5854 = dma.done.wait [#allocation9], 8208  }
  0x7d   :  { %5855 = vsyncadd [#allocation9], 4294959088 }
  0x7e   :  { %5856 = dma.done.wait [#allocation12], 1040  }
  0x7f   :  { %5857 = vsyncadd [#allocation12], 4294966256  ;;  %v125_v0 = vld [vmem:[#allocation5] sm:$0xff]  ;;  %v126_v2 = vld [vmem:[#allocation5 + $0x8] sm:$0xff]  ;;  %vm5872_vm0 = vmmov 0   ;;  %s5873_s6 = smov [#allocation14]  }
  0x80   :  { %v129_v1 = vld [vmem:[#allocation5 + $0x20] sm:$0xff]  ;;  %v130_v4 = vld [vmem:[#allocation5 + $0x28] sm:$0xff]  ;;  %s4796_s18 = sshll.u32 %s5873_s6, 4  ;;  %s4797_s18 = int_to_ptr.vmem [resolvable:$true] %s4796_s18 }
  0x81   :  { %v4820_v3 = vcombine.high %v125_v0, %v129_v1  ;;  %v4819_v5 = vcombine.low %v125_v0, %v129_v1  ;;  %v133_v6 = vld [vmem:[#allocation5 + $0x40] sm:$0xff]  ;;  %v4822_v8 = vcombine.high %v126_v2, %v130_v4  ;;  %v4821_v9 = vcombine.low %v126_v2, %v130_v4  ;;  %v134_v11 = vld [vmem:[#allocation5 + $0x48] sm:$0xff]  ;;  %s5828_s3 = scalar_lea.vmem %s4797_s18, 256  ;;  %p5833_p1 = scmp.lt.s32.totalorder %s4797_s18, %s4797_s18 }
  0x82   :  { %v137_v7 = vld [vmem:[#allocation5 + $0x60] sm:$0xff]  ;;  %v138_v12 = vld [vmem:[#allocation5 + $0x68] sm:$0xff]  ;;  %p5829_p0 = scmp.ne.s32.totalorder %s4797_s18, %s5828_s3  ;;  %p5834_p2 = scmp.lt.s32.totalorder %s5828_s3, %s5828_s3 }
  0x83   :  { %v4828_v10 = vcombine.high %v133_v6, %v137_v7  ;;  %v141_v13 = vld [vmem:[#allocation5 + $0x80] sm:$0xff]  ;;  %3279 = vmatprep.subr.bf16.mxu0 %v4820_v3  ;;  %v4830_v14 = vcombine.high %v134_v11, %v138_v12  ;;  %v142_v16 = vld [vmem:[#allocation5 + $0x88] sm:$0xff]  ;;  %3451 = vmatprep.subr.bf16.mxu1 %v4822_v8  ;;  %v4827_v18 = vcombine.low %v133_v6, %v137_v7 }
  0x84   :  { %v145_v15 = vld [vmem:[#allocation5 + $0xa0] sm:$0xff]  ;;  %v146_v17 = vld [vmem:[#allocation5 + $0xa8] sm:$0xff]  ;;  %3280 = vmatpush1.bf16.msra.mxu0 %v4819_v5  ;;  %3452 = vmatpush1.bf16.msra.mxu1 %v4821_v9  ;;  %v4829_v19 = vcombine.low %v134_v11, %v138_v12  ;;  %p5835_p3 = por %p5834_p2, %p5833_p1 }
  0x85   :  { %3281 = vmatprep.subr.bf16.mxu0 %v4828_v10  ;;  %v4836_v20 = vcombine.high %v141_v13, %v145_v15  ;;  %3453 = vmatprep.subr.bf16.mxu1 %v4830_v14  ;;  %v4838_v21 = vcombine.high %v142_v16, %v146_v17  ;;  %v149_v22 = vld [vmem:[#allocation5 + $0xc0] sm:$0xff]  ;;  %v150_v24 = vld [vmem:[#allocation5 + $0xc8] sm:$0xff]  ;;  %v4835_v26 = vcombine.low %v141_v13, %v145_v15 }
  0x86   :  { %v153_v23 = vld [vmem:[#allocation5 + $0xe0] sm:$0xff]  ;;  %v154_v25 = vld [vmem:[#allocation5 + $0xe8] sm:$0xff]  ;;  %v4837_v27 = vcombine.low %v142_v16, %v146_v17  ;;  %p5836_p4 = pnand %p5835_p3, %p5829_p0 }
  0x87   :  { %v4844_v28 = vcombine.high %v149_v22, %v153_v23  ;;  %v4846_v29 = vcombine.high %v150_v24, %v154_v25  ;;  %v157_v30 = vld [vmem:[#allocation5 + $0x100] sm:$0xff]  ;;  %v158_v32 = vld [vmem:[#allocation5 + $0x108] sm:$0xff]  ;;  %v4843_v34 = vcombine.low %v149_v22, %v153_v23  ;;  %v4845_v35 = vcombine.low %v150_v24, %v154_v25 }
  0x88   :  { %3282 = vmatpush1.bf16.msra.mxu0 %v4827_v18  ;;  %3454 = vmatpush1.bf16.msra.mxu1 %v4829_v19  ;;  %v161_v31 = vld [vmem:[#allocation5 + $0x120] sm:$0xff]  ;;  %v162_v33 = vld [vmem:[#allocation5 + $0x128] sm:$0xff] }
  0x89   :  { %3283 = vmatprep.subr.bf16.mxu0 %v4836_v20  ;;  %3455 = vmatprep.subr.bf16.mxu1 %v4838_v21  ;;  %v4852_v36 = vcombine.high %v157_v30, %v161_v31  ;;  %v4854_v37 = vcombine.high %v158_v32, %v162_v33  ;;  %v165_v38 = vld [vmem:[#allocation5 + $0x140] sm:$0xff]  ;;  %v166_v40 = vld [vmem:[#allocation5 + $0x148] sm:$0xff]  ;;  %v4851_v42 = vcombine.low %v157_v30, %v161_v31 }
  0x8a   :  { %v169_v39 = vld [vmem:[#allocation5 + $0x160] sm:$0xff]  ;;  %v170_v41 = vld [vmem:[#allocation5 + $0x168] sm:$0xff]  ;;  %v4853_v43 = vcombine.low %v158_v32, %v162_v33 }
  0x8b   :  { %v4860_v44 = vcombine.high %v165_v38, %v169_v39  ;;  %v4862_v45 = vcombine.high %v166_v40, %v170_v41  ;;  %v173_v46 = vld [vmem:[#allocation5 + $0x180] sm:$0xff]  ;;  %v174_v48 = vld [vmem:[#allocation5 + $0x188] sm:$0xff]  ;;  %v4859_v50 = vcombine.low %v165_v38, %v169_v39  ;;  %v4861_v51 = vcombine.low %v166_v40, %v170_v41 }
  0x8c   :  { %3284 = vmatpush1.bf16.msra.mxu0 %v4835_v26  ;;  %3456 = vmatpush1.bf16.msra.mxu1 %v4837_v27  ;;  %v177_v47 = vld [vmem:[#allocation5 + $0x1a0] sm:$0xff]  ;;  %v178_v49 = vld [vmem:[#allocation5 + $0x1a8] sm:$0xff] }
  0x8d   :  { %3285 = vmatprep.subr.bf16.mxu0 %v4844_v28  ;;  %3457 = vmatprep.subr.bf16.mxu1 %v4846_v29  ;;  %v4868_v52 = vcombine.high %v173_v46, %v177_v47  ;;  %v6020_v53 = vld [vmem:[#allocation2] sm:$0xff]  ;;  %v4870_v55 = vcombine.high %v174_v48, %v178_v49  ;;  %v182_v59 = vld [vmem:[#allocation5 + $0x1c8] sm:$0xff]  ;;  %v4867_v61 = vcombine.low %v173_v46, %v177_v47 }
  0x8e   :  { %v6022_v54 = vld [vmem:[#allocation2 + $0x20] sm:$0xff]  ;;  %v186_v60 = vld [vmem:[#allocation5 + $0x1e8] sm:$0xff]  ;;  %v4869_v62 = vcombine.low %v174_v48, %v178_v49 }
  0x8f   :  { %v181_v56 = vld [vmem:[#allocation5 + $0x1c0] sm:$0xff]  ;;  %v6026_v58 = vcombine.high %v6020_v53, %v6022_v54  ;;  %v4878_v0 = vcombine.high %v182_v59, %v186_v60  ;;  %v190_v3 = vld [vmem:[#allocation5 + $0x208] sm:$0xff]  ;;  %v4877_v6 = vcombine.low %v182_v59, %v186_v60 }
  0x90   :  { %3286 = vmatpush1.bf16.msra.mxu0 %v4843_v34  ;;  %3458 = vmatpush1.bf16.msra.mxu1 %v4845_v35  ;;  %v185_v57 = vld [vmem:[#allocation5 + $0x1e0] sm:$0xff]  ;;  %v194_v4 = vld [vmem:[#allocation5 + $0x228] sm:$0xff] }
  0x91   :  { %3287 = vmatprep.subr.bf16.mxu0 %v4852_v36  ;;  %3459 = vmatprep.subr.bf16.mxu1 %v4854_v37  ;;  %v4876_v63 = vcombine.high %v181_v56, %v185_v57  ;;  %v189_v1 = vld [vmem:[#allocation5 + $0x200] sm:$0xff]  ;;  %v4875_v5 = vcombine.low %v181_v56, %v185_v57  ;;  %v4886_v8 = vcombine.high %v190_v3, %v194_v4  ;;  %v198_v11 = vld [vmem:[#allocation5 + $0x248] sm:$0xff] }
  0x92   :  { %3311 = vmatprep.mubr.bf16.mxu0 %v6026_v58  ;;  %v193_v2 = vld [vmem:[#allocation5 + $0x220] sm:$0xff]  ;;  %3483 = vmatprep.mubr.bf16.mxu1 %v6026_v58  ;;  %v202_v12 = vld [vmem:[#allocation5 + $0x268] sm:$0xff]  ;;  %v4885_v14 = vcombine.low %v190_v3, %v194_v4 }
  0x93   :  { %v4884_v7 = vcombine.high %v189_v1, %v193_v2  ;;  %v197_v9 = vld [vmem:[#allocation5 + $0x240] sm:$0xff]  ;;  %v4883_v13 = vcombine.low %v189_v1, %v193_v2  ;;  %v4894_v16 = vcombine.high %v198_v11, %v202_v12  ;;  %v206_v19 = vld [vmem:[#allocation5 + $0x288] sm:$0xff]  ;;  %v4893_v22 = vcombine.low %v198_v11, %v202_v12 }
  0x94   :  { %3288 = vmatpush1.bf16.msra.mxu0 %v4851_v42  ;;  %3460 = vmatpush1.bf16.msra.mxu1 %v4853_v43  ;;  %v201_v10 = vld [vmem:[#allocation5 + $0x260] sm:$0xff]  ;;  %v210_v20 = vld [vmem:[#allocation5 + $0x2a8] sm:$0xff] }
  0x95   :  { %3289 = vmatprep.subr.bf16.mxu0 %v4860_v44  ;;  %3461 = vmatprep.subr.bf16.mxu1 %v4862_v45  ;;  %v4892_v15 = vcombine.high %v197_v9, %v201_v10  ;;  %v205_v17 = vld [vmem:[#allocation5 + $0x280] sm:$0xff]  ;;  %v4891_v21 = vcombine.low %v197_v9, %v201_v10  ;;  %v4902_v24 = vcombine.high %v206_v19, %v210_v20  ;;  %v214_v27 = vld [vmem:[#allocation5 + $0x2c8] sm:$0xff] }
  0x96   :  { %v209_v18 = vld [vmem:[#allocation5 + $0x2a0] sm:$0xff]  ;;  %v218_v28 = vld [vmem:[#allocation5 + $0x2e8] sm:$0xff]  ;;  %v4901_v30 = vcombine.low %v206_v19, %v210_v20 }
  0x97   :  { %v4900_v23 = vcombine.high %v205_v17, %v209_v18  ;;  %v213_v25 = vld [vmem:[#allocation5 + $0x2c0] sm:$0xff]  ;;  %v4899_v29 = vcombine.low %v205_v17, %v209_v18  ;;  %v4910_v32 = vcombine.high %v214_v27, %v218_v28  ;;  %v222_v35 = vld [vmem:[#allocation5 + $0x308] sm:$0xff]  ;;  %v4909_v38 = vcombine.low %v214_v27, %v218_v28 }
  0x98   :  { %3290 = vmatpush1.bf16.msra.mxu0 %v4859_v50  ;;  %3462 = vmatpush1.bf16.msra.mxu1 %v4861_v51  ;;  %v217_v26 = vld [vmem:[#allocation5 + $0x2e0] sm:$0xff]  ;;  %v226_v36 = vld [vmem:[#allocation5 + $0x328] sm:$0xff] }
  0x99   :  { %3291 = vmatprep.subr.bf16.mxu0 %v4868_v52  ;;  %3463 = vmatprep.subr.bf16.mxu1 %v4870_v55  ;;  %v4908_v31 = vcombine.high %v213_v25, %v217_v26  ;;  %v221_v33 = vld [vmem:[#allocation5 + $0x300] sm:$0xff]  ;;  %v4907_v37 = vcombine.low %v213_v25, %v217_v26  ;;  %v4918_v40 = vcombine.high %v222_v35, %v226_v36  ;;  %v230_v43 = vld [vmem:[#allocation5 + $0x348] sm:$0xff] }
  0x9a   :  { %v225_v34 = vld [vmem:[#allocation5 + $0x320] sm:$0xff]  ;;  %v234_v44 = vld [vmem:[#allocation5 + $0x368] sm:$0xff]  ;;  %v4917_v46 = vcombine.low %v222_v35, %v226_v36 }
  0x9b   :  { %v4916_v39 = vcombine.high %v221_v33, %v225_v34  ;;  %v229_v41 = vld [vmem:[#allocation5 + $0x340] sm:$0xff]  ;;  %v4915_v45 = vcombine.low %v221_v33, %v225_v34  ;;  %v4926_v48 = vcombine.high %v230_v43, %v234_v44  ;;  %v238_v51 = vld [vmem:[#allocation5 + $0x388] sm:$0xff]  ;;  %v4925_v56 = vcombine.low %v230_v43, %v234_v44 }
  0x9c   :  { %3292 = vmatpush1.bf16.msra.mxu0 %v4867_v61  ;;  %3464 = vmatpush1.bf16.msra.mxu1 %v4869_v62  ;;  %v233_v42 = vld [vmem:[#allocation5 + $0x360] sm:$0xff]  ;;  %v242_v52 = vld [vmem:[#allocation5 + $0x3a8] sm:$0xff] }
  0x9d   :  { %3293 = vmatprep.subr.bf16.mxu0 %v4876_v63  ;;  %3465 = vmatprep.subr.bf16.mxu1 %v4878_v0  ;;  %v4924_v47 = vcombine.high %v229_v41, %v233_v42  ;;  %v237_v49 = vld [vmem:[#allocation5 + $0x380] sm:$0xff]  ;;  %v4923_v55 = vcombine.low %v229_v41, %v233_v42  ;;  %v4934_v59 = vcombine.high %v238_v51, %v242_v52  ;;  %v246_v62 = vld [vmem:[#allocation5 + $0x3c8] sm:$0xff] }
  0x9e   :  { %v241_v50 = vld [vmem:[#allocation5 + $0x3a0] sm:$0xff]  ;;  %v250_v63 = vld [vmem:[#allocation5 + $0x3e8] sm:$0xff]  ;;  %v4933_v1 = vcombine.low %v238_v51, %v242_v52 }
  0x9f   :  { %v4932_v57 = vcombine.high %v237_v49, %v241_v50  ;;  %v245_v60 = vld [vmem:[#allocation5 + $0x3c0] sm:$0xff]  ;;  %v4931_v0 = vcombine.low %v237_v49, %v241_v50  ;;  %v4942_v3 = vcombine.high %v246_v62, %v250_v63  ;;  %v4941_v9 = vcombine.low %v246_v62, %v250_v63  ;;  %v6034_v17 = vld [vmem:[#allocation2 + $0x8] sm:$0xff] }
  0xa0   :  { %3294 = vmatpush1.bf16.msra.mxu0 %v4875_v5  ;;  %3466 = vmatpush1.bf16.msra.mxu1 %v4877_v6  ;;  %v249_v61 = vld [vmem:[#allocation5 + $0x3e0] sm:$0xff]  ;;  %v254_v6 = vld [vmem:[#allocation5 + $0x408] sm:$0xff] }
  0xa1   :  { %3295 = vmatprep.subr.bf16.mxu0 %v4884_v7  ;;  %3467 = vmatprep.subr.bf16.mxu1 %v4886_v8  ;;  %v4940_v2 = vcombine.high %v245_v60, %v249_v61  ;;  %v253_v4 = vld [vmem:[#allocation5 + $0x400] sm:$0xff]  ;;  %v258_v7 = vld [vmem:[#allocation5 + $0x428] sm:$0xff]  ;;  %v4939_v8 = vcombine.low %v245_v60, %v249_v61 }
  0xa2   :  { %v257_v5 = vld [vmem:[#allocation5 + $0x420] sm:$0xff]  ;;  %v4950_v11 = vcombine.high %v254_v6, %v258_v7  ;;  %v6036_v18 = vld [vmem:[#allocation2 + $0x28] sm:$0xff]  ;;  %v4949_v20 = vcombine.low %v254_v6, %v258_v7 }
  0xa3   :  { %v4948_v10 = vcombine.high %v253_v4, %v257_v5  ;;  %v261_v12 = vld [vmem:[#allocation5 + $0x440] sm:$0xff]  ;;  %v4947_v19 = vcombine.low %v253_v4, %v257_v5  ;;  %v270_v25 = vld [vmem:[#allocation5 + $0x488] sm:$0xff] }
  0xa4   :  { %3296 = vmatpush1.bf16.msra.mxu0 %v4883_v13  ;;  %3468 = vmatpush1.bf16.msra.mxu1 %v4885_v14  ;;  %v265_v13 = vld [vmem:[#allocation5 + $0x460] sm:$0xff]  ;;  %v262_v14 = vld [vmem:[#allocation5 + $0x448] sm:$0xff] }
  0xa5   :  { %3297 = vmatprep.subr.bf16.mxu0 %v4892_v15  ;;  %3469 = vmatprep.subr.bf16.mxu1 %v4894_v16  ;;  %v6032_v15 = vcombine.low %v6020_v53, %v6022_v54  ;;  %v266_v16 = vld [vmem:[#allocation5 + $0x468] sm:$0xff]  ;;  %v6040_v53 = vcombine.high %v6034_v17, %v6036_v18  ;;  %v4955_v26 = vcombine.low %v261_v12, %v265_v13 }
  0xa6   :  { %v274_v54 = vld [vmem:[#allocation5 + $0x4a8] sm:$0xff]  ;;  %v4957_v27 = vcombine.low %v262_v14, %v266_v16 }
  0xa7   :  { %v282_v33 = vld [vmem:[#allocation5 + $0x4e8] sm:$0xff]  ;;  %v4965_v35 = vcombine.low %v270_v25, %v274_v54 }
  0xa8   :  { %3298 = vmatpush1.bf16.msra.mxu0 %v4891_v21  ;;  %3470 = vmatpush1.bf16.msra.mxu1 %v4893_v22  ;;  %v4956_v21 = vcombine.high %v261_v12, %v265_v13  ;;  %v4958_v22 = vcombine.high %v262_v14, %v266_v16  ;;  %v290_v41 = vld [vmem:[#allocation5 + $0x528] sm:$0xff] }
  0xa9   :  { %3299 = vmatprep.subr.bf16.mxu0 %v4900_v23  ;;  %3471 = vmatprep.subr.bf16.mxu1 %v4902_v24  ;;  %v269_v23 = vld [vmem:[#allocation5 + $0x480] sm:$0xff]  ;;  %v298_v49 = vld [vmem:[#allocation5 + $0x568] sm:$0xff] }
  0xaa   :  { %v273_v24 = vld [vmem:[#allocation5 + $0x4a0] sm:$0xff]  ;;  %v306_v60 = vld [vmem:[#allocation5 + $0x5a8] sm:$0xff] }
  0xab   :  { %v4964_v28 = vcombine.high %v269_v23, %v273_v24  ;;  %v4963_v34 = vcombine.low %v269_v23, %v273_v24  ;;  %v314_v4 = vld [vmem:[#allocation5 + $0x5e8] sm:$0xff] }
  0xac   :  { %3300 = vmatpush1.bf16.msra.mxu0 %v4899_v29  ;;  %3472 = vmatpush1.bf16.msra.mxu1 %v4901_v30  ;;  %v277_v29 = vld [vmem:[#allocation5 + $0x4c0] sm:$0xff]  ;;  %v322_v12 = vld [vmem:[#allocation5 + $0x628] sm:$0xff] }
  0xad   :  { %3301 = vmatprep.subr.bf16.mxu0 %v4908_v31  ;;  %3473 = vmatprep.subr.bf16.mxu1 %v4910_v32  ;;  %v281_v30 = vld [vmem:[#allocation5 + $0x4e0] sm:$0xff]  ;;  %v278_v31 = vld [vmem:[#allocation5 + $0x4c8] sm:$0xff]  ;;  %v4966_v32 = vcombine.high %v270_v25, %v274_v54 }
  0xae   :  { %v4972_v36 = vcombine.high %v277_v29, %v281_v30  ;;  %v4971_v42 = vcombine.low %v277_v29, %v281_v30  ;;  %v4973_v43 = vcombine.low %v278_v31, %v282_v33  ;;  %v330_v23 = vld [vmem:[#allocation5 + $0x668] sm:$0xff] }
  0xaf   :  { %v338_v30 = vld [vmem:[#allocation5 + $0x6a8] sm:$0xff] }
  0xb0   :  { %3302 = vmatpush1.bf16.msra.mxu0 %v4907_v37  ;;  %3474 = vmatpush1.bf16.msra.mxu1 %v4909_v38  ;;  %v285_v37 = vld [vmem:[#allocation5 + $0x500] sm:$0xff] }
  0xb1   :  { %3303 = vmatprep.subr.bf16.mxu0 %v4916_v39  ;;  %3475 = vmatprep.subr.bf16.mxu1 %v4918_v40  ;;  %v289_v38 = vld [vmem:[#allocation5 + $0x520] sm:$0xff]  ;;  %v286_v39 = vld [vmem:[#allocation5 + $0x508] sm:$0xff]  ;;  %v4974_v40 = vcombine.high %v278_v31, %v282_v33 }
  0xb2   :  { %v4980_v44 = vcombine.high %v285_v37, %v289_v38  ;;  %v4979_v50 = vcombine.low %v285_v37, %v289_v38  ;;  %v4981_v51 = vcombine.low %v286_v39, %v290_v41  ;;  %v346_v38 = vld [vmem:[#allocation5 + $0x6e8] sm:$0xff] }
  0xb4   :  { %3304 = vmatpush1.bf16.msra.mxu0 %v4915_v45  ;;  %3476 = vmatpush1.bf16.msra.mxu1 %v4917_v46  ;;  %v293_v45 = vld [vmem:[#allocation5 + $0x540] sm:$0xff] }
  0xb5   :  { %3305 = vmatprep.subr.bf16.mxu0 %v4924_v47  ;;  %3477 = vmatprep.subr.bf16.mxu1 %v4926_v48  ;;  %v297_v46 = vld [vmem:[#allocation5 + $0x560] sm:$0xff]  ;;  %v294_v47 = vld [vmem:[#allocation5 + $0x548] sm:$0xff]  ;;  %v4982_v48 = vcombine.high %v286_v39, %v290_v41 }
  0xb6   :  { %v4988_v52 = vcombine.high %v293_v45, %v297_v46  ;;  %v4987_v61 = vcombine.low %v293_v45, %v297_v46  ;;  %v4989_v62 = vcombine.low %v294_v47, %v298_v49  ;;  %v354_v46 = vld [vmem:[#allocation5 + $0x728] sm:$0xff] }
  0xb8   :  { %3306 = vmatpush1.bf16.msra.mxu0 %v4923_v55  ;;  %3478 = vmatpush1.bf16.msra.mxu1 %v4925_v56  ;;  %v301_v55 = vld [vmem:[#allocation5 + $0x580] sm:$0xff] }
  0xb9   :  { %3307 = vmatprep.subr.bf16.mxu0 %v4932_v57  ;;  %3479 = vmatprep.subr.bf16.mxu1 %v4934_v59  ;;  %v305_v56 = vld [vmem:[#allocation5 + $0x5a0] sm:$0xff]  ;;  %v302_v57 = vld [vmem:[#allocation5 + $0x588] sm:$0xff]  ;;  %v4990_v59 = vcombine.high %v294_v47, %v298_v49 }
  0xba   :  { %v4996_v63 = vcombine.high %v301_v55, %v305_v56  ;;  %v4995_v5 = vcombine.low %v301_v55, %v305_v56  ;;  %v4997_v6 = vcombine.low %v302_v57, %v306_v60  ;;  %v362_v56 = vld [vmem:[#allocation5 + $0x768] sm:$0xff] }
  0xbc   :  { %3308 = vmatpush1.bf16.msra.mxu0 %v4931_v0  ;;  %3480 = vmatpush1.bf16.msra.mxu1 %v4933_v1  ;;  %v309_v0 = vld [vmem:[#allocation5 + $0x5c0] sm:$0xff] }
  0xbd   :  { %3309 = vmatprep.subr.bf16.mxu0 %v4940_v2  ;;  %3481 = vmatprep.subr.bf16.mxu1 %v4942_v3  ;;  %v313_v1 = vld [vmem:[#allocation5 + $0x5e0] sm:$0xff]  ;;  %v310_v2 = vld [vmem:[#allocation5 + $0x5c8] sm:$0xff]  ;;  %v4998_v3 = vcombine.high %v302_v57, %v306_v60 }
  0xbe   :  { %v5004_v7 = vcombine.high %v309_v0, %v313_v1  ;;  %v5003_v13 = vcombine.low %v309_v0, %v313_v1  ;;  %v5005_v14 = vcombine.low %v310_v2, %v314_v4  ;;  %v370_v1 = vld [vmem:[#allocation5 + $0x7a8] sm:$0xff] }
  0xc0   :  { %3310 = vmatpush1.bf16.msra.mxu0 %v4939_v8  ;;  %3482 = vmatpush1.bf16.msra.mxu1 %v4941_v9  ;;  %v317_v8 = vld [vmem:[#allocation5 + $0x600] sm:$0xff] }
  0xc1   :  { %3322 = vmatprep.subr.bf16.mxu0 %v4948_v10  ;;  %3494 = vmatprep.subr.bf16.mxu1 %v4950_v11  ;;  %v321_v9 = vld [vmem:[#allocation5 + $0x620] sm:$0xff]  ;;  %v318_v10 = vld [vmem:[#allocation5 + $0x608] sm:$0xff]  ;;  %v5006_v11 = vcombine.high %v310_v2, %v314_v4 }
  0xc2   :  { %v5012_v16 = vcombine.high %v317_v8, %v321_v9  ;;  %v5011_v24 = vcombine.low %v317_v8, %v321_v9  ;;  %v5013_v25 = vcombine.low %v318_v10, %v322_v12  ;;  %v378_v9 = vld [vmem:[#allocation5 + $0x7e8] sm:$0xff] }
  0xc3   :  { %3312 = vmatmul.mubr.bf16.vlgmr.msra.gmra.mrb[0].mxu0 %v6032_v15  ;;  %3484 = vmatmul.mubr.bf16.vlgmr.msra.gmra.mrb[0].mxu1 %v6032_v15 }
  0xc4   :  { %3323 = vmatpush1.bf16.msra.mxu0 %v4947_v19  ;;  %3495 = vmatpush1.bf16.msra.mxu1 %v4949_v20  ;;  %v325_v19 = vld [vmem:[#allocation5 + $0x640] sm:$0xff] }
  0xc5   :  { %3324 = vmatprep.subr.bf16.mxu0 %v4956_v21  ;;  %3496 = vmatprep.subr.bf16.mxu1 %v4958_v22  ;;  %v329_v20 = vld [vmem:[#allocation5 + $0x660] sm:$0xff]  ;;  %v326_v21 = vld [vmem:[#allocation5 + $0x648] sm:$0xff]  ;;  %v5014_v22 = vcombine.high %v318_v10, %v322_v12 }
  0xc6   :  { %3354 = vmatprep.mubr.bf16.mxu0 %v6040_v53  ;;  %3526 = vmatprep.mubr.bf16.mxu1 %v6040_v53  ;;  %v5020_v54 = vcombine.high %v325_v19, %v329_v20  ;;  %v5022_v29 = vcombine.high %v326_v21, %v330_v23  ;;  %v5019_v31 = vcombine.low %v325_v19, %v329_v20  ;;  %v386_v20 = vld [vmem:[#allocation5 + $0x828] sm:$0xff] }
  0xc8   :  { %3325 = vmatpush1.bf16.msra.mxu0 %v4955_v26  ;;  %3497 = vmatpush1.bf16.msra.mxu1 %v4957_v27  ;;  %v333_v26 = vld [vmem:[#allocation5 + $0x680] sm:$0xff] }
  0xc9   :  { %3326 = vmatprep.subr.bf16.mxu0 %v4964_v28  ;;  %3498 = vmatprep.subr.bf16.mxu1 %v4966_v32  ;;  %v337_v27 = vld [vmem:[#allocation5 + $0x6a0] sm:$0xff]  ;;  %v334_v28 = vld [vmem:[#allocation5 + $0x688] sm:$0xff]  ;;  %v5021_v32 = vcombine.low %v326_v21, %v330_v23 }
  0xca   :  { %v5028_v33 = vcombine.high %v333_v26, %v337_v27  ;;  %v5030_v37 = vcombine.high %v334_v28, %v338_v30  ;;  %v5027_v39 = vcombine.low %v333_v26, %v337_v27  ;;  %v393_v23 = vld [vmem:[#allocation5 + $0x860] sm:$0xff]  ;;  %v394_v26 = vld [vmem:[#allocation5 + $0x868] sm:$0xff]  ;;  %v6046_v27 = vld [vmem:[#allocation2 + $0x10] sm:$0xff] }
  0xcc   :  { %3327 = vmatpush1.bf16.msra.mxu0 %v4963_v34  ;;  %3499 = vmatpush1.bf16.msra.mxu1 %v4965_v35  ;;  %v341_v34 = vld [vmem:[#allocation5 + $0x6c0] sm:$0xff] }
  0xcd   :  { %3328 = vmatprep.subr.bf16.mxu0 %v4972_v36  ;;  %3500 = vmatprep.subr.bf16.mxu1 %v4974_v40  ;;  %v345_v35 = vld [vmem:[#allocation5 + $0x6e0] sm:$0xff]  ;;  %v342_v36 = vld [vmem:[#allocation5 + $0x6c8] sm:$0xff]  ;;  %v5029_v40 = vcombine.low %v334_v28, %v338_v30  ;;  %v6052_v30 = vcombine.low %v6034_v17, %v6036_v18 }
  0xce   :  { %v5036_v41 = vcombine.high %v341_v34, %v345_v35  ;;  %v5038_v45 = vcombine.high %v342_v36, %v346_v38  ;;  %v5035_v47 = vcombine.low %v341_v34, %v345_v35  ;;  %v397_v34 = vld [vmem:[#allocation5 + $0x880] sm:$0xff] }
  0xcf   :  { %v401_v35 = vld [vmem:[#allocation5 + $0x8a0] sm:$0xff] }
  0xd0   :  { %3329 = vmatpush1.bf16.msra.mxu0 %v4971_v42  ;;  %3501 = vmatpush1.bf16.msra.mxu1 %v4973_v43  ;;  %v349_v42 = vld [vmem:[#allocation5 + $0x700] sm:$0xff] }
  0xd1   :  { %3330 = vmatprep.subr.bf16.mxu0 %v4980_v44  ;;  %3502 = vmatprep.subr.bf16.mxu1 %v4982_v48  ;;  %v353_v43 = vld [vmem:[#allocation5 + $0x720] sm:$0xff]  ;;  %v350_v44 = vld [vmem:[#allocation5 + $0x708] sm:$0xff]  ;;  %v5037_v48 = vcombine.low %v342_v36, %v346_v38 }
  0xd2   :  { %v5044_v49 = vcombine.high %v349_v42, %v353_v43  ;;  %v5046_v55 = vcombine.high %v350_v44, %v354_v46  ;;  %v5043_v57 = vcombine.low %v349_v42, %v353_v43  ;;  %v398_v36 = vld [vmem:[#allocation5 + $0x888] sm:$0xff]  ;;  %v409_v42 = vld [vmem:[#allocation5 + $0x8e0] sm:$0xff] }
  0xd3   :  { %v402_v38 = vld [vmem:[#allocation5 + $0x8a8] sm:$0xff] }
  0xd4   :  { %3331 = vmatpush1.bf16.msra.mxu0 %v4979_v50  ;;  %3503 = vmatpush1.bf16.msra.mxu1 %v4981_v51  ;;  %v357_v50 = vld [vmem:[#allocation5 + $0x740] sm:$0xff]  ;;  %v406_v43 = vld [vmem:[#allocation5 + $0x8c8] sm:$0xff] }
  0xd5   :  { %3332 = vmatprep.subr.bf16.mxu0 %v4988_v52  ;;  %3504 = vmatprep.subr.bf16.mxu1 %v4990_v59  ;;  %v361_v51 = vld [vmem:[#allocation5 + $0x760] sm:$0xff]  ;;  %v358_v52 = vld [vmem:[#allocation5 + $0x748] sm:$0xff]  ;;  %v5045_v59 = vcombine.low %v350_v44, %v354_v46  ;;  %v5094_v44 = vcombine.high %v398_v36, %v402_v38  ;;  %v5091_v46 = vcombine.low %v397_v34, %v401_v35 }
  0xd6   :  { %v5052_v60 = vcombine.high %v357_v50, %v361_v51  ;;  %v5054_v0 = vcombine.high %v358_v52, %v362_v56  ;;  %v5051_v2 = vcombine.low %v357_v50, %v361_v51  ;;  %v417_v50 = vld [vmem:[#allocation5 + $0x920] sm:$0xff]  ;;  %v414_v51 = vld [vmem:[#allocation5 + $0x908] sm:$0xff] }
  0xd8   :  { %3333 = vmatpush1.bf16.msra.mxu0 %v4987_v61  ;;  %3505 = vmatpush1.bf16.msra.mxu1 %v4989_v62  ;;  %v365_v61 = vld [vmem:[#allocation5 + $0x780] sm:$0xff] }
  0xd9   :  { %3334 = vmatprep.subr.bf16.mxu0 %v4996_v63  ;;  %3506 = vmatprep.subr.bf16.mxu1 %v4998_v3  ;;  %v369_v62 = vld [vmem:[#allocation5 + $0x7a0] sm:$0xff]  ;;  %v366_v63 = vld [vmem:[#allocation5 + $0x788] sm:$0xff]  ;;  %v5053_v3 = vcombine.low %v358_v52, %v362_v56 }
  0xda   :  { %v5060_v4 = vcombine.high %v365_v61, %v369_v62  ;;  %v5062_v8 = vcombine.high %v366_v63, %v370_v1  ;;  %v5059_v10 = vcombine.low %v365_v61, %v369_v62  ;;  %v421_v61 = vld [vmem:[#allocation5 + $0x940] sm:$0xff] }
  0xdb   :  { %v425_v62 = vld [vmem:[#allocation5 + $0x960] sm:$0xff] }
  0xdc   :  { %3335 = vmatpush1.bf16.msra.mxu0 %v4995_v5  ;;  %3507 = vmatpush1.bf16.msra.mxu1 %v4997_v6  ;;  %v373_v5 = vld [vmem:[#allocation5 + $0x7c0] sm:$0xff] }
  0xdd   :  { %3336 = vmatprep.subr.bf16.mxu0 %v5004_v7  ;;  %3508 = vmatprep.subr.bf16.mxu1 %v5006_v11  ;;  %v377_v6 = vld [vmem:[#allocation5 + $0x7e0] sm:$0xff]  ;;  %v374_v7 = vld [vmem:[#allocation5 + $0x7c8] sm:$0xff]  ;;  %v5061_v11 = vcombine.low %v366_v63, %v370_v1 }
  0xde   :  { %v5068_v12 = vcombine.high %v373_v5, %v377_v6  ;;  %v5070_v19 = vcombine.high %v374_v7, %v378_v9  ;;  %v5067_v21 = vcombine.low %v373_v5, %v377_v6  ;;  %v422_v63 = vld [vmem:[#allocation5 + $0x948] sm:$0xff]  ;;  %v429_v5 = vld [vmem:[#allocation5 + $0x980] sm:$0xff] }
  0xdf   :  { %v433_v6 = vld [vmem:[#allocation5 + $0x9a0] sm:$0xff] }
  0xe0   :  { %3337 = vmatpush1.bf16.msra.mxu0 %v5003_v13  ;;  %3509 = vmatpush1.bf16.msra.mxu1 %v5005_v14  ;;  %v381_v13 = vld [vmem:[#allocation5 + $0x800] sm:$0xff] }
  0xe1   :  { %3338 = vmatprep.subr.bf16.mxu0 %v5012_v16  ;;  %3510 = vmatprep.subr.bf16.mxu1 %v5014_v22  ;;  %v385_v14 = vld [vmem:[#allocation5 + $0x820] sm:$0xff]  ;;  %v382_v16 = vld [vmem:[#allocation5 + $0x808] sm:$0xff] }
  0xe2   :  { %v389_v22 = vld [vmem:[#allocation5 + $0x840] sm:$0xff]  ;;  %v5078_v28 = vcombine.high %v382_v16, %v386_v20 }
  0xe3   :  { %v5083_v17 = vcombine.low %v389_v22, %v393_v23 }
  0xe4   :  { %3339 = vmatpush1.bf16.msra.mxu0 %v5011_v24  ;;  %3511 = vmatpush1.bf16.msra.mxu1 %v5013_v25  ;;  %v5069_v24 = vcombine.low %v374_v7, %v378_v9  ;;  %v5076_v25 = vcombine.high %v381_v13, %v385_v14  ;;  %v430_v7 = vld [vmem:[#allocation5 + $0x988] sm:$0xff]  ;;  %v5115_v9 = vcombine.low %v421_v61, %v425_v62 }
  0xe5   :  { %3340 = vmatprep.subr.bf16.mxu0 %v5020_v54  ;;  %3512 = vmatprep.subr.bf16.mxu1 %v5022_v29  ;;  %v390_v54 = vld [vmem:[#allocation5 + $0x848] sm:$0xff]  ;;  %v6048_v29 = vld [vmem:[#allocation2 + $0x30] sm:$0xff] }
  0xe6   :  { %v5085_v18 = vcombine.low %v390_v54, %v394_v26 }
  0xe8   :  { %3341 = vmatpush1.bf16.msra.mxu0 %v5019_v31  ;;  %3513 = vmatpush1.bf16.msra.mxu1 %v5021_v32  ;;  %v5075_v31 = vcombine.low %v381_v13, %v385_v14  ;;  %v5077_v32 = vcombine.low %v382_v16, %v386_v20  ;;  %v437_v13 = vld [vmem:[#allocation5 + $0x9c0] sm:$0xff]  ;;  %v438_v16 = vld [vmem:[#allocation5 + $0x9c8] sm:$0xff]  ;;  %v5123_v20 = vcombine.low %v429_v5, %v433_v6 }
  0xe9   :  { %3342 = vmatprep.subr.bf16.mxu0 %v5028_v33  ;;  %3514 = vmatprep.subr.bf16.mxu1 %v5030_v37  ;;  %v5084_v33 = vcombine.high %v389_v22, %v393_v23  ;;  %v5086_v37 = vcombine.high %v390_v54, %v394_v26  ;;  %v441_v14 = vld [vmem:[#allocation5 + $0x9e0] sm:$0xff]  ;;  %v446_v54 = vld [vmem:[#allocation5 + $0xa08] sm:$0xff] }
  0xea   :  { %v5132_v22 = vcombine.high %v437_v13, %v441_v14  ;;  %v450_v26 = vld [vmem:[#allocation5 + $0xa28] sm:$0xff] }
  0xec   :  { %3343 = vmatpush1.bf16.msra.mxu0 %v5027_v39  ;;  %3515 = vmatpush1.bf16.msra.mxu1 %v5029_v40  ;;  %v6056_v39 = vcombine.high %v6046_v27, %v6048_v29  ;;  %v5092_v40 = vcombine.high %v397_v34, %v401_v35  ;;  %v453_v34 = vld [vmem:[#allocation5 + $0xa40] sm:$0xff] }
  0xed   :  { %3344 = vmatprep.subr.bf16.mxu0 %v5036_v41  ;;  %3516 = vmatprep.subr.bf16.mxu1 %v5038_v45  ;;  %v405_v41 = vld [vmem:[#allocation5 + $0x8c0] sm:$0xff]  ;;  %v410_v45 = vld [vmem:[#allocation5 + $0x8e8] sm:$0xff] }
  0xee   :  { %v5102_v52 = vcombine.high %v406_v43, %v410_v45  ;;  %v5099_v56 = vcombine.low %v405_v41, %v409_v42  ;;  %v457_v35 = vld [vmem:[#allocation5 + $0xa60] sm:$0xff] }
  0xf0   :  { %3345 = vmatpush1.bf16.msra.mxu0 %v5035_v47  ;;  %3517 = vmatpush1.bf16.msra.mxu1 %v5037_v48  ;;  %v5093_v47 = vcombine.low %v398_v36, %v402_v38  ;;  %v5100_v48 = vcombine.high %v405_v41, %v409_v42  ;;  %v454_v36 = vld [vmem:[#allocation5 + $0xa48] sm:$0xff]  ;;  %v461_v41 = vld [vmem:[#allocation5 + $0xa80] sm:$0xff] }
  0xf1   :  { %3346 = vmatprep.subr.bf16.mxu0 %v5044_v49  ;;  %3518 = vmatprep.subr.bf16.mxu1 %v5046_v55  ;;  %v413_v49 = vld [vmem:[#allocation5 + $0x900] sm:$0xff]  ;;  %v418_v55 = vld [vmem:[#allocation5 + $0x928] sm:$0xff] }
  0xf2   :  { %v5107_v1 = vcombine.low %v413_v49, %v417_v50  ;;  %v465_v42 = vld [vmem:[#allocation5 + $0xaa0] sm:$0xff] }
  0xf4   :  { %3347 = vmatpush1.bf16.msra.mxu0 %v5043_v57  ;;  %3519 = vmatpush1.bf16.msra.mxu1 %v5045_v59  ;;  %v5101_v57 = vcombine.low %v406_v43, %v410_v45  ;;  %v5108_v59 = vcombine.high %v413_v49, %v417_v50  ;;  %v462_v43 = vld [vmem:[#allocation5 + $0xa88] sm:$0xff]  ;;  %v5147_v45 = vcombine.low %v453_v34, %v457_v35  ;;  %v469_v49 = vld [vmem:[#allocation5 + $0xac0] sm:$0xff] }
  0xf5   :  { %3348 = vmatprep.subr.bf16.mxu0 %v5052_v60  ;;  %3520 = vmatprep.subr.bf16.mxu1 %v5054_v0  ;;  %v5110_v60 = vcombine.high %v414_v51, %v418_v55  ;;  %v426_v0 = vld [vmem:[#allocation5 + $0x968] sm:$0xff]  ;;  %v473_v50 = vld [vmem:[#allocation5 + $0xae0] sm:$0xff] }
  0xf8   :  { %3349 = vmatpush1.bf16.msra.mxu0 %v5051_v2  ;;  %3521 = vmatpush1.bf16.msra.mxu1 %v5053_v3  ;;  %v5109_v2 = vcombine.low %v414_v51, %v418_v55  ;;  %v5116_v3 = vcombine.high %v421_v61, %v425_v62  ;;  %v470_v51 = vld [vmem:[#allocation5 + $0xac8] sm:$0xff]  ;;  %v5155_v55 = vcombine.low %v461_v41, %v465_v42  ;;  %v481_v61 = vld [vmem:[#allocation5 + $0xb20] sm:$0xff] }
  0xf9   :  { %3350 = vmatprep.subr.bf16.mxu0 %v5060_v4  ;;  %3522 = vmatprep.subr.bf16.mxu1 %v5062_v8  ;;  %v5118_v4 = vcombine.high %v422_v63, %v426_v0  ;;  %v434_v8 = vld [vmem:[#allocation5 + $0x9a8] sm:$0xff] }
  0xfa   :  { %v478_v62 = vld [vmem:[#allocation5 + $0xb08] sm:$0xff] }
  0xfc   :  { %3351 = vmatpush1.bf16.msra.mxu0 %v5059_v10  ;;  %3523 = vmatpush1.bf16.msra.mxu1 %v5061_v11  ;;  %v5117_v10 = vcombine.low %v422_v63, %v426_v0  ;;  %v5124_v11 = vcombine.high %v429_v5, %v433_v6  ;;  %v482_v63 = vld [vmem:[#allocation5 + $0xb28] sm:$0xff]  ;;  %v5163_v0 = vcombine.low %v469_v49, %v473_v50  ;;  %v489_v5 = vld [vmem:[#allocation5 + $0xb60] sm:$0xff] }
  0xfd   :  { %3352 = vmatprep.subr.bf16.mxu0 %v5068_v12  ;;  %3524 = vmatprep.subr.bf16.mxu1 %v5070_v19  ;;  %v5126_v12 = vcombine.high %v430_v7, %v434_v8  ;;  %v442_v19 = vld [vmem:[#allocation5 + $0x9e8] sm:$0xff] }
  0xfe   :  { %v5134_v23 = vcombine.high %v438_v16, %v442_v19  ;;  %v486_v6 = vld [vmem:[#allocation5 + $0xb48] sm:$0xff] }
 0x100   :  { %3353 = vmatpush1.bf16.msra.mxu0 %v5067_v21  ;;  %3525 = vmatpush1.bf16.msra.mxu1 %v5069_v24  ;;  %v5125_v21 = vcombine.low %v430_v7, %v434_v8  ;;  %v445_v24 = vld [vmem:[#allocation5 + $0xa00] sm:$0xff]  ;;  %v490_v7 = vld [vmem:[#allocation5 + $0xb68] sm:$0xff] }
 0x101   :  { %3365 = vmatprep.subr.bf16.mxu0 %v5076_v25  ;;  %3537 = vmatprep.subr.bf16.mxu1 %v5078_v28  ;;  %v449_v25 = vld [vmem:[#allocation5 + $0xa20] sm:$0xff]  ;;  %v5131_v28 = vcombine.low %v437_v13, %v441_v14  ;;  %v494_v14 = vld [vmem:[#allocation5 + $0xb88] sm:$0xff] }
 0x102   :  { %v5139_v38 = vcombine.low %v445_v24, %v449_v25  ;;  %v497_v13 = vld [vmem:[#allocation5 + $0xba0] sm:$0xff] }
 0x103   :  { %3355 = vmatmul.mubr.bf16.vlgmr.msra.gmra.mrb[0].mxu0 %v6052_v30  ;;  %3527 = vmatmul.mubr.bf16.vlgmr.msra.gmra.mrb[0].mxu1 %v6052_v30 }
 0x104   :  { %3366 = vmatpush1.bf16.msra.mxu0 %v5075_v31  ;;  %3538 = vmatpush1.bf16.msra.mxu1 %v5077_v32  ;;  %v5133_v31 = vcombine.low %v438_v16, %v442_v19  ;;  %v5140_v32 = vcombine.high %v445_v24, %v449_v25  ;;  %v498_v16 = vld [vmem:[#allocation5 + $0xba8] sm:$0xff]  ;;  %v505_v24 = vld [vmem:[#allocation5 + $0xbe0] sm:$0xff] }
 0x105   :  { %3367 = vmatprep.subr.bf16.mxu0 %v5084_v33  ;;  %3539 = vmatprep.subr.bf16.mxu1 %v5086_v37  ;;  %v5142_v33 = vcombine.high %v446_v54, %v450_v26  ;;  %v458_v37 = vld [vmem:[#allocation5 + $0xa68] sm:$0xff] }
 0x106   :  { %3397 = vmatprep.mubr.bf16.mxu0 %v6056_v39  ;;  %3569 = vmatprep.mubr.bf16.mxu1 %v6056_v39  ;;  %v502_v25 = vld [vmem:[#allocation5 + $0xbc8] sm:$0xff] }
 0x108   :  { %3368 = vmatpush1.bf16.msra.mxu0 %v5083_v17  ;;  %3540 = vmatpush1.bf16.msra.mxu1 %v5085_v18  ;;  %v5141_v17 = vcombine.low %v446_v54, %v450_v26  ;;  %v5148_v18 = vcombine.high %v453_v34, %v457_v35  ;;  %v506_v54 = vld [vmem:[#allocation5 + $0xbe8] sm:$0xff]  ;;  %v513_v34 = vld [vmem:[#allocation5 + $0xc20] sm:$0xff] }
 0x109   :  { %3369 = vmatprep.subr.bf16.mxu0 %v5092_v40  ;;  %3541 = vmatprep.subr.bf16.mxu1 %v5094_v44  ;;  %v5150_v40 = vcombine.high %v454_v36, %v458_v37  ;;  %v466_v44 = vld [vmem:[#allocation5 + $0xaa8] sm:$0xff] }
 0x10a   :  { %v510_v35 = vld [vmem:[#allocation5 + $0xc08] sm:$0xff] }
 0x10c   :  { %3370 = vmatpush1.bf16.msra.mxu0 %v5091_v46  ;;  %3542 = vmatpush1.bf16.msra.mxu1 %v5093_v47  ;;  %v5149_v46 = vcombine.low %v454_v36, %v458_v37  ;;  %v5156_v47 = vcombine.high %v461_v41, %v465_v42  ;;  %v514_v36 = vld [vmem:[#allocation5 + $0xc28] sm:$0xff]  ;;  %v521_v41 = vld [vmem:[#allocation5 + $0xc60] sm:$0xff] }
 0x10d   :  { %3371 = vmatprep.subr.bf16.mxu0 %v5100_v48  ;;  %3543 = vmatprep.subr.bf16.mxu1 %v5102_v52  ;;  %v5158_v48 = vcombine.high %v462_v43, %v466_v44  ;;  %v474_v52 = vld [vmem:[#allocation5 + $0xae8] sm:$0xff] }
 0x10e   :  { %v518_v42 = vld [vmem:[#allocation5 + $0xc48] sm:$0xff] }
 0x110   :  { %3372 = vmatpush1.bf16.msra.mxu0 %v5099_v56  ;;  %3544 = vmatpush1.bf16.msra.mxu1 %v5101_v57  ;;  %v5157_v56 = vcombine.low %v462_v43, %v466_v44  ;;  %v5164_v57 = vcombine.high %v469_v49, %v473_v50  ;;  %v6064_v43 = vcombine.low %v6046_v27, %v6048_v29  ;;  %v522_v44 = vld [vmem:[#allocation5 + $0xc68] sm:$0xff] }
 0x111   :  { %3373 = vmatprep.subr.bf16.mxu0 %v5108_v59  ;;  %3545 = vmatprep.subr.bf16.mxu1 %v5110_v60  ;;  %v5166_v59 = vcombine.high %v470_v51, %v474_v52  ;;  %v477_v60 = vld [vmem:[#allocation5 + $0xb00] sm:$0xff]  ;;  %v5214_v50 = vcombine.high %v518_v42, %v522_v44  ;;  %v526_v27 = vld [vmem:[#allocation5 + $0xc88] sm:$0xff] }
 0x112   :  { %v5171_v8 = vcombine.low %v477_v60, %v481_v61  ;;  %v530_v29 = vld [vmem:[#allocation5 + $0xca8] sm:$0xff] }
 0x114   :  { %3374 = vmatpush1.bf16.msra.mxu0 %v5107_v1  ;;  %3546 = vmatpush1.bf16.msra.mxu1 %v5109_v2  ;;  %v5165_v1 = vcombine.low %v470_v51, %v474_v52  ;;  %v5172_v2 = vcombine.high %v477_v60, %v481_v61  ;;  %v525_v51 = vld [vmem:[#allocation5 + $0xc80] sm:$0xff]  ;;  %v5222_v60 = vcombine.high %v526_v27, %v530_v29 }
 0x115   :  { %3375 = vmatprep.subr.bf16.mxu0 %v5116_v3  ;;  %3547 = vmatprep.subr.bf16.mxu1 %v5118_v4  ;;  %v5174_v3 = vcombine.high %v478_v62, %v482_v63  ;;  %v485_v4 = vld [vmem:[#allocation5 + $0xb40] sm:$0xff] }
 0x116   :  { %v5179_v19 = vcombine.low %v485_v4, %v489_v5  ;;  %v529_v52 = vld [vmem:[#allocation5 + $0xca0] sm:$0xff] }
 0x117   :  { %v533_v61 = vld [vmem:[#allocation5 + $0xcc0] sm:$0xff] }
 0x118   :  { %3376 = vmatpush1.bf16.msra.mxu0 %v5115_v9  ;;  %3548 = vmatpush1.bf16.msra.mxu1 %v5117_v10  ;;  %v5173_v9 = vcombine.low %v478_v62, %v482_v63  ;;  %v5180_v10 = vcombine.high %v485_v4, %v489_v5  ;;  %v537_v62 = vld [vmem:[#allocation5 + $0xce0] sm:$0xff]  ;;  %v534_v63 = vld [vmem:[#allocation5 + $0xcc8] sm:$0xff] }
 0x119   :  { %3377 = vmatprep.subr.bf16.mxu0 %v5124_v11  ;;  %3549 = vmatprep.subr.bf16.mxu1 %v5126_v12  ;;  %v5182_v11 = vcombine.high %v486_v6, %v490_v7  ;;  %v493_v12 = vld [vmem:[#allocation5 + $0xb80] sm:$0xff] }
 0x11a   :  { %v5187_v26 = vcombine.low %v493_v12, %v497_v13  ;;  %v541_v5 = vld [vmem:[#allocation5 + $0xd00] sm:$0xff] }
 0x11c   :  { %3378 = vmatpush1.bf16.msra.mxu0 %v5123_v20  ;;  %3550 = vmatpush1.bf16.msra.mxu1 %v5125_v21  ;;  %v5181_v20 = vcombine.low %v486_v6, %v490_v7  ;;  %v5188_v21 = vcombine.high %v493_v12, %v497_v13  ;;  %v545_v6 = vld [vmem:[#allocation5 + $0xd20] sm:$0xff]  ;;  %v542_v7 = vld [vmem:[#allocation5 + $0xd08] sm:$0xff] }
 0x11d   :  { %3379 = vmatprep.subr.bf16.mxu0 %v5132_v22  ;;  %3551 = vmatprep.subr.bf16.mxu1 %v5134_v23  ;;  %v5190_v22 = vcombine.high %v494_v14, %v498_v16  ;;  %v501_v23 = vld [vmem:[#allocation5 + $0xbc0] sm:$0xff] }
 0x11e   :  { %v5195_v37 = vcombine.low %v501_v23, %v505_v24  ;;  %v549_v13 = vld [vmem:[#allocation5 + $0xd40] sm:$0xff] }
 0x120   :  { %3380 = vmatpush1.bf16.msra.mxu0 %v5131_v28  ;;  %3552 = vmatpush1.bf16.msra.mxu1 %v5133_v31  ;;  %v5189_v28 = vcombine.low %v494_v14, %v498_v16  ;;  %v5196_v31 = vcombine.high %v501_v23, %v505_v24  ;;  %v553_v14 = vld [vmem:[#allocation5 + $0xd60] sm:$0xff]  ;;  %v550_v16 = vld [vmem:[#allocation5 + $0xd48] sm:$0xff] }
 0x121   :  { %3381 = vmatprep.subr.bf16.mxu0 %v5140_v32  ;;  %3553 = vmatprep.subr.bf16.mxu1 %v5142_v33  ;;  %v5198_v32 = vcombine.high %v502_v25, %v506_v54  ;;  %v509_v33 = vld [vmem:[#allocation5 + $0xc00] sm:$0xff] }
 0x122   :  { %v557_v24 = vld [vmem:[#allocation5 + $0xd80] sm:$0xff] }
 0x124   :  { %3382 = vmatpush1.bf16.msra.mxu0 %v5139_v38  ;;  %3554 = vmatpush1.bf16.msra.mxu1 %v5141_v17  ;;  %v5197_v38 = vcombine.low %v502_v25, %v506_v54  ;;  %v5204_v17 = vcombine.high %v509_v33, %v513_v34  ;;  %v561_v25 = vld [vmem:[#allocation5 + $0xda0] sm:$0xff]  ;;  %v558_v54 = vld [vmem:[#allocation5 + $0xd88] sm:$0xff] }
 0x125   :  { %3383 = vmatprep.subr.bf16.mxu0 %v5148_v18  ;;  %3555 = vmatprep.subr.bf16.mxu1 %v5150_v40  ;;  %v5206_v18 = vcombine.high %v510_v35, %v514_v36  ;;  %v517_v40 = vld [vmem:[#allocation5 + $0xc40] sm:$0xff] }
 0x126   :  { %v5212_v49 = vcombine.high %v517_v40, %v521_v41 }
 0x128   :  { %3384 = vmatpush1.bf16.msra.mxu0 %v5147_v45  ;;  %3556 = vmatpush1.bf16.msra.mxu1 %v5149_v46  ;;  %v6066_v45 = vld [vmem:[#allocation2 + $0x18] sm:$0xff] }
 0x129   :  { %3385 = vmatprep.subr.bf16.mxu0 %v5156_v47  ;;  %3557 = vmatprep.subr.bf16.mxu1 %v5158_v48  ;;  %v6068_v46 = vld [vmem:[#allocation2 + $0x38] sm:$0xff]  ;;  %v5203_v47 = vcombine.low %v509_v33, %v513_v34  ;;  %v5205_v48 = vcombine.low %v510_v35, %v514_v36  ;;  %v565_v34 = vld [vmem:[#allocation5 + $0xdc0] sm:$0xff]  ;;  %v566_v36 = vld [vmem:[#allocation5 + $0xdc8] sm:$0xff] }
 0x12a   :  { %v569_v35 = vld [vmem:[#allocation5 + $0xde0] sm:$0xff] }
 0x12c   :  { %3386 = vmatpush1.bf16.msra.mxu0 %v5155_v55  ;;  %3558 = vmatpush1.bf16.msra.mxu1 %v5157_v56  ;;  %v6072_v55 = vcombine.high %v6066_v45, %v6068_v46  ;;  %v5211_v56 = vcombine.low %v517_v40, %v521_v41  ;;  %v573_v41 = vld [vmem:[#allocation5 + $0xe00] sm:$0xff] }
 0x12d   :  { %3387 = vmatprep.subr.bf16.mxu0 %v5164_v57  ;;  %3559 = vmatprep.subr.bf16.mxu1 %v5166_v59  ;;  %v5213_v57 = vcombine.low %v518_v42, %v522_v44  ;;  %v5220_v59 = vcombine.high %v525_v51, %v529_v52  ;;  %v577_v42 = vld [vmem:[#allocation5 + $0xe20] sm:$0xff]  ;;  %v574_v44 = vld [vmem:[#allocation5 + $0xe08] sm:$0xff] }
 0x130   :  { %3388 = vmatpush1.bf16.msra.mxu0 %v5163_v0  ;;  %3560 = vmatpush1.bf16.msra.mxu1 %v5165_v1  ;;  %v538_v0 = vld [vmem:[#allocation5 + $0xce8] sm:$0xff]  ;;  %v5219_v1 = vcombine.low %v525_v51, %v529_v52  ;;  %v581_v52 = vld [vmem:[#allocation5 + $0xe40] sm:$0xff] }
 0x131   :  { %3389 = vmatprep.subr.bf16.mxu0 %v5172_v2  ;;  %3561 = vmatprep.subr.bf16.mxu1 %v5174_v3  ;;  %v5221_v2 = vcombine.low %v526_v27, %v530_v29  ;;  %v5228_v3 = vcombine.high %v533_v61, %v537_v62  ;;  %v5230_v4 = vcombine.high %v534_v63, %v538_v0  ;;  %v585_v27 = vld [vmem:[#allocation5 + $0xe60] sm:$0xff]  ;;  %v582_v29 = vld [vmem:[#allocation5 + $0xe48] sm:$0xff] }
 0x134   :  { %3390 = vmatpush1.bf16.msra.mxu0 %v5171_v8  ;;  %3562 = vmatpush1.bf16.msra.mxu1 %v5173_v9  ;;  %v546_v8 = vld [vmem:[#allocation5 + $0xd28] sm:$0xff]  ;;  %v5227_v9 = vcombine.low %v533_v61, %v537_v62  ;;  %v589_v62 = vld [vmem:[#allocation5 + $0xe80] sm:$0xff] }
 0x135   :  { %3391 = vmatprep.subr.bf16.mxu0 %v5180_v10  ;;  %3563 = vmatprep.subr.bf16.mxu1 %v5182_v11  ;;  %v5229_v10 = vcombine.low %v534_v63, %v538_v0  ;;  %v5236_v11 = vcombine.high %v541_v5, %v545_v6  ;;  %v5238_v12 = vcombine.high %v542_v7, %v546_v8  ;;  %v593_v63 = vld [vmem:[#allocation5 + $0xea0] sm:$0xff]  ;;  %v590_v0 = vld [vmem:[#allocation5 + $0xe88] sm:$0xff] }
 0x138   :  { %3392 = vmatpush1.bf16.msra.mxu0 %v5179_v19  ;;  %3564 = vmatpush1.bf16.msra.mxu1 %v5181_v20  ;;  %v554_v19 = vld [vmem:[#allocation5 + $0xd68] sm:$0xff]  ;;  %v5235_v20 = vcombine.low %v541_v5, %v545_v6  ;;  %v597_v6 = vld [vmem:[#allocation5 + $0xec0] sm:$0xff] }
 0x139   :  { %3393 = vmatprep.subr.bf16.mxu0 %v5188_v21  ;;  %3565 = vmatprep.subr.bf16.mxu1 %v5190_v22  ;;  %v5237_v21 = vcombine.low %v542_v7, %v546_v8  ;;  %v5244_v22 = vcombine.high %v549_v13, %v553_v14  ;;  %v5246_v23 = vcombine.high %v550_v16, %v554_v19  ;;  %v601_v7 = vld [vmem:[#allocation5 + $0xee0] sm:$0xff]  ;;  %v598_v8 = vld [vmem:[#allocation5 + $0xec8] sm:$0xff] }
 0x13c   :  { %3394 = vmatpush1.bf16.msra.mxu0 %v5187_v26  ;;  %3566 = vmatpush1.bf16.msra.mxu1 %v5189_v28  ;;  %v562_v26 = vld [vmem:[#allocation5 + $0xda8] sm:$0xff]  ;;  %v5243_v28 = vcombine.low %v549_v13, %v553_v14  ;;  %v605_v14 = vld [vmem:[#allocation5 + $0xf00] sm:$0xff] }
 0x13d   :  { %3395 = vmatprep.subr.bf16.mxu0 %v5196_v31  ;;  %3567 = vmatprep.subr.bf16.mxu1 %v5198_v32  ;;  %v5245_v31 = vcombine.low %v550_v16, %v554_v19  ;;  %v5252_v32 = vcombine.high %v557_v24, %v561_v25  ;;  %v5254_v33 = vcombine.high %v558_v54, %v562_v26  ;;  %v609_v16 = vld [vmem:[#allocation5 + $0xf20] sm:$0xff]  ;;  %v606_v19 = vld [vmem:[#allocation5 + $0xf08] sm:$0xff] }
 0x140   :  { %3396 = vmatpush1.bf16.msra.mxu0 %v5195_v37  ;;  %3568 = vmatpush1.bf16.msra.mxu1 %v5197_v38  ;;  %v570_v37 = vld [vmem:[#allocation5 + $0xde8] sm:$0xff]  ;;  %v5251_v38 = vcombine.low %v557_v24, %v561_v25  ;;  %v613_v25 = vld [vmem:[#allocation5 + $0xf40] sm:$0xff] }
 0x141   :  { %3408 = vmatprep.subr.bf16.mxu0 %v5204_v17  ;;  %3580 = vmatprep.subr.bf16.mxu1 %v5206_v18  ;;  %v5253_v17 = vcombine.low %v558_v54, %v562_v26  ;;  %v5260_v18 = vcombine.high %v565_v34, %v569_v35  ;;  %v5262_v40 = vcombine.high %v566_v36, %v570_v37  ;;  %v617_v54 = vld [vmem:[#allocation5 + $0xf60] sm:$0xff]  ;;  %v614_v26 = vld [vmem:[#allocation5 + $0xf48] sm:$0xff] }
 0x143   :  { %3398 = vmatmul.mubr.bf16.vlgmr.msra.gmra.mrb[0].mxu0 %v6064_v43  ;;  %3570 = vmatmul.mubr.bf16.vlgmr.msra.gmra.mrb[0].mxu1 %v6064_v43 }
 0x144   :  { %3409 = vmatpush1.bf16.msra.mxu0 %v5203_v47  ;;  %3581 = vmatpush1.bf16.msra.mxu1 %v5205_v48  ;;  %v578_v47 = vld [vmem:[#allocation5 + $0xe28] sm:$0xff]  ;;  %v5259_v48 = vcombine.low %v565_v34, %v569_v35  ;;  %v621_v35 = vld [vmem:[#allocation5 + $0xf80] sm:$0xff] }
 0x145   :  { %3410 = vmatprep.subr.bf16.mxu0 %v5212_v49  ;;  %3582 = vmatprep.subr.bf16.mxu1 %v5214_v50  ;;  %v5261_v49 = vcombine.low %v566_v36, %v570_v37  ;;  %v5268_v50 = vcombine.high %v573_v41, %v577_v42  ;;  %v5270_v51 = vcombine.high %v574_v44, %v578_v47  ;;  %v625_v36 = vld [vmem:[#allocation5 + $0xfa0] sm:$0xff]  ;;  %v622_v37 = vld [vmem:[#allocation5 + $0xf88] sm:$0xff] }
 0x146   :  { %3440 = vmatprep.mubr.bf16.mxu0 %v6072_v55  ;;  %3612 = vmatprep.mubr.bf16.mxu1 %v6072_v55 }
 0x148   :  { %3411 = vmatpush1.bf16.msra.mxu0 %v5211_v56  ;;  %3583 = vmatpush1.bf16.msra.mxu1 %v5213_v57  ;;  %v586_v56 = vld [vmem:[#allocation5 + $0xe68] sm:$0xff]  ;;  %v5267_v57 = vcombine.low %v573_v41, %v577_v42  ;;  %v629_v42 = vld [vmem:[#allocation5 + $0xfc0] sm:$0xff] }
 0x149   :  { %3412 = vmatprep.subr.bf16.mxu0 %v5220_v59  ;;  %3584 = vmatprep.subr.bf16.mxu1 %v5222_v60  ;;  %v5269_v59 = vcombine.low %v574_v44, %v578_v47  ;;  %v5276_v60 = vcombine.high %v581_v52, %v585_v27  ;;  %v5278_v61 = vcombine.high %v582_v29, %v586_v56  ;;  %v633_v44 = vld [vmem:[#allocation5 + $0xfe0] sm:$0xff]  ;;  %v630_v47 = vld [vmem:[#allocation5 + $0xfc8] sm:$0xff] }
 0x14c   :  { %3413 = vmatpush1.bf16.msra.mxu0 %v5219_v1  ;;  %3585 = vmatpush1.bf16.msra.mxu1 %v5221_v2  ;;  %v594_v1 = vld [vmem:[#allocation5 + $0xea8] sm:$0xff]  ;;  %v5275_v2 = vcombine.low %v581_v52, %v585_v27  ;;  %v127_v27 = vld [vmem:[#allocation5 + $0x10] sm:$0xff] }
 0x14d   :  { %3414 = vmatprep.subr.bf16.mxu0 %v5228_v3  ;;  %3586 = vmatprep.subr.bf16.mxu1 %v5230_v4  ;;  %v5277_v3 = vcombine.low %v582_v29, %v586_v56  ;;  %v5284_v4 = vcombine.high %v589_v62, %v593_v63  ;;  %v5286_v5 = vcombine.high %v590_v0, %v594_v1  ;;  %v131_v29 = vld [vmem:[#allocation5 + $0x30] sm:$0xff]  ;;  %v128_v56 = vld [vmem:[#allocation5 + $0x18] sm:$0xff] }
 0x150   :  { %3415 = vmatpush1.bf16.msra.mxu0 %v5227_v9  ;;  %3587 = vmatpush1.bf16.msra.mxu1 %v5229_v10  ;;  %v602_v9 = vld [vmem:[#allocation5 + $0xee8] sm:$0xff]  ;;  %v5283_v10 = vcombine.low %v589_v62, %v593_v63  ;;  %v135_v63 = vld [vmem:[#allocation5 + $0x50] sm:$0xff] }
 0x151   :  { %3416 = vmatprep.subr.bf16.mxu0 %v5236_v11  ;;  %3588 = vmatprep.subr.bf16.mxu1 %v5238_v12  ;;  %v5285_v11 = vcombine.low %v590_v0, %v594_v1  ;;  %v5292_v12 = vcombine.high %v597_v6, %v601_v7  ;;  %v5294_v13 = vcombine.high %v598_v8, %v602_v9  ;;  %v139_v0 = vld [vmem:[#allocation5 + $0x70] sm:$0xff] }
 0x152   :  { %v6080_v1 = vcombine.low %v6066_v45, %v6068_v46  ;;  %v4831_v45 = vcombine.low %v135_v63, %v139_v0 }
 0x154   :  { %3417 = vmatpush1.bf16.msra.mxu0 %v5235_v20  ;;  %3589 = vmatpush1.bf16.msra.mxu1 %v5237_v21  ;;  %v610_v20 = vld [vmem:[#allocation5 + $0xf28] sm:$0xff]  ;;  %v5291_v21 = vcombine.low %v597_v6, %v601_v7  ;;  %v4832_v6 = vcombine.high %v135_v63, %v139_v0  ;;  %v195_v63 = vld [vmem:[#allocation5 + $0x230] sm:$0xff]  ;;  %v192_v0 = vld [vmem:[#allocation5 + $0x218] sm:$0xff] }
 0x155   :  { %3418 = vmatprep.subr.bf16.mxu0 %v5244_v22  ;;  %3590 = vmatprep.subr.bf16.mxu1 %v5246_v23  ;;  %v5293_v22 = vcombine.low %v598_v8, %v602_v9  ;;  %v5300_v23 = vcombine.high %v605_v14, %v609_v16  ;;  %v5302_v24 = vcombine.high %v606_v19, %v610_v20  ;;  %v143_v8 = vld [vmem:[#allocation5 + $0x90] sm:$0xff] }
 0x156   :  { %v147_v9 = vld [vmem:[#allocation5 + $0xb0] sm:$0xff] }
 0x158   :  { %3419 = vmatpush1.bf16.msra.mxu0 %v5243_v28  ;;  %3591 = vmatpush1.bf16.msra.mxu1 %v5245_v31  ;;  %v618_v28 = vld [vmem:[#allocation5 + $0xf68] sm:$0xff]  ;;  %v5299_v31 = vcombine.low %v605_v14, %v609_v16  ;;  %v151_v14 = vld [vmem:[#allocation5 + $0xd0] sm:$0xff] }
 0x159   :  { %3420 = vmatprep.subr.bf16.mxu0 %v5252_v32  ;;  %3592 = vmatprep.subr.bf16.mxu1 %v5254_v33  ;;  %v5301_v32 = vcombine.low %v606_v19, %v610_v20  ;;  %v5308_v33 = vcombine.high %v613_v25, %v617_v54  ;;  %v5310_v34 = vcombine.high %v614_v26, %v618_v28  ;;  %v155_v16 = vld [vmem:[#allocation5 + $0xf0] sm:$0xff]  ;;  %v152_v19 = vld [vmem:[#allocation5 + $0xd8] sm:$0xff] }
 0x15a   :  { %v156_v20 = vld [vmem:[#allocation5 + $0xf8] sm:$0xff] }
 0x15c   :  { %3421 = vmatpush1.bf16.msra.mxu0 %v5251_v38  ;;  %3593 = vmatpush1.bf16.msra.mxu1 %v5253_v17  ;;  %v626_v38 = vld [vmem:[#allocation5 + $0xfa8] sm:$0xff]  ;;  %v5307_v17 = vcombine.low %v613_v25, %v617_v54  ;;  %v159_v25 = vld [vmem:[#allocation5 + $0x110] sm:$0xff] }
 0x15d   :  { %3422 = vmatprep.subr.bf16.mxu0 %v5260_v18  ;;  %3594 = vmatprep.subr.bf16.mxu1 %v5262_v40  ;;  %v5309_v18 = vcombine.low %v614_v26, %v618_v28  ;;  %v5316_v40 = vcombine.high %v621_v35, %v625_v36  ;;  %v5318_v41 = vcombine.high %v622_v37, %v626_v38  ;;  %v163_v54 = vld [vmem:[#allocation5 + $0x130] sm:$0xff]  ;;  %v160_v26 = vld [vmem:[#allocation5 + $0x118] sm:$0xff] }
 0x15e   :  { %v164_v28 = vld [vmem:[#allocation5 + $0x138] sm:$0xff] }
 0x160   :  { %3423 = vmatpush1.bf16.msra.mxu0 %v5259_v48  ;;  %3595 = vmatpush1.bf16.msra.mxu1 %v5261_v49  ;;  %v634_v48 = vld [vmem:[#allocation5 + $0xfe8] sm:$0xff]  ;;  %v5315_v49 = vcombine.low %v621_v35, %v625_v36  ;;  %v171_v35 = vld [vmem:[#allocation5 + $0x170] sm:$0xff]  ;;  %v168_v36 = vld [vmem:[#allocation5 + $0x158] sm:$0xff] }
 0x161   :  { %3424 = vmatprep.subr.bf16.mxu0 %v5268_v50  ;;  %3596 = vmatprep.subr.bf16.mxu1 %v5270_v51  ;;  %v5317_v50 = vcombine.low %v622_v37, %v626_v38  ;;  %v5324_v51 = vcombine.high %v629_v42, %v633_v44  ;;  %v5326_v52 = vcombine.high %v630_v47, %v634_v48  ;;  %v172_v37 = vld [vmem:[#allocation5 + $0x178] sm:$0xff] }
 0x162   :  { %v4855_v38 = vcombine.low %v159_v25, %v163_v54 }
 0x164   :  { %3425 = vmatpush1.bf16.msra.mxu0 %v5267_v57  ;;  %3597 = vmatpush1.bf16.msra.mxu1 %v5269_v59  ;;  %v132_v57 = vld [vmem:[#allocation5 + $0x38] sm:$0xff]  ;;  %v5323_v59 = vcombine.low %v629_v42, %v633_v44  ;;  %v179_v42 = vld [vmem:[#allocation5 + $0x1b0] sm:$0xff] }
 0x165   :  { %3426 = vmatprep.subr.bf16.mxu0 %v5276_v60  ;;  %3598 = vmatprep.subr.bf16.mxu1 %v5278_v61  ;;  %v5325_v60 = vcombine.low %v630_v47, %v634_v48  ;;  %v4824_v61 = vcombine.high %v127_v27, %v131_v29  ;;  %v4826_v62 = vcombine.high %v128_v56, %v132_v57  ;;  %v176_v44 = vld [vmem:[#allocation5 + $0x198] sm:$0xff] }
 0x166   :  { %v180_v47 = vld [vmem:[#allocation5 + $0x1b8] sm:$0xff] }
 0x168   :  { %3427 = vmatpush1.bf16.msra.mxu0 %v5275_v2  ;;  %3599 = vmatpush1.bf16.msra.mxu1 %v5277_v3  ;;  %v136_v2 = vld [vmem:[#allocation5 + $0x58] sm:$0xff] }
 0x169   :  { %3428 = vmatprep.subr.bf16.mxu0 %v5284_v4  ;;  %3600 = vmatprep.subr.bf16.mxu1 %v5286_v5  ;;  %v140_v3 = vld [vmem:[#allocation5 + $0x78] sm:$0xff]  ;;  %v4823_v4 = vcombine.low %v127_v27, %v131_v29  ;;  %v4825_v5 = vcombine.low %v128_v56, %v132_v57  ;;  %v187_v27 = vld [vmem:[#allocation5 + $0x1f0] sm:$0xff] }
 0x16a   :  { %v4834_v7 = vcombine.high %v136_v2, %v140_v3  ;;  %v4833_v46 = vcombine.low %v136_v2, %v140_v3  ;;  %v184_v29 = vld [vmem:[#allocation5 + $0x1d8] sm:$0xff] }
 0x16b   :  { %v188_v56 = vld [vmem:[#allocation5 + $0x1f8] sm:$0xff] }
 0x16c   :  { %3429 = vmatpush1.bf16.msra.mxu0 %v5283_v10  ;;  %3601 = vmatpush1.bf16.msra.mxu1 %v5285_v11  ;;  %v144_v10 = vld [vmem:[#allocation5 + $0x98] sm:$0xff] }
 0x16d   :  { %3430 = vmatprep.subr.bf16.mxu0 %v5292_v12  ;;  %3602 = vmatprep.subr.bf16.mxu1 %v5294_v13  ;;  %v148_v11 = vld [vmem:[#allocation5 + $0xb8] sm:$0xff]  ;;  %v4840_v12 = vcombine.high %v143_v8, %v147_v9 }
 0x16e   :  { %v4842_v13 = vcombine.high %v144_v10, %v148_v11  ;;  %v196_v2 = vld [vmem:[#allocation5 + $0x238] sm:$0xff] }
 0x170   :  { %3431 = vmatpush1.bf16.msra.mxu0 %v5291_v21  ;;  %3603 = vmatpush1.bf16.msra.mxu1 %v5293_v22  ;;  %v4839_v21 = vcombine.low %v143_v8, %v147_v9  ;;  %v4841_v22 = vcombine.low %v144_v10, %v148_v11  ;;  %v203_v8 = vld [vmem:[#allocation5 + $0x270] sm:$0xff]  ;;  %v200_v9 = vld [vmem:[#allocation5 + $0x258] sm:$0xff] }
 0x171   :  { %3432 = vmatprep.subr.bf16.mxu0 %v5300_v23  ;;  %3604 = vmatprep.subr.bf16.mxu1 %v5302_v24  ;;  %v4848_v23 = vcombine.high %v151_v14, %v155_v16  ;;  %v4850_v24 = vcombine.high %v152_v19, %v156_v20  ;;  %v204_v10 = vld [vmem:[#allocation5 + $0x278] sm:$0xff] }
 0x174   :  { %3433 = vmatpush1.bf16.msra.mxu0 %v5299_v31  ;;  %3605 = vmatpush1.bf16.msra.mxu1 %v5301_v32  ;;  %v4847_v31 = vcombine.low %v151_v14, %v155_v16  ;;  %v4849_v32 = vcombine.low %v152_v19, %v156_v20  ;;  %v211_v14 = vld [vmem:[#allocation5 + $0x2b0] sm:$0xff]  ;;  %v208_v16 = vld [vmem:[#allocation5 + $0x298] sm:$0xff] }
 0x175   :  { %3434 = vmatprep.subr.bf16.mxu0 %v5308_v33  ;;  %3606 = vmatprep.subr.bf16.mxu1 %v5310_v34  ;;  %v4856_v33 = vcombine.high %v159_v25, %v163_v54  ;;  %v167_v34 = vld [vmem:[#allocation5 + $0x150] sm:$0xff]  ;;  %v212_v19 = vld [vmem:[#allocation5 + $0x2b8] sm:$0xff] }
 0x176   :  { %v4863_v48 = vcombine.low %v167_v34, %v171_v35  ;;  %v219_v25 = vld [vmem:[#allocation5 + $0x2f0] sm:$0xff]  ;;  %v216_v54 = vld [vmem:[#allocation5 + $0x2d8] sm:$0xff] }
 0x178   :  { %3435 = vmatpush1.bf16.msra.mxu0 %v5307_v17  ;;  %3607 = vmatpush1.bf16.msra.mxu1 %v5309_v18  ;;  %v4857_v17 = vcombine.low %v160_v26, %v164_v28  ;;  %v4864_v18 = vcombine.high %v167_v34, %v171_v35  ;;  %v227_v34 = vld [vmem:[#allocation5 + $0x330] sm:$0xff]  ;;  %v224_v35 = vld [vmem:[#allocation5 + $0x318] sm:$0xff] }
 0x179   :  { %3436 = vmatprep.subr.bf16.mxu0 %v5316_v40  ;;  %3608 = vmatprep.subr.bf16.mxu1 %v5318_v41  ;;  %v4866_v40 = vcombine.high %v168_v36, %v172_v37  ;;  %v175_v41 = vld [vmem:[#allocation5 + $0x190] sm:$0xff] }
 0x17a   :  { %v4871_v57 = vcombine.low %v175_v41, %v179_v42 }
 0x17c   :  { %3437 = vmatpush1.bf16.msra.mxu0 %v5315_v49  ;;  %3609 = vmatpush1.bf16.msra.mxu1 %v5317_v50  ;;  %v4865_v49 = vcombine.low %v168_v36, %v172_v37  ;;  %v4872_v50 = vcombine.high %v175_v41, %v179_v42  ;;  %v228_v36 = vld [vmem:[#allocation5 + $0x338] sm:$0xff]  ;;  %v235_v41 = vld [vmem:[#allocation5 + $0x370] sm:$0xff] }
 0x17d   :  { %3438 = vmatprep.subr.bf16.mxu0 %v5324_v51  ;;  %3610 = vmatprep.subr.bf16.mxu1 %v5326_v52  ;;  %v4874_v51 = vcombine.high %v176_v44, %v180_v47  ;;  %v183_v52 = vld [vmem:[#allocation5 + $0x1d0] sm:$0xff]  ;;  %v232_v42 = vld [vmem:[#allocation5 + $0x358] sm:$0xff] }
 0x17e   :  { %v4879_v3 = vcombine.low %v183_v52, %v187_v27 }
 0x180   :  { %3439 = vmatpush1.bf16.msra.mxu0 %v5323_v59  ;;  %3611 = vmatpush1.bf16.msra.mxu1 %v5325_v60  ;;  %v4873_v59 = vcombine.low %v176_v44, %v180_v47  ;;  %v4880_v60 = vcombine.high %v183_v52, %v187_v27  ;;  %v236_v44 = vld [vmem:[#allocation5 + $0x378] sm:$0xff]  ;;  %v243_v52 = vld [vmem:[#allocation5 + $0x3b0] sm:$0xff] }
 0x181   :  { %3623 = vmatprep.subr.bf16.mxu0 %v4824_v61  ;;  %3795 = vmatprep.subr.bf16.mxu1 %v4826_v62  ;;  %v4882_v61 = vcombine.high %v184_v29, %v188_v56  ;;  %v191_v62 = vld [vmem:[#allocation5 + $0x210] sm:$0xff]  ;;  %v240_v27 = vld [vmem:[#allocation5 + $0x398] sm:$0xff] }
 0x182   :  { %v4887_v11 = vcombine.low %v191_v62, %v195_v63 }
 0x183   :  { %3441 = vmatmul.mubr.bf16.vlgmr.msra.gmra.mrb[0].mxu0 %v6080_v1  ;;  %3613 = vmatmul.mubr.bf16.vlgmr.msra.gmra.mrb[0].mxu1 %v6080_v1 }
 0x184   :  { %3624 = vmatpush1.bf16.msra.mxu0 %v4823_v4  ;;  %3796 = vmatpush1.bf16.msra.mxu1 %v4825_v5  ;;  %v4881_v4 = vcombine.low %v184_v29, %v188_v56  ;;  %v4888_v5 = vcombine.high %v191_v62, %v195_v63  ;;  %v244_v29 = vld [vmem:[#allocation5 + $0x3b8] sm:$0xff]  ;;  %v251_v62 = vld [vmem:[#allocation5 + $0x3f0] sm:$0xff] }
 0x185   :  { %3625 = vmatprep.subr.bf16.mxu0 %v4832_v6  ;;  %3797 = vmatprep.subr.bf16.mxu1 %v4834_v7  ;;  %v4890_v6 = vcombine.high %v192_v0, %v196_v2  ;;  %v199_v7 = vld [vmem:[#allocation5 + $0x250] sm:$0xff]  ;;  %v248_v63 = vld [vmem:[#allocation5 + $0x3d8] sm:$0xff] }
 0x186   :  { %3655 = vmatprep.mubr.bf16.mxu0 %v6026_v58  ;;  %3827 = vmatprep.mubr.bf16.mxu1 %v6026_v58  ;;  %v4858_v58 = vcombine.high %v160_v26, %v164_v28  ;;  %v4895_v20 = vcombine.low %v199_v7, %v203_v8  ;;  %v220_v26 = vld [vmem:[#allocation5 + $0x2f8] sm:$0xff] }
 0x188   :  { %3626 = vmatpush1.bf16.msra.mxu0 %v4831_v45  ;;  %3798 = vmatpush1.bf16.msra.mxu1 %v4833_v46  ;;  %v4889_v45 = vcombine.low %v192_v0, %v196_v2  ;;  %v4896_v46 = vcombine.high %v199_v7, %v203_v8  ;;  %v252_v0 = vld [vmem:[#allocation5 + $0x3f8] sm:$0xff]  ;;  %v259_v7 = vld [vmem:[#allocation5 + $0x430] sm:$0xff] }
 0x189   :  { %3627 = vmatprep.subr.bf16.mxu0 %v4840_v12  ;;  %3799 = vmatprep.subr.bf16.mxu1 %v4842_v13  ;;  %v4898_v12 = vcombine.high %v200_v9, %v204_v10  ;;  %v207_v13 = vld [vmem:[#allocation5 + $0x290] sm:$0xff]  ;;  %v256_v8 = vld [vmem:[#allocation5 + $0x418] sm:$0xff] }
 0x18a   :  { %v4903_v28 = vcombine.low %v207_v13, %v211_v14 }
 0x18c   :  { %3628 = vmatpush1.bf16.msra.mxu0 %v4839_v21  ;;  %3800 = vmatpush1.bf16.msra.mxu1 %v4841_v22  ;;  %v4897_v21 = vcombine.low %v200_v9, %v204_v10  ;;  %v4904_v22 = vcombine.high %v207_v13, %v211_v14  ;;  %v260_v9 = vld [vmem:[#allocation5 + $0x438] sm:$0xff]  ;;  %v267_v13 = vld [vmem:[#allocation5 + $0x470] sm:$0xff] }
 0x18d   :  { %3629 = vmatprep.subr.bf16.mxu0 %v4848_v23  ;;  %3801 = vmatprep.subr.bf16.mxu1 %v4850_v24  ;;  %v4906_v23 = vcombine.high %v208_v16, %v212_v19  ;;  %v215_v24 = vld [vmem:[#allocation5 + $0x2d0] sm:$0xff]  ;;  %v264_v14 = vld [vmem:[#allocation5 + $0x458] sm:$0xff] }
 0x18e   :  { %v4911_v37 = vcombine.low %v215_v24, %v219_v25 }
 0x190   :  { %3630 = vmatpush1.bf16.msra.mxu0 %v4847_v31  ;;  %3802 = vmatpush1.bf16.msra.mxu1 %v4849_v32  ;;  %v4905_v31 = vcombine.low %v208_v16, %v212_v19  ;;  %v4912_v32 = vcombine.high %v215_v24, %v219_v25  ;;  %v268_v16 = vld [vmem:[#allocation5 + $0x478] sm:$0xff]  ;;  %v275_v24 = vld [vmem:[#allocation5 + $0x4b0] sm:$0xff] }
 0x191   :  { %3631 = vmatprep.subr.bf16.mxu0 %v4856_v33  ;;  %3803 = vmatprep.subr.bf16.mxu1 %v4858_v58  ;;  %v4914_v33 = vcombine.high %v216_v54, %v220_v26  ;;  %v223_v58 = vld [vmem:[#allocation5 + $0x310] sm:$0xff]  ;;  %v272_v25 = vld [vmem:[#allocation5 + $0x498] sm:$0xff] }
 0x192   :  { %v4919_v47 = vcombine.low %v223_v58, %v227_v34 }
 0x194   :  { %3632 = vmatpush1.bf16.msra.mxu0 %v4855_v38  ;;  %3804 = vmatpush1.bf16.msra.mxu1 %v4857_v17  ;;  %v4913_v38 = vcombine.low %v216_v54, %v220_v26  ;;  %v4920_v17 = vcombine.high %v223_v58, %v227_v34  ;;  %v276_v54 = vld [vmem:[#allocation5 + $0x4b8] sm:$0xff]  ;;  %v283_v58 = vld [vmem:[#allocation5 + $0x4f0] sm:$0xff] }
 0x195   :  { %3633 = vmatprep.subr.bf16.mxu0 %v4864_v18  ;;  %3805 = vmatprep.subr.bf16.mxu1 %v4866_v40  ;;  %v4922_v18 = vcombine.high %v224_v35, %v228_v36  ;;  %v231_v40 = vld [vmem:[#allocation5 + $0x350] sm:$0xff]  ;;  %v280_v34 = vld [vmem:[#allocation5 + $0x4d8] sm:$0xff] }
 0x196   :  { %v4927_v56 = vcombine.low %v231_v40, %v235_v41 }
 0x198   :  { %3634 = vmatpush1.bf16.msra.mxu0 %v4863_v48  ;;  %3806 = vmatpush1.bf16.msra.mxu1 %v4865_v49  ;;  %v4921_v48 = vcombine.low %v224_v35, %v228_v36  ;;  %v4928_v49 = vcombine.high %v231_v40, %v235_v41  ;;  %v284_v35 = vld [vmem:[#allocation5 + $0x4f8] sm:$0xff] }
 0x199   :  { %3635 = vmatprep.subr.bf16.mxu0 %v4872_v50  ;;  %3807 = vmatprep.subr.bf16.mxu1 %v4874_v51  ;;  %v4930_v50 = vcombine.high %v232_v42, %v236_v44  ;;  %v239_v51 = vld [vmem:[#allocation5 + $0x390] sm:$0xff]  ;;  %v288_v40 = vld [vmem:[#allocation5 + $0x518] sm:$0xff] }
 0x19a   :  { %v4935_v2 = vcombine.low %v239_v51, %v243_v52  ;;  %v292_v41 = vld [vmem:[#allocation5 + $0x538] sm:$0xff] }
 0x19c   :  { %3636 = vmatpush1.bf16.msra.mxu0 %v4871_v57  ;;  %3808 = vmatpush1.bf16.msra.mxu1 %v4873_v59  ;;  %v4929_v57 = vcombine.low %v232_v42, %v236_v44  ;;  %v4936_v59 = vcombine.high %v239_v51, %v243_v52  ;;  %v4977_v44 = vcombine.low %v280_v34, %v284_v35  ;;  %v300_v51 = vld [vmem:[#allocation5 + $0x578] sm:$0xff] }
 0x19d   :  { %3637 = vmatprep.subr.bf16.mxu0 %v4880_v60  ;;  %3809 = vmatprep.subr.bf16.mxu1 %v4882_v61  ;;  %v4938_v60 = vcombine.high %v240_v27, %v244_v29  ;;  %v247_v61 = vld [vmem:[#allocation5 + $0x3d0] sm:$0xff] }
 0x19e   :  { %v4943_v10 = vcombine.low %v247_v61, %v251_v62 }
 0x1a0   :  { %3638 = vmatpush1.bf16.msra.mxu0 %v4879_v3  ;;  %3810 = vmatpush1.bf16.msra.mxu1 %v4881_v4  ;;  %v4937_v3 = vcombine.low %v240_v27, %v244_v29  ;;  %v4944_v4 = vcombine.high %v247_v61, %v251_v62  ;;  %v4985_v27 = vcombine.low %v288_v40, %v292_v41  ;;  %v308_v61 = vld [vmem:[#allocation5 + $0x5b8] sm:$0xff] }
 0x1a1   :  { %3639 = vmatprep.subr.bf16.mxu0 %v4888_v5  ;;  %3811 = vmatprep.subr.bf16.mxu1 %v4890_v6  ;;  %v4946_v5 = vcombine.high %v248_v63, %v252_v0  ;;  %v255_v6 = vld [vmem:[#allocation5 + $0x410] sm:$0xff] }
 0x1a2   :  { %v4951_v19 = vcombine.low %v255_v6, %v259_v7 }
 0x1a4   :  { %3640 = vmatpush1.bf16.msra.mxu0 %v4887_v11  ;;  %3812 = vmatpush1.bf16.msra.mxu1 %v4889_v45  ;;  %v4945_v11 = vcombine.low %v248_v63, %v252_v0  ;;  %v4952_v45 = vcombine.high %v255_v6, %v259_v7  ;;  %v316_v6 = vld [vmem:[#allocation5 + $0x5f8] sm:$0xff] }
 0x1a5   :  { %3641 = vmatprep.subr.bf16.mxu0 %v4896_v46  ;;  %3813 = vmatprep.subr.bf16.mxu1 %v4898_v12  ;;  %v4954_v46 = vcombine.high %v256_v8, %v260_v9  ;;  %v263_v12 = vld [vmem:[#allocation5 + $0x450] sm:$0xff] }
 0x1a6   :  { %v4959_v26 = vcombine.low %v263_v12, %v267_v13 }
 0x1a8   :  { %3642 = vmatpush1.bf16.msra.mxu0 %v4895_v20  ;;  %3814 = vmatpush1.bf16.msra.mxu1 %v4897_v21  ;;  %v4953_v20 = vcombine.low %v256_v8, %v260_v9  ;;  %v4960_v21 = vcombine.high %v263_v12, %v267_v13  ;;  %v324_v12 = vld [vmem:[#allocation5 + $0x638] sm:$0xff] }
 0x1a9   :  { %3643 = vmatprep.subr.bf16.mxu0 %v4904_v22  ;;  %3815 = vmatprep.subr.bf16.mxu1 %v4906_v23  ;;  %v4962_v22 = vcombine.high %v264_v14, %v268_v16  ;;  %v271_v23 = vld [vmem:[#allocation5 + $0x490] sm:$0xff] }
 0x1aa   :  { %v4967_v36 = vcombine.low %v271_v23, %v275_v24 }
 0x1ac   :  { %3644 = vmatpush1.bf16.msra.mxu0 %v4903_v28  ;;  %3816 = vmatpush1.bf16.msra.mxu1 %v4905_v31  ;;  %v4961_v28 = vcombine.low %v264_v14, %v268_v16  ;;  %v4968_v31 = vcombine.high %v271_v23, %v275_v24  ;;  %v332_v23 = vld [vmem:[#allocation5 + $0x678] sm:$0xff] }
 0x1ad   :  { %3645 = vmatprep.subr.bf16.mxu0 %v4912_v32  ;;  %3817 = vmatprep.subr.bf16.mxu1 %v4914_v33  ;;  %v4970_v32 = vcombine.high %v272_v25, %v276_v54  ;;  %v279_v33 = vld [vmem:[#allocation5 + $0x4d0] sm:$0xff] }
 0x1ae   :  { %v4975_v42 = vcombine.low %v279_v33, %v283_v58 }
 0x1b0   :  { %3646 = vmatpush1.bf16.msra.mxu0 %v4911_v37  ;;  %3818 = vmatpush1.bf16.msra.mxu1 %v4913_v38  ;;  %v4976_v37 = vcombine.high %v279_v33, %v283_v58  ;;  %v4978_v38 = vcombine.high %v280_v34, %v284_v35  ;;  %v340_v33 = vld [vmem:[#allocation5 + $0x6b8] sm:$0xff] }
 0x1b1   :  { %3647 = vmatprep.subr.bf16.mxu0 %v4920_v17  ;;  %3819 = vmatprep.subr.bf16.mxu1 %v4922_v18  ;;  %v287_v17 = vld [vmem:[#allocation5 + $0x510] sm:$0xff] }
 0x1b2   :  { %v291_v18 = vld [vmem:[#allocation5 + $0x530] sm:$0xff] }
 0x1b3   :  { %v4983_v52 = vcombine.low %v287_v17, %v291_v18 }
 0x1b4   :  { %3648 = vmatpush1.bf16.msra.mxu0 %v4919_v47  ;;  %3820 = vmatpush1.bf16.msra.mxu1 %v4921_v48  ;;  %v4984_v47 = vcombine.high %v287_v17, %v291_v18  ;;  %v295_v48 = vld [vmem:[#allocation5 + $0x550] sm:$0xff]  ;;  %v348_v17 = vld [vmem:[#allocation5 + $0x6f8] sm:$0xff] }
 0x1b5   :  { %3649 = vmatprep.subr.bf16.mxu0 %v4928_v49  ;;  %3821 = vmatprep.subr.bf16.mxu1 %v4930_v50  ;;  %v299_v49 = vld [vmem:[#allocation5 + $0x570] sm:$0xff]  ;;  %v296_v50 = vld [vmem:[#allocation5 + $0x558] sm:$0xff] }
 0x1b6   :  { %v4992_v29 = vcombine.high %v295_v48, %v299_v49  ;;  %v4991_v62 = vcombine.low %v295_v48, %v299_v49  ;;  %v4993_v63 = vcombine.low %v296_v50, %v300_v51  ;;  %v356_v48 = vld [vmem:[#allocation5 + $0x738] sm:$0xff] }
 0x1b8   :  { %3650 = vmatpush1.bf16.msra.mxu0 %v4927_v56  ;;  %3822 = vmatpush1.bf16.msra.mxu1 %v4929_v57  ;;  %v4994_v56 = vcombine.high %v296_v50, %v300_v51  ;;  %v303_v57 = vld [vmem:[#allocation5 + $0x590] sm:$0xff] }
 0x1b9   :  { %3651 = vmatprep.subr.bf16.mxu0 %v4936_v59  ;;  %3823 = vmatprep.subr.bf16.mxu1 %v4938_v60  ;;  %v307_v59 = vld [vmem:[#allocation5 + $0x5b0] sm:$0xff]  ;;  %v304_v60 = vld [vmem:[#allocation5 + $0x598] sm:$0xff] }
 0x1ba   :  { %v5000_v0 = vcombine.high %v303_v57, %v307_v59  ;;  %v4999_v7 = vcombine.low %v303_v57, %v307_v59  ;;  %v5001_v8 = vcombine.low %v304_v60, %v308_v61  ;;  %v364_v57 = vld [vmem:[#allocation5 + $0x778] sm:$0xff] }
 0x1bc   :  { %3652 = vmatpush1.bf16.msra.mxu0 %v4935_v2  ;;  %3824 = vmatpush1.bf16.msra.mxu1 %v4937_v3  ;;  %v5002_v2 = vcombine.high %v304_v60, %v308_v61  ;;  %v311_v3 = vld [vmem:[#allocation5 + $0x5d0] sm:$0xff] }
 0x1bd   :  { %3653 = vmatprep.subr.bf16.mxu0 %v4944_v4  ;;  %3825 = vmatprep.subr.bf16.mxu1 %v4946_v5  ;;  %v315_v4 = vld [vmem:[#allocation5 + $0x5f0] sm:$0xff]  ;;  %v312_v5 = vld [vmem:[#allocation5 + $0x5d8] sm:$0xff] }
 0x1be   :  { %v5008_v9 = vcombine.high %v311_v3, %v315_v4  ;;  %v5007_v13 = vcombine.low %v311_v3, %v315_v4  ;;  %v5009_v14 = vcombine.low %v312_v5, %v316_v6  ;;  %v372_v3 = vld [vmem:[#allocation5 + $0x7b8] sm:$0xff] }
 0x1c0   :  { %3654 = vmatpush1.bf16.msra.mxu0 %v4943_v10  ;;  %3826 = vmatpush1.bf16.msra.mxu1 %v4945_v11  ;;  %v5010_v10 = vcombine.high %v312_v5, %v316_v6  ;;  %v319_v11 = vld [vmem:[#allocation5 + $0x610] sm:$0xff] }
 0x1c1   :  { %3666 = vmatprep.subr.bf16.mxu0 %v4952_v45  ;;  %3838 = vmatprep.subr.bf16.mxu1 %v4954_v46  ;;  %v323_v45 = vld [vmem:[#allocation5 + $0x630] sm:$0xff]  ;;  %v320_v46 = vld [vmem:[#allocation5 + $0x618] sm:$0xff] }
 0x1c2   :  { %v5016_v16 = vcombine.high %v319_v11, %v323_v45  ;;  %v5015_v24 = vcombine.low %v319_v11, %v323_v45  ;;  %v380_v11 = vld [vmem:[#allocation5 + $0x7f8] sm:$0xff] }
 0x1c3   :  { %3656 = vmatmul.mubr.bf16.vlgmr.msra.gmra.mrb[4].mxu0 %v6032_v15  ;;  %3828 = vmatmul.mubr.bf16.vlgmr.msra.gmra.mrb[4].mxu1 %v6032_v15  ;;  %v4969_v15 = vcombine.low %v272_v25, %v276_v54  ;;  %v5017_v25 = vcombine.low %v320_v46, %v324_v12 }
 0x1c4   :  { %3667 = vmatpush1.bf16.msra.mxu0 %v4951_v19  ;;  %3839 = vmatpush1.bf16.msra.mxu1 %v4953_v20  ;;  %v5018_v19 = vcombine.high %v320_v46, %v324_v12  ;;  %v327_v20 = vld [vmem:[#allocation5 + $0x650] sm:$0xff] }
 0x1c5   :  { %3668 = vmatprep.subr.bf16.mxu0 %v4960_v21  ;;  %3840 = vmatprep.subr.bf16.mxu1 %v4962_v22  ;;  %v331_v21 = vld [vmem:[#allocation5 + $0x670] sm:$0xff]  ;;  %v328_v22 = vld [vmem:[#allocation5 + $0x658] sm:$0xff] }
 0x1c6   :  { %3698 = vmatprep.mubr.bf16.mxu0 %v6040_v53  ;;  %3870 = vmatprep.mubr.bf16.mxu1 %v6040_v53  ;;  %v4986_v53 = vcombine.high %v288_v40, %v292_v41  ;;  %v5024_v54 = vcombine.high %v327_v20, %v331_v21  ;;  %v5023_v58 = vcombine.low %v327_v20, %v331_v21  ;;  %v388_v20 = vld [vmem:[#allocation5 + $0x838] sm:$0xff] }
 0x1c7   :  { %v5025_v34 = vcombine.low %v328_v22, %v332_v23 }
 0x1c8   :  { %3669 = vmatpush1.bf16.msra.mxu0 %v4959_v26  ;;  %3841 = vmatpush1.bf16.msra.mxu1 %v4961_v28  ;;  %v5026_v26 = vcombine.high %v328_v22, %v332_v23  ;;  %v335_v28 = vld [vmem:[#allocation5 + $0x690] sm:$0xff] }
 0x1c9   :  { %3670 = vmatprep.subr.bf16.mxu0 %v4968_v31  ;;  %3842 = vmatprep.subr.bf16.mxu1 %v4970_v32  ;;  %v339_v31 = vld [vmem:[#allocation5 + $0x6b0] sm:$0xff]  ;;  %v336_v32 = vld [vmem:[#allocation5 + $0x698] sm:$0xff] }
 0x1ca   :  { %v5032_v35 = vcombine.high %v335_v28, %v339_v31  ;;  %v5031_v18 = vcombine.low %v335_v28, %v339_v31  ;;  %v5033_v40 = vcombine.low %v336_v32, %v340_v33  ;;  %v396_v28 = vld [vmem:[#allocation5 + $0x878] sm:$0xff] }
 0x1cc   :  { %3671 = vmatpush1.bf16.msra.mxu0 %v4967_v36  ;;  %3843 = vmatpush1.bf16.msra.mxu1 %v4969_v15  ;;  %v5034_v36 = vcombine.high %v336_v32, %v340_v33  ;;  %v343_v15 = vld [vmem:[#allocation5 + $0x6d0] sm:$0xff] }
 0x1cd   :  { %3672 = vmatprep.subr.bf16.mxu0 %v4976_v37  ;;  %3844 = vmatprep.subr.bf16.mxu1 %v4978_v38  ;;  %v347_v37 = vld [vmem:[#allocation5 + $0x6f0] sm:$0xff]  ;;  %v344_v38 = vld [vmem:[#allocation5 + $0x6d8] sm:$0xff] }
 0x1ce   :  { %v5040_v41 = vcombine.high %v343_v15, %v347_v37  ;;  %v5039_v49 = vcombine.low %v343_v15, %v347_v37  ;;  %v5041_v50 = vcombine.low %v344_v38, %v348_v17  ;;  %v404_v15 = vld [vmem:[#allocation5 + $0x8b8] sm:$0xff] }
 0x1d0   :  { %3673 = vmatpush1.bf16.msra.mxu0 %v4975_v42  ;;  %3845 = vmatpush1.bf16.msra.mxu1 %v4977_v44  ;;  %v5042_v42 = vcombine.high %v344_v38, %v348_v17  ;;  %v351_v44 = vld [vmem:[#allocation5 + $0x710] sm:$0xff] }
 0x1d1   :  { %3674 = vmatprep.subr.bf16.mxu0 %v4984_v47  ;;  %3846 = vmatprep.subr.bf16.mxu1 %v4986_v53  ;;  %v355_v47 = vld [vmem:[#allocation5 + $0x730] sm:$0xff]  ;;  %v352_v53 = vld [vmem:[#allocation5 + $0x718] sm:$0xff] }
 0x1d2   :  { %v5048_v51 = vcombine.high %v351_v44, %v355_v47  ;;  %v5047_v59 = vcombine.low %v351_v44, %v355_v47  ;;  %v5049_v60 = vcombine.low %v352_v53, %v356_v48  ;;  %v412_v44 = vld [vmem:[#allocation5 + $0x8f8] sm:$0xff] }
 0x1d4   :  { %3675 = vmatpush1.bf16.msra.mxu0 %v4983_v52  ;;  %3847 = vmatpush1.bf16.msra.mxu1 %v4985_v27  ;;  %v5050_v52 = vcombine.high %v352_v53, %v356_v48  ;;  %v359_v27 = vld [vmem:[#allocation5 + $0x750] sm:$0xff] }
 0x1d5   :  { %3676 = vmatprep.subr.bf16.mxu0 %v4992_v29  ;;  %3848 = vmatprep.subr.bf16.mxu1 %v4994_v56  ;;  %v363_v29 = vld [vmem:[#allocation5 + $0x770] sm:$0xff]  ;;  %v360_v56 = vld [vmem:[#allocation5 + $0x758] sm:$0xff] }
 0x1d6   :  { %v5056_v61 = vcombine.high %v359_v27, %v363_v29  ;;  %v5055_v4 = vcombine.low %v359_v27, %v363_v29  ;;  %v5057_v5 = vcombine.low %v360_v56, %v364_v57 }
 0x1d8   :  { %3677 = vmatpush1.bf16.msra.mxu0 %v4991_v62  ;;  %3849 = vmatpush1.bf16.msra.mxu1 %v4993_v63  ;;  %v5058_v62 = vcombine.high %v360_v56, %v364_v57  ;;  %v367_v63 = vld [vmem:[#allocation5 + $0x790] sm:$0xff] }
 0x1d9   :  { %3678 = vmatprep.subr.bf16.mxu0 %v5000_v0  ;;  %3850 = vmatprep.subr.bf16.mxu1 %v5002_v2  ;;  %v371_v0 = vld [vmem:[#allocation5 + $0x7b0] sm:$0xff]  ;;  %v368_v2 = vld [vmem:[#allocation5 + $0x798] sm:$0xff] }
 0x1da   :  { %v5064_v6 = vcombine.high %v367_v63, %v371_v0  ;;  %v5063_v45 = vcombine.low %v367_v63, %v371_v0  ;;  %v5065_v46 = vcombine.low %v368_v2, %v372_v3  ;;  %v423_v57 = vld [vmem:[#allocation5 + $0x950] sm:$0xff] }
 0x1dc   :  { %3679 = vmatpush1.bf16.msra.mxu0 %v4999_v7  ;;  %3851 = vmatpush1.bf16.msra.mxu1 %v5001_v8  ;;  %v5066_v7 = vcombine.high %v368_v2, %v372_v3  ;;  %v375_v8 = vld [vmem:[#allocation5 + $0x7d0] sm:$0xff] }
 0x1dd   :  { %3680 = vmatprep.subr.bf16.mxu0 %v5008_v9  ;;  %3852 = vmatprep.subr.bf16.mxu1 %v5010_v10  ;;  %v379_v9 = vld [vmem:[#allocation5 + $0x7f0] sm:$0xff]  ;;  %v376_v10 = vld [vmem:[#allocation5 + $0x7d8] sm:$0xff] }
 0x1de   :  { %v5072_v12 = vcombine.high %v375_v8, %v379_v9  ;;  %v5071_v21 = vcombine.low %v375_v8, %v379_v9  ;;  %v5073_v22 = vcombine.low %v376_v10, %v380_v11  ;;  %v431_v3 = vld [vmem:[#allocation5 + $0x990] sm:$0xff] }
 0x1e0   :  { %3681 = vmatpush1.bf16.msra.mxu0 %v5007_v13  ;;  %3853 = vmatpush1.bf16.msra.mxu1 %v5009_v14  ;;  %v5074_v13 = vcombine.high %v376_v10, %v380_v11  ;;  %v383_v14 = vld [vmem:[#allocation5 + $0x810] sm:$0xff] }
 0x1e1   :  { %3682 = vmatprep.subr.bf16.mxu0 %v5016_v16  ;;  %3854 = vmatprep.subr.bf16.mxu1 %v5018_v19  ;;  %v387_v16 = vld [vmem:[#allocation5 + $0x830] sm:$0xff]  ;;  %v384_v19 = vld [vmem:[#allocation5 + $0x818] sm:$0xff] }
 0x1e2   :  { %v5080_v23 = vcombine.high %v383_v14, %v387_v16  ;;  %v5079_v31 = vcombine.low %v383_v14, %v387_v16  ;;  %v5081_v32 = vcombine.low %v384_v19, %v388_v20  ;;  %v439_v11 = vld [vmem:[#allocation5 + $0x9d0] sm:$0xff] }
 0x1e4   :  { %3683 = vmatpush1.bf16.msra.mxu0 %v5015_v24  ;;  %3855 = vmatpush1.bf16.msra.mxu1 %v5017_v25  ;;  %v5082_v24 = vcombine.high %v384_v19, %v388_v20  ;;  %v391_v25 = vld [vmem:[#allocation5 + $0x850] sm:$0xff] }
 0x1e5   :  { %3684 = vmatprep.subr.bf16.mxu0 %v5024_v54  ;;  %3856 = vmatprep.subr.bf16.mxu1 %v5026_v26  ;;  %v395_v54 = vld [vmem:[#allocation5 + $0x870] sm:$0xff]  ;;  %v392_v26 = vld [vmem:[#allocation5 + $0x858] sm:$0xff] }
 0x1e6   :  { %v5088_v33 = vcombine.high %v391_v25, %v395_v54  ;;  %v5087_v37 = vcombine.low %v391_v25, %v395_v54  ;;  %v5089_v38 = vcombine.low %v392_v26, %v396_v28  ;;  %v447_v20 = vld [vmem:[#allocation5 + $0xa10] sm:$0xff] }
 0x1e8   :  { %3685 = vmatpush1.bf16.msra.mxu0 %v5023_v58  ;;  %3857 = vmatpush1.bf16.msra.mxu1 %v5025_v34  ;;  %v5090_v58 = vcombine.high %v392_v26, %v396_v28  ;;  %v399_v34 = vld [vmem:[#allocation5 + $0x890] sm:$0xff] }
 0x1e9   :  { %3686 = vmatprep.subr.bf16.mxu0 %v5032_v35  ;;  %3858 = vmatprep.subr.bf16.mxu1 %v5034_v36  ;;  %v403_v35 = vld [vmem:[#allocation5 + $0x8b0] sm:$0xff]  ;;  %v400_v36 = vld [vmem:[#allocation5 + $0x898] sm:$0xff] }
 0x1ea   :  { %v5096_v17 = vcombine.high %v399_v34, %v403_v35  ;;  %v5095_v47 = vcombine.low %v399_v34, %v403_v35  ;;  %v455_v28 = vld [vmem:[#allocation5 + $0xa50] sm:$0xff] }
 0x1ec   :  { %3687 = vmatpush1.bf16.msra.mxu0 %v5031_v18  ;;  %3859 = vmatpush1.bf16.msra.mxu1 %v5033_v40  ;;  %v5098_v18 = vcombine.high %v400_v36, %v404_v15  ;;  %v407_v40 = vld [vmem:[#allocation5 + $0x8d0] sm:$0xff] }
 0x1ed   :  { %3688 = vmatprep.subr.bf16.mxu0 %v5040_v41  ;;  %3860 = vmatprep.subr.bf16.mxu1 %v5042_v42  ;;  %v411_v41 = vld [vmem:[#allocation5 + $0x8f0] sm:$0xff]  ;;  %v408_v42 = vld [vmem:[#allocation5 + $0x8d8] sm:$0xff] }
 0x1ee   :  { %v5104_v53 = vcombine.high %v407_v40, %v411_v41  ;;  %v5106_v48 = vcombine.high %v408_v42, %v412_v44  ;;  %v5103_v27 = vcombine.low %v407_v40, %v411_v41  ;;  %v5105_v29 = vcombine.low %v408_v42, %v412_v44  ;;  %v471_v44 = vld [vmem:[#allocation5 + $0xad0] sm:$0xff] }
 0x1f0   :  { %3689 = vmatpush1.bf16.msra.mxu0 %v5039_v49  ;;  %3861 = vmatpush1.bf16.msra.mxu1 %v5041_v50  ;;  %v415_v49 = vld [vmem:[#allocation5 + $0x910] sm:$0xff] }
 0x1f1   :  { %3690 = vmatprep.subr.bf16.mxu0 %v5048_v51  ;;  %3862 = vmatprep.subr.bf16.mxu1 %v5050_v52  ;;  %v419_v50 = vld [vmem:[#allocation5 + $0x930] sm:$0xff]  ;;  %v416_v51 = vld [vmem:[#allocation5 + $0x918] sm:$0xff] }
 0x1f2   :  { %v420_v52 = vld [vmem:[#allocation5 + $0x938] sm:$0xff]  ;;  %v5112_v56 = vcombine.high %v415_v49, %v419_v50 }
 0x1f3   :  { %v5113_v63 = vcombine.low %v416_v51, %v420_v52 }
 0x1f4   :  { %3691 = vmatpush1.bf16.msra.mxu0 %v5047_v59  ;;  %3863 = vmatpush1.bf16.msra.mxu1 %v5049_v60  ;;  %v427_v59 = vld [vmem:[#allocation5 + $0x970] sm:$0xff]  ;;  %v424_v60 = vld [vmem:[#allocation5 + $0x958] sm:$0xff] }
 0x1f5   :  { %3692 = vmatprep.subr.bf16.mxu0 %v5056_v61  ;;  %3864 = vmatprep.subr.bf16.mxu1 %v5058_v62  ;;  %v428_v61 = vld [vmem:[#allocation5 + $0x978] sm:$0xff]  ;;  %v5111_v62 = vcombine.low %v415_v49, %v419_v50  ;;  %v5120_v0 = vcombine.high %v423_v57, %v427_v59 }
 0x1f6   :  { %v5122_v2 = vcombine.high %v424_v60, %v428_v61  ;;  %v5121_v8 = vcombine.low %v424_v60, %v428_v61  ;;  %v487_v61 = vld [vmem:[#allocation5 + $0xb50] sm:$0xff] }
 0x1f8   :  { %3693 = vmatpush1.bf16.msra.mxu0 %v5055_v4  ;;  %3865 = vmatpush1.bf16.msra.mxu1 %v5057_v5  ;;  %v435_v4 = vld [vmem:[#allocation5 + $0x9b0] sm:$0xff]  ;;  %v432_v5 = vld [vmem:[#allocation5 + $0x998] sm:$0xff] }
 0x1f9   :  { %3694 = vmatprep.subr.bf16.mxu0 %v5064_v6  ;;  %3866 = vmatprep.subr.bf16.mxu1 %v5066_v7  ;;  %v436_v6 = vld [vmem:[#allocation5 + $0x9b8] sm:$0xff]  ;;  %v5119_v7 = vcombine.low %v423_v57, %v427_v59  ;;  %v5128_v9 = vcombine.high %v431_v3, %v435_v4 }
 0x1fa   :  { %v5130_v10 = vcombine.high %v432_v5, %v436_v6  ;;  %v5129_v14 = vcombine.low %v432_v5, %v436_v6  ;;  %v495_v6 = vld [vmem:[#allocation5 + $0xb90] sm:$0xff] }
 0x1fc   :  { %3695 = vmatpush1.bf16.msra.mxu0 %v5063_v45  ;;  %3867 = vmatpush1.bf16.msra.mxu1 %v5065_v46  ;;  %v443_v45 = vld [vmem:[#allocation5 + $0x9f0] sm:$0xff]  ;;  %v440_v46 = vld [vmem:[#allocation5 + $0x9d8] sm:$0xff] }
 0x1fd   :  { %3696 = vmatprep.subr.bf16.mxu0 %v5072_v12  ;;  %3868 = vmatprep.subr.bf16.mxu1 %v5074_v13  ;;  %v444_v12 = vld [vmem:[#allocation5 + $0x9f8] sm:$0xff]  ;;  %v5127_v13 = vcombine.low %v431_v3, %v435_v4  ;;  %v5136_v16 = vcombine.high %v439_v11, %v443_v45 }
 0x1fe   :  { %v5138_v19 = vcombine.high %v440_v46, %v444_v12  ;;  %v5137_v25 = vcombine.low %v440_v46, %v444_v12  ;;  %v503_v12 = vld [vmem:[#allocation5 + $0xbd0] sm:$0xff] }
 0x200   :  { %3697 = vmatpush1.bf16.msra.mxu0 %v5071_v21  ;;  %3869 = vmatpush1.bf16.msra.mxu1 %v5073_v22  ;;  %v451_v21 = vld [vmem:[#allocation5 + $0xa30] sm:$0xff]  ;;  %v448_v22 = vld [vmem:[#allocation5 + $0xa18] sm:$0xff] }
 0x201   :  { %3709 = vmatprep.subr.bf16.mxu0 %v5080_v23  ;;  %3881 = vmatprep.subr.bf16.mxu1 %v5082_v24  ;;  %v452_v23 = vld [vmem:[#allocation5 + $0xa38] sm:$0xff]  ;;  %v5135_v24 = vcombine.low %v439_v11, %v443_v45  ;;  %v5144_v54 = vcombine.high %v447_v20, %v451_v21 }
 0x202   :  { %v5146_v26 = vcombine.high %v448_v22, %v452_v23  ;;  %v5145_v34 = vcombine.low %v448_v22, %v452_v23  ;;  %v511_v23 = vld [vmem:[#allocation5 + $0xc10] sm:$0xff] }
 0x203   :  { %3699 = vmatmul.mubr.bf16.vlgmr.msra.gmra.mrb[4].mxu0 %v6052_v30  ;;  %3871 = vmatmul.mubr.bf16.vlgmr.msra.gmra.mrb[4].mxu1 %v6052_v30  ;;  %v5097_v30 = vcombine.low %v400_v36, %v404_v15  ;;  %v463_v15 = vld [vmem:[#allocation5 + $0xa90] sm:$0xff] }
 0x204   :  { %3710 = vmatpush1.bf16.msra.mxu0 %v5079_v31  ;;  %3882 = vmatpush1.bf16.msra.mxu1 %v5081_v32  ;;  %v459_v31 = vld [vmem:[#allocation5 + $0xa70] sm:$0xff]  ;;  %v456_v32 = vld [vmem:[#allocation5 + $0xa58] sm:$0xff] }
 0x205   :  { %3711 = vmatprep.subr.bf16.mxu0 %v5088_v33  ;;  %3883 = vmatprep.subr.bf16.mxu1 %v5090_v58  ;;  %v460_v33 = vld [vmem:[#allocation5 + $0xa78] sm:$0xff]  ;;  %v5143_v58 = vcombine.low %v447_v20, %v451_v21  ;;  %v5152_v35 = vcombine.high %v455_v28, %v459_v31 }
 0x206   :  { %3741 = vmatprep.mubr.bf16.mxu0 %v6056_v39  ;;  %3913 = vmatprep.mubr.bf16.mxu1 %v6056_v39  ;;  %v5114_v39 = vcombine.high %v416_v51, %v420_v52  ;;  %v5154_v36 = vcombine.high %v456_v32, %v460_v33  ;;  %v5153_v40 = vcombine.low %v456_v32, %v460_v33  ;;  %v479_v52 = vld [vmem:[#allocation5 + $0xb10] sm:$0xff] }
 0x207   :  { %v519_v33 = vld [vmem:[#allocation5 + $0xc50] sm:$0xff] }
 0x208   :  { %3712 = vmatpush1.bf16.msra.mxu0 %v5087_v37  ;;  %3884 = vmatpush1.bf16.msra.mxu1 %v5089_v38  ;;  %v467_v37 = vld [vmem:[#allocation5 + $0xab0] sm:$0xff]  ;;  %v464_v38 = vld [vmem:[#allocation5 + $0xa98] sm:$0xff] }
 0x209   :  { %3713 = vmatprep.subr.bf16.mxu0 %v5096_v17  ;;  %3885 = vmatprep.subr.bf16.mxu1 %v5098_v18  ;;  %v468_v17 = vld [vmem:[#allocation5 + $0xab8] sm:$0xff]  ;;  %v5151_v18 = vcombine.low %v455_v28, %v459_v31  ;;  %v5160_v41 = vcombine.high %v463_v15, %v467_v37 }
 0x20a   :  { %v5162_v42 = vcombine.high %v464_v38, %v468_v17  ;;  %v5161_v49 = vcombine.low %v464_v38, %v468_v17  ;;  %v527_v17 = vld [vmem:[#allocation5 + $0xc90] sm:$0xff] }
 0x20c   :  { %3714 = vmatpush1.bf16.msra.mxu0 %v5095_v47  ;;  %3886 = vmatpush1.bf16.msra.mxu1 %v5097_v30  ;;  %v475_v47 = vld [vmem:[#allocation5 + $0xaf0] sm:$0xff]  ;;  %v472_v30 = vld [vmem:[#allocation5 + $0xad8] sm:$0xff] }
 0x20d   :  { %3715 = vmatprep.subr.bf16.mxu0 %v5104_v53  ;;  %3887 = vmatprep.subr.bf16.mxu1 %v5106_v48  ;;  %v476_v53 = vld [vmem:[#allocation5 + $0xaf8] sm:$0xff]  ;;  %v5159_v48 = vcombine.low %v463_v15, %v467_v37  ;;  %v5168_v50 = vcombine.high %v471_v44, %v475_v47 }
 0x20e   :  { %v5170_v51 = vcombine.high %v472_v30, %v476_v53  ;;  %v5169_v57 = vcombine.low %v472_v30, %v476_v53  ;;  %v535_v53 = vld [vmem:[#allocation5 + $0xcd0] sm:$0xff] }
 0x210   :  { %3716 = vmatpush1.bf16.msra.mxu0 %v5103_v27  ;;  %3888 = vmatpush1.bf16.msra.mxu1 %v5105_v29  ;;  %v483_v27 = vld [vmem:[#allocation5 + $0xb30] sm:$0xff]  ;;  %v480_v29 = vld [vmem:[#allocation5 + $0xb18] sm:$0xff] }
 0x211   :  { %3717 = vmatprep.subr.bf16.mxu0 %v5112_v56  ;;  %3889 = vmatprep.subr.bf16.mxu1 %v5114_v39  ;;  %v484_v56 = vld [vmem:[#allocation5 + $0xb38] sm:$0xff]  ;;  %v5167_v39 = vcombine.low %v471_v44, %v475_v47  ;;  %v5176_v59 = vcombine.high %v479_v52, %v483_v27 }
 0x212   :  { %v5178_v60 = vcombine.high %v480_v29, %v484_v56  ;;  %v5177_v3 = vcombine.low %v480_v29, %v484_v56  ;;  %v543_v56 = vld [vmem:[#allocation5 + $0xd10] sm:$0xff] }
 0x214   :  { %3718 = vmatpush1.bf16.msra.mxu0 %v5111_v62  ;;  %3890 = vmatpush1.bf16.msra.mxu1 %v5113_v63  ;;  %v491_v62 = vld [vmem:[#allocation5 + $0xb70] sm:$0xff]  ;;  %v488_v63 = vld [vmem:[#allocation5 + $0xb58] sm:$0xff] }
 0x215   :  { %3719 = vmatprep.subr.bf16.mxu0 %v5120_v0  ;;  %3891 = vmatprep.subr.bf16.mxu1 %v5122_v2  ;;  %v492_v0 = vld [vmem:[#allocation5 + $0xb78] sm:$0xff]  ;;  %v5175_v2 = vcombine.low %v479_v52, %v483_v27  ;;  %v5184_v4 = vcombine.high %v487_v61, %v491_v62 }
 0x216   :  { %v5186_v5 = vcombine.high %v488_v63, %v492_v0  ;;  %v5185_v11 = vcombine.low %v488_v63, %v492_v0  ;;  %v551_v0 = vld [vmem:[#allocation5 + $0xd50] sm:$0xff] }
 0x218   :  { %3720 = vmatpush1.bf16.msra.mxu0 %v5119_v7  ;;  %3892 = vmatpush1.bf16.msra.mxu1 %v5121_v8  ;;  %v499_v7 = vld [vmem:[#allocation5 + $0xbb0] sm:$0xff]  ;;  %v496_v8 = vld [vmem:[#allocation5 + $0xb98] sm:$0xff] }
 0x219   :  { %3721 = vmatprep.subr.bf16.mxu0 %v5128_v9  ;;  %3893 = vmatprep.subr.bf16.mxu1 %v5130_v10  ;;  %v500_v9 = vld [vmem:[#allocation5 + $0xbb8] sm:$0xff]  ;;  %v5183_v10 = vcombine.low %v487_v61, %v491_v62  ;;  %v5192_v45 = vcombine.high %v495_v6, %v499_v7 }
 0x21a   :  { %v5194_v46 = vcombine.high %v496_v8, %v500_v9  ;;  %v5193_v20 = vcombine.low %v496_v8, %v500_v9 }
 0x21c   :  { %3722 = vmatpush1.bf16.msra.mxu0 %v5127_v13  ;;  %3894 = vmatpush1.bf16.msra.mxu1 %v5129_v14  ;;  %v507_v13 = vld [vmem:[#allocation5 + $0xbf0] sm:$0xff]  ;;  %v504_v14 = vld [vmem:[#allocation5 + $0xbd8] sm:$0xff] }
 0x21d   :  { %3723 = vmatprep.subr.bf16.mxu0 %v5136_v16  ;;  %3895 = vmatprep.subr.bf16.mxu1 %v5138_v19  ;;  %v508_v16 = vld [vmem:[#allocation5 + $0xbf8] sm:$0xff]  ;;  %v5191_v19 = vcombine.low %v495_v6, %v499_v7  ;;  %v5200_v21 = vcombine.high %v503_v12, %v507_v13  ;;  %v6101_v7 = vld [vmem:[#allocation7] sm:$0xff] }
 0x21e   :  { %v5202_v22 = vcombine.high %v504_v14, %v508_v16  ;;  %v5201_v28 = vcombine.low %v504_v14, %v508_v16  ;;  %v560_v16 = vld [vmem:[#allocation5 + $0xd98] sm:$0xff] }
 0x220   :  { %3724 = vmatpush1.bf16.msra.mxu0 %v5135_v24  ;;  %3896 = vmatpush1.bf16.msra.mxu1 %v5137_v25  ;;  %v515_v24 = vld [vmem:[#allocation5 + $0xc30] sm:$0xff]  ;;  %v512_v25 = vld [vmem:[#allocation5 + $0xc18] sm:$0xff] }
 0x221   :  { %3725 = vmatprep.subr.bf16.mxu0 %v5144_v54  ;;  %3897 = vmatprep.subr.bf16.mxu1 %v5146_v26  ;;  %v516_v54 = vld [vmem:[#allocation5 + $0xc38] sm:$0xff]  ;;  %v5199_v26 = vcombine.low %v503_v12, %v507_v13  ;;  %v5208_v31 = vcombine.high %v511_v23, %v515_v24  ;;  %v559_v12 = vld [vmem:[#allocation5 + $0xd90] sm:$0xff] }
 0x222   :  { %v5210_v32 = vcombine.high %v512_v25, %v516_v54  ;;  %v5209_v15 = vcombine.low %v512_v25, %v516_v54  ;;  %v563_v13 = vld [vmem:[#allocation5 + $0xdb0] sm:$0xff] }
 0x223   :  { %v5256_v25 = vcombine.high %v559_v12, %v563_v13 }
 0x224   :  { %3726 = vmatpush1.bf16.msra.mxu0 %v5143_v58  ;;  %3898 = vmatpush1.bf16.msra.mxu1 %v5145_v34  ;;  %v523_v58 = vld [vmem:[#allocation5 + $0xc70] sm:$0xff]  ;;  %v520_v34 = vld [vmem:[#allocation5 + $0xc58] sm:$0xff] }
 0x225   :  { %3727 = vmatprep.subr.bf16.mxu0 %v5152_v35  ;;  %3899 = vmatprep.subr.bf16.mxu1 %v5154_v36  ;;  %v524_v35 = vld [vmem:[#allocation5 + $0xc78] sm:$0xff]  ;;  %v5207_v36 = vcombine.low %v511_v23, %v515_v24  ;;  %v5216_v37 = vcombine.high %v519_v33, %v523_v58 }
 0x226   :  { %v5218_v38 = vcombine.high %v520_v34, %v524_v35  ;;  %v5217_v44 = vcombine.low %v520_v34, %v524_v35  ;;  %v568_v34 = vld [vmem:[#allocation5 + $0xdd8] sm:$0xff] }
 0x227   :  { %v572_v35 = vld [vmem:[#allocation5 + $0xdf8] sm:$0xff] }
 0x228   :  { %3728 = vmatpush1.bf16.msra.mxu0 %v5151_v18  ;;  %3900 = vmatpush1.bf16.msra.mxu1 %v5153_v40  ;;  %v531_v18 = vld [vmem:[#allocation5 + $0xcb0] sm:$0xff]  ;;  %v528_v40 = vld [vmem:[#allocation5 + $0xc98] sm:$0xff] }
 0x229   :  { %3729 = vmatprep.subr.bf16.mxu0 %v5160_v41  ;;  %3901 = vmatprep.subr.bf16.mxu1 %v5162_v42  ;;  %v532_v41 = vld [vmem:[#allocation5 + $0xcb8] sm:$0xff]  ;;  %v5215_v42 = vcombine.low %v519_v33, %v523_v58  ;;  %v5224_v47 = vcombine.high %v527_v17, %v531_v18  ;;  %v5223_v52 = vcombine.low %v527_v17, %v531_v18 }
 0x22a   :  { %v5226_v30 = vcombine.high %v528_v40, %v532_v41  ;;  %v5255_v17 = vcombine.low %v559_v12, %v563_v13 }
 0x22c   :  { %3730 = vmatpush1.bf16.msra.mxu0 %v5159_v48  ;;  %3902 = vmatpush1.bf16.msra.mxu1 %v5161_v49  ;;  %v539_v48 = vld [vmem:[#allocation5 + $0xcf0] sm:$0xff]  ;;  %v536_v49 = vld [vmem:[#allocation5 + $0xcd8] sm:$0xff] }
 0x22d   :  { %3731 = vmatprep.subr.bf16.mxu0 %v5168_v50  ;;  %3903 = vmatprep.subr.bf16.mxu1 %v5170_v51  ;;  %v540_v50 = vld [vmem:[#allocation5 + $0xcf8] sm:$0xff]  ;;  %v639_v51 = vlaneseq  ;;  %v5232_v27 = vcombine.high %v535_v53, %v539_v48  ;;  %v5231_v61 = vcombine.low %v535_v53, %v539_v48 }
 0x22e   :  { %v5234_v29 = vcombine.high %v536_v49, %v540_v50  ;;  %v5233_v62 = vcombine.low %v536_v49, %v540_v50  ;;  %v5266_v50 = vcombine.high %v568_v34, %v572_v35 }
 0x230   :  { %3732 = vmatpush1.bf16.msra.mxu0 %v5167_v39  ;;  %3904 = vmatpush1.bf16.msra.mxu1 %v5169_v57  ;;  %v547_v39 = vld [vmem:[#allocation5 + $0xd30] sm:$0xff]  ;;  %v544_v57 = vld [vmem:[#allocation5 + $0xd18] sm:$0xff] }
 0x231   :  { %3733 = vmatprep.subr.bf16.mxu0 %v5176_v59  ;;  %3905 = vmatprep.subr.bf16.mxu1 %v5178_v60  ;;  %v548_v59 = vld [vmem:[#allocation5 + $0xd38] sm:$0xff]  ;;  %v6098_v60 = vshrl.u32 %v639_v51, 7  ;;  %v5239_v6 = vcombine.low %v543_v56, %v547_v39  ;;  %v575_v51 = vld [vmem:[#allocation5 + $0xe10] sm:$0xff] }
 0x232   :  { %v5242_v63 = vcombine.high %v544_v57, %v548_v59 }
 0x233   :  { %v649_v8 = vsub.s32 2, %v6098_v60  ;;  %v645_v9 = vsub.s32 1, %v6098_v60 }
 0x234   :  { %3734 = vmatpush1.bf16.msra.mxu0 %v5175_v2  ;;  %3906 = vmatpush1.bf16.msra.mxu1 %v5177_v3  ;;  %v555_v2 = vld [vmem:[#allocation5 + $0xd70] sm:$0xff]  ;;  %v641_v3 = vsub.s32 0, %v6098_v60 }
 0x235   :  { %3735 = vmatprep.subr.bf16.mxu0 %v5184_v4  ;;  %3907 = vmatprep.subr.bf16.mxu1 %v5186_v5  ;;  %v552_v4 = vld [vmem:[#allocation5 + $0xd58] sm:$0xff] }
 0x236   :  { %v556_v5 = vld [vmem:[#allocation5 + $0xd78] sm:$0xff]  ;;  %v642_v14 = vrot.slane %v6101_v7, %v641_v3 }
 0x237   :  { %v5249_v24 = vcombine.low %v552_v4, %v556_v5 }
 0x238   :  { %3736 = vmatpush1.bf16.msra.mxu0 %v5183_v10  ;;  %3908 = vmatpush1.bf16.msra.mxu1 %v5185_v11  ;;  %v5241_v10 = vcombine.low %v544_v57, %v548_v59  ;;  %v653_v11 = vsub.s32 3, %v6098_v60  ;;  %v580_v57 = vld [vmem:[#allocation5 + $0xe38] sm:$0xff] }
 0x239   :  { %3737 = vmatprep.subr.bf16.mxu0 %v5192_v45  ;;  %3909 = vmatprep.subr.bf16.mxu1 %v5194_v46  ;;  %v5248_v45 = vcombine.high %v551_v0, %v555_v2  ;;  %v5250_v46 = vcombine.high %v552_v4, %v556_v5 }
 0x23a   :  { %v654_v23 = vrot.slane %v6101_v7, %v653_v11  ;;  %v584_v11 = vld [vmem:[#allocation5 + $0xe58] sm:$0xff] }
 0x23c   :  { %3738 = vmatpush1.bf16.msra.mxu0 %v5191_v19  ;;  %3910 = vmatpush1.bf16.msra.mxu1 %v5193_v20  ;;  %v564_v19 = vld [vmem:[#allocation5 + $0xdb8] sm:$0xff]  ;;  %v650_v20 = vrot.slane %v6101_v7, %v649_v8  ;;  %v583_v8 = vld [vmem:[#allocation5 + $0xe50] sm:$0xff] }
 0x23d   :  { %3739 = vmatprep.subr.bf16.mxu0 %v5200_v21  ;;  %3911 = vmatprep.subr.bf16.mxu1 %v5202_v22  ;;  %v646_v21 = vrot.slane %v6101_v7, %v645_v9  ;;  %v5247_v22 = vcombine.low %v551_v0, %v555_v2  ;;  %v5257_v18 = vcombine.low %v560_v16, %v564_v19  ;;  %v587_v9 = vld [vmem:[#allocation5 + $0xe70] sm:$0xff] }
 0x23e   :  { %v5280_v13 = vcombine.high %v583_v8, %v587_v9 }
 0x240   :  { %3740 = vmatpush1.bf16.msra.mxu0 %v5199_v26  ;;  %3912 = vmatpush1.bf16.msra.mxu1 %v5201_v28  ;;  %v5258_v26 = vcombine.high %v560_v16, %v564_v19  ;;  %v567_v28 = vld [vmem:[#allocation5 + $0xdd0] sm:$0xff] }
 0x241   :  { %3752 = vmatprep.subr.bf16.mxu0 %v5208_v31  ;;  %3924 = vmatprep.subr.bf16.mxu1 %v5210_v32  ;;  %v571_v31 = vld [vmem:[#allocation5 + $0xdf0] sm:$0xff] }
 0x242   :  { %v5263_v49 = vcombine.low %v567_v28, %v571_v31  ;;  %v591_v16 = vld [vmem:[#allocation5 + $0xe90] sm:$0xff] }
 0x243   :  { %3742 = vmatmul.mubr.bf16.vlgmr.msra.gmra.mrb[4].mxu0 %v6064_v43  ;;  %3914 = vmatmul.mubr.bf16.vlgmr.msra.gmra.mrb[4].mxu1 %v6064_v43  ;;  %v5225_v43 = vcombine.low %v528_v40, %v532_v41  ;;  %v595_v19 = vld [vmem:[#allocation5 + $0xeb0] sm:$0xff] }
 0x244   :  { %3753 = vmatpush1.bf16.msra.mxu0 %v5207_v36  ;;  %3925 = vmatpush1.bf16.msra.mxu1 %v5209_v15 }
 0x245   :  { %3754 = vmatprep.subr.bf16.mxu0 %v5216_v37  ;;  %3926 = vmatprep.subr.bf16.mxu1 %v5218_v38 }
 0x246   :  { %3784 = vmatprep.mubr.bf16.mxu0 %v6072_v55  ;;  %3956 = vmatprep.mubr.bf16.mxu1 %v6072_v55  ;;  %v5240_v55 = vcombine.high %v543_v56, %v547_v39  ;;  %v5265_v56 = vcombine.low %v568_v34, %v572_v35  ;;  %v576_v39 = vld [vmem:[#allocation5 + $0xe18] sm:$0xff]  ;;  %v607_v35 = vld [vmem:[#allocation5 + $0xf10] sm:$0xff] }
 0x247   :  { %v5273_v12 = vcombine.low %v576_v39, %v580_v57 }
 0x248   :  { %3755 = vmatpush1.bf16.msra.mxu0 %v5215_v42  ;;  %3927 = vmatpush1.bf16.msra.mxu1 %v5217_v44 }
 0x249   :  { %3756 = vmatprep.subr.bf16.mxu0 %v5224_v47  ;;  %3928 = vmatprep.subr.bf16.mxu1 %v5226_v30  ;;  %v5264_v47 = vcombine.high %v567_v28, %v571_v31  ;;  %v600_v28 = vld [vmem:[#allocation5 + $0xed8] sm:$0xff] }
 0x24a   :  { %v604_v31 = vld [vmem:[#allocation5 + $0xef8] sm:$0xff] }
 0x24b   :  { %v5298_v34 = vcombine.high %v600_v28, %v604_v31 }
 0x24c   :  { %3757 = vmatpush1.bf16.msra.mxu0 %v5223_v52  ;;  %3929 = vmatpush1.bf16.msra.mxu1 %v5225_v43  ;;  %v579_v52 = vld [vmem:[#allocation5 + $0xe30] sm:$0xff] }
 0x24d   :  { %3758 = vmatprep.subr.bf16.mxu0 %v5232_v27  ;;  %3930 = vmatprep.subr.bf16.mxu1 %v5234_v29  ;;  %v5272_v3 = vcombine.high %v575_v51, %v579_v52 }
 0x250   :  { %3759 = vmatpush1.bf16.msra.mxu0 %v5231_v61  ;;  %3931 = vmatpush1.bf16.msra.mxu1 %v5233_v62 }
 0x251   :  { %3760 = vmatprep.subr.bf16.mxu0 %v5240_v55  ;;  %3932 = vmatprep.subr.bf16.mxu1 %v5242_v63 }
 0x254   :  { %3761 = vmatpush1.bf16.msra.mxu0 %v5239_v6  ;;  %3933 = vmatpush1.bf16.msra.mxu1 %v5241_v10  ;;  %v5274_v6 = vcombine.high %v576_v39, %v580_v57  ;;  %v631_v57 = vld [vmem:[#allocation5 + $0xfd0] sm:$0xff] }
 0x255   :  { %3762 = vmatprep.subr.bf16.mxu0 %v5248_v45  ;;  %3934 = vmatprep.subr.bf16.mxu1 %v5250_v46  ;;  %v588_v45 = vld [vmem:[#allocation5 + $0xe78] sm:$0xff]  ;;  %v5271_v46 = vcombine.low %v575_v51, %v579_v52  ;;  %v627_v51 = vld [vmem:[#allocation5 + $0xfb0] sm:$0xff] }
 0x256   :  { %v3442_v54 = vpop.f32.mrb[0].mxu0  ;;  %v3614_v33 = vpop.f32.mrb[0].mxu1  ;;  %v624_v52 = vld [vmem:[#allocation5 + $0xf98] sm:$0xff] }
 0x257   :  { %v5522_v32 = vadd.f32 %v3442_v54, %v642_v14  ;;  %v3444_v58 = vpop.f32.mrb[1].mxu0  ;;  %v5526_v36 = vadd.f32 %v3614_v33, %v650_v20  ;;  %v3616_v37 = vpop.f32.mrb[1].mxu1  ;;  %v599_v54 = vld [vmem:[#allocation5 + $0xed0] sm:$0xff] }
 0x258   :  { %v5523_v15 = vadd.f32 %v3444_v58, %v646_v21  ;;  %v3446_v38 = vpop.f32.mrb[2].mxu0  ;;  %3763 = vmatpush1.bf16.msra.mxu0 %v5247_v22  ;;  %v5527_v40 = vadd.f32 %v3616_v37, %v654_v23  ;;  %v3618_v42 = vpop.f32.mrb[2].mxu1  ;;  %3935 = vmatpush1.bf16.msra.mxu1 %v5249_v24  ;;  %v5279_v22 = vcombine.low %v583_v8, %v587_v9  ;;  %v612_v37 = vld [vmem:[#allocation5 + $0xf38] sm:$0xff]  ;;  %v5602_v9 = vld [vmem:[#allocation8 + $0x40] sm:$0xff]  }
 0x259   :  { %v5524_v41 = vadd.f32 %v3446_v38, %v642_v14  ;;  %v3448_v44 = vpop.f32.mrb[3].mxu0  ;;  %3764 = vmatprep.subr.bf16.mxu0 %v5256_v25  ;;  %v5528_v30 = vadd.f32 %v3618_v42, %v650_v20  ;;  %v3620_v48 = vpop.f32.mrb[3].mxu1  ;;  %3936 = vmatprep.subr.bf16.mxu1 %v5258_v26  ;;  %v3967_v43 = vmax.f32 %v5522_v32, 0.0  ;;  %v3969_v59 = vmax.f32 %v5526_v36, 0.0  ;;  %v592_v20 = vld [vmem:[#allocation5 + $0xe98] sm:$0xff]  ;;  %v603_v26 = vld [vmem:[#allocation5 + $0xef0] sm:$0xff] }
 0x25a   :  { %v5525_v53 = vadd.f32 %v3448_v44, %v646_v21  ;;  %v5529_v29 = vadd.f32 %v3620_v48, %v654_v23  ;;  %v3968_v61 = vmax.f32 %v5523_v15, 0.0  ;;  %v3970_v63 = vmax.f32 %v5527_v40, 0.0  ;;  %v596_v21 = vld [vmem:[#allocation5 + $0xeb8] sm:$0xff]  ;;  %v611_v36 = vld [vmem:[#allocation5 + $0xf30] sm:$0xff] }
 0x25b   :  { %v3975_v27 = vmax.f32 %v5524_v41, 0.0  ;;  %v3977_v62 = vmax.f32 %v5528_v30, 0.0  ;;  %v5282_v14 = vcombine.high %v584_v11, %v588_v45  ;;  %v5281_v23 = vcombine.low %v584_v11, %v588_v45  ;;  %v608_v15 = vld [vmem:[#allocation5 + $0xf18] sm:$0xff]  ;;  %v615_v41 = vld [vmem:[#allocation5 + $0xf50] sm:$0xff]  ;;  %v5603_v11 = vld [vmem:[#allocation8 + $0xc0] sm:$0xff]  }
 0x25c   :  { %v3976_v55 = vmax.f32 %v5525_v53, 0.0  ;;  %3765 = vmatpush1.bf16.msra.mxu0 %v5255_v17  ;;  %v3978_v2 = vmax.f32 %v5529_v29, 0.0  ;;  %3937 = vmatpush1.bf16.msra.mxu1 %v5257_v18  ;;  %v5288_v24 = vcombine.high %v591_v16, %v595_v19  ;;  %v5290_v25 = vcombine.high %v592_v20, %v596_v21  ;;  %v619_v42 = vld [vmem:[#allocation5 + $0xf70] sm:$0xff]  ;;  %v616_v44 = vld [vmem:[#allocation5 + $0xf58] sm:$0xff]  ;;  %v5604_v45 = vld [vmem:[#allocation8] sm:$0xff]  }
 0x25d   :  { %v6110_v0 = vpack.c.bf16 %v3975_v27, %v3967_v43  ;;  %3766 = vmatprep.subr.bf16.mxu0 %v5264_v47  ;;  %v6112_v4 = vpack.c.bf16 %v3977_v62, %v3969_v59  ;;  %3938 = vmatprep.subr.bf16.mxu1 %v5266_v50  ;;  %v5287_v32 = vcombine.low %v591_v16, %v595_v19  ;;  %v620_v47 = vld [vmem:[#allocation5 + $0xf78] sm:$0xff]  ;;  %v623_v50 = vld [vmem:[#allocation5 + $0xf90] sm:$0xff] }
 0x25e   :  { %v6114_v5 = vpack.c.bf16 %v3976_v55, %v3968_v61  ;;  %v6116_v10 = vpack.c.bf16 %v3978_v2, %v3970_v63  ;;  %v5289_v33 = vcombine.low %v592_v20, %v596_v21  ;;  %v5296_v58 = vcombine.high %v599_v54, %v603_v26  ;;  %v628_v43 = vld [vmem:[#allocation5 + $0xfb8] sm:$0xff]  ;;  %v635_v59 = vld [vmem:[#allocation5 + $0xff0] sm:$0xff] }
 0x25f   :  { %v5295_v38 = vcombine.low %v599_v54, %v603_v26  ;;  %v5297_v17 = vcombine.low %v600_v28, %v604_v31  ;;  %v5304_v18 = vcombine.high %v607_v35, %v611_v36  ;;  %v5306_v40 = vcombine.high %v608_v15, %v612_v37  ;;  %v632_v61 = vld [vmem:[#allocation5 + $0xfd8] sm:$0xff]  ;;  %v5609_v16 = vld [vmem:[#allocation8 + $0x88] sm:$0xff]   ;;  %v5619_v54 = vld [vmem:[#allocation8 + $0xe0] sm:$0xff]  }
 0x260   :  { %3767 = vmatpush1.bf16.msra.mxu0 %v5263_v49  ;;  %3939 = vmatpush1.bf16.msra.mxu1 %v5265_v56  ;;  %v5303_v30 = vcombine.low %v607_v35, %v611_v36  ;;  %v5305_v53 = vcombine.low %v608_v15, %v612_v37  ;;  %v5312_v48 = vcombine.high %v615_v41, %v619_v42  ;;  %v636_v62 = vld [vmem:[#allocation5 + $0xff8] sm:$0xff]  ;;  %v5621_v26 = vld [vmem:[#allocation8 + $0xa0] sm:$0xff]   ;;  %v5622_v28 = vld [vmem:[#allocation8 + $0x68] sm:$0xff]  }
 0x261   :  { %3768 = vmatprep.subr.bf16.mxu0 %v5272_v3  ;;  %3940 = vmatprep.subr.bf16.mxu1 %v5274_v6  ;;  %v5314_v49 = vcombine.high %v616_v44, %v620_v47  ;;  %v5311_v27 = vcombine.low %v615_v41, %v619_v42  ;;  %v5313_v29 = vcombine.low %v616_v44, %v620_v47  ;;  %v5610_v19 = vld [vmem:[#allocation8 + $0x50] sm:$0xff]   ;;  %v5623_v31 = vld [vmem:[#allocation8 + $0xe8] sm:$0xff]   ;;  %v5630_v15 = vld [vmem:[#allocation8 + $0x78] sm:$0xff]  }
 0x262   :  { %v5320_v56 = vcombine.high %v623_v50, %v627_v51  ;;  %v5322_v39 = vcombine.high %v624_v52, %v628_v43  ;;  %v5319_v55 = vcombine.low %v623_v50, %v627_v51  ;;  %v5321_v63 = vcombine.low %v624_v52, %v628_v43  ;;  %v5611_v20 = vld [vmem:[#allocation8 + $0xd0] sm:$0xff]   ;;  %v5631_v37 = vld [vmem:[#allocation8 + $0xf8] sm:$0xff]   ;;  %v5636_v41 = vld [vmem:[#allocation8 + $0x100] sm:$0xff]  }
 0x263   :  { %v5328_v2 = vcombine.high %v631_v57, %v635_v59  ;;  %v5330_v3 = vcombine.high %v632_v61, %v636_v62  ;;  %v5327_v6 = vcombine.low %v631_v57, %v635_v59  ;;  %v5329_v8 = vcombine.low %v632_v61, %v636_v62  ;;  %v5612_v21 = vld [vmem:[#allocation8 + $0x10] sm:$0xff]   ;;  %v5637_v42 = vld [vmem:[#allocation8 + $0x180] sm:$0xff]   ;;  %v5638_v44 = vld [vmem:[#allocation8 + $0x148] sm:$0xff]  }
 0x264   :  { %3769 = vmatpush1.bf16.msra.mxu0 %v5271_v46  ;;  %3941 = vmatpush1.bf16.msra.mxu1 %v5273_v12  ;;  %v5605_v46 = vld [vmem:[#allocation8 + $0x80] sm:$0xff]   ;;  %v5606_v12 = vld [vmem:[#allocation8 + $0x48] sm:$0xff]   ;;  %v5628_v35 = vld [vmem:[#allocation8 + $0x30] sm:$0xff]  }
 0x265   :  { %3770 = vmatprep.subr.bf16.mxu0 %v5280_v13  ;;  %3942 = vmatprep.subr.bf16.mxu1 %v5282_v14  ;;  %v5607_v13 = vld [vmem:[#allocation8 + $0xc8] sm:$0xff]   ;;  %v5629_v36 = vld [vmem:[#allocation8 + $0xb0] sm:$0xff]   ;;  %v5646_v52 = vld [vmem:[#allocation8 + $0x158] sm:$0xff]  }
 0x266   :  { %v5608_v14 = vld [vmem:[#allocation8 + $0x8] sm:$0xff]   ;;  %v5644_v50 = vld [vmem:[#allocation8 + $0x110] sm:$0xff]   ;;  %v5647_v43 = vld [vmem:[#allocation8 + $0x1d8] sm:$0xff]  }
 0x267   :  { %v5639_v47 = vld [vmem:[#allocation8 + $0x1c8] sm:$0xff]   ;;  %v5645_v51 = vld [vmem:[#allocation8 + $0x190] sm:$0xff]  }
 0x268   :  { %3771 = vmatpush1.bf16.msra.mxu0 %v5279_v22  ;;  %3943 = vmatpush1.bf16.msra.mxu1 %v5281_v23  ;;  %v5613_v22 = vld [vmem:[#allocation8 + $0x90] sm:$0xff]   ;;  %v5614_v23 = vld [vmem:[#allocation8 + $0x58] sm:$0xff]   ;;  %v5654_v57 = vld [vmem:[#allocation8 + $0x168] sm:$0xff]  }
 0x269   :  { %3772 = vmatprep.subr.bf16.mxu0 %v5288_v24  ;;  %3944 = vmatprep.subr.bf16.mxu1 %v5290_v25  ;;  %v5616_v24 = vld [vmem:[#allocation8 + $0x18] sm:$0xff]   ;;  %v5618_v25 = vld [vmem:[#allocation8 + $0x60] sm:$0xff]   ;;  %v5655_v59 = vld [vmem:[#allocation8 + $0x1e8] sm:$0xff]  }
 0x26a   :  { %v5656_v61 = vld [vmem:[#allocation8 + $0x128] sm:$0xff]  }
 0x26b   :  { %v5657_v62 = vld [vmem:[#allocation8 + $0x1a8] sm:$0xff]  }
 0x26c   :  { %3773 = vmatpush1.bf16.msra.mxu0 %v5287_v32  ;;  %3945 = vmatpush1.bf16.msra.mxu1 %v5289_v33  ;;  %v5624_v32 = vld [vmem:[#allocation8 + $0x28] sm:$0xff]  }
 0x26d   :  { %3774 = vmatprep.subr.bf16.mxu0 %v5296_v58  ;;  %3946 = vmatprep.subr.bf16.mxu1 %v5298_v34  ;;  %v5625_v33 = vld [vmem:[#allocation8 + $0xa8] sm:$0xff]   ;;  %v5626_v58 = vld [vmem:[#allocation8 + $0x70] sm:$0xff]  }
 0x26e   :  { %v5627_v34 = vld [vmem:[#allocation8 + $0xf0] sm:$0xff]  }
 0x270   :  { %3775 = vmatpush1.bf16.msra.mxu0 %v5295_v38  ;;  %3947 = vmatpush1.bf16.msra.mxu1 %v5297_v17  ;;  %v5632_v38 = vld [vmem:[#allocation8 + $0x38] sm:$0xff]  }
 0x271   :  { %3776 = vmatprep.subr.bf16.mxu0 %v5304_v18  ;;  %3948 = vmatprep.subr.bf16.mxu1 %v5306_v40  ;;  %v5633_v17 = vld [vmem:[#allocation8 + $0xb8] sm:$0xff]   ;;  %v5634_v18 = vld [vmem:[#allocation8 + $0x140] sm:$0xff]  }
 0x272   :  { %v5635_v40 = vld [vmem:[#allocation8 + $0x1c0] sm:$0xff]  }
 0x274   :  { %3777 = vmatpush1.bf16.msra.mxu0 %v5303_v30  ;;  %3949 = vmatpush1.bf16.msra.mxu1 %v5305_v53  ;;  %v5640_v30 = vld [vmem:[#allocation8 + $0x108] sm:$0xff]  }
 0x275   :  { %3778 = vmatprep.subr.bf16.mxu0 %v5312_v48  ;;  %3950 = vmatprep.subr.bf16.mxu1 %v5314_v49  ;;  %v5641_v53 = vld [vmem:[#allocation8 + $0x188] sm:$0xff]   ;;  %v5642_v48 = vld [vmem:[#allocation8 + $0x150] sm:$0xff]  }
 0x276   :  { %v5643_v49 = vld [vmem:[#allocation8 + $0x1d0] sm:$0xff]  }
 0x278   :  { %3779 = vmatpush1.bf16.msra.mxu0 %v5311_v27  ;;  %3951 = vmatpush1.bf16.msra.mxu1 %v5313_v29  ;;  %v5650_v27 = vld [vmem:[#allocation8 + $0x160] sm:$0xff]  }
 0x279   :  { %3780 = vmatprep.subr.bf16.mxu0 %v5320_v56  ;;  %3952 = vmatprep.subr.bf16.mxu1 %v5322_v39  ;;  %v5651_v29 = vld [vmem:[#allocation8 + $0x1e0] sm:$0xff]  }
 0x27a   :  { %v5652_v56 = vld [vmem:[#allocation8 + $0x120] sm:$0xff]  }
 0x27b   :  { %v5653_v39 = vld [vmem:[#allocation8 + $0x1a0] sm:$0xff]  }
 0x27c   :  { %3781 = vmatpush1.bf16.msra.mxu0 %v5319_v55  ;;  %3953 = vmatpush1.bf16.msra.mxu1 %v5321_v63  ;;  %v5658_v55 = vld [vmem:[#allocation8 + $0x170] sm:$0xff]  }
 0x27d   :  { %3782 = vmatprep.subr.bf16.mxu0 %v5328_v2  ;;  %3954 = vmatprep.subr.bf16.mxu1 %v5330_v3  ;;  %v5659_v63 = vld [vmem:[#allocation8 + $0x1f0] sm:$0xff]  }
 0x27e   :  { %v5660_v2 = vld [vmem:[#allocation8 + $0x130] sm:$0xff]  }
 0x27f   :  { %v5661_v3 = vld [vmem:[#allocation8 + $0x1b0] sm:$0xff]  }
 0x280   :  { %3783 = vmatpush1.bf16.msra.mxu0 %v5327_v6  ;;  %3955 = vmatpush1.bf16.msra.mxu1 %v5329_v8  ;;  %v5662_v6 = vld [vmem:[#allocation8 + $0x178] sm:$0xff]  }
 0x281   :  { %5405 = vmatprep.subr.bf16.mxu0 %v5602_v9  ;;  %5427 = vmatprep.subr.bf16.mxu1 %v5603_v11  ;;  %v5663_v8 = vld [vmem:[#allocation8 + $0x1f8] sm:$0xff]  }
 0x282   :  { %v5664_v9 = vld [vmem:[#allocation8 + $0x138] sm:$0xff]  }
 0x283   :  { %3785 = vmatmul.mubr.bf16.vlgmr.msra.gmra.mrb[4].mxu0 %v6080_v1  ;;  %3957 = vmatmul.mubr.bf16.vlgmr.msra.gmra.mrb[4].mxu1 %v6080_v1  ;;  %v5615_v1 = vld [vmem:[#allocation8 + $0xd8] sm:$0xff]  }
 0x284   :  { %5406 = vmatpush3.bf16.msra.mxu0 %v5604_v45  ;;  %4542 = vmatprep.mubr.bf16.mxu0 %v6114_v5  ;;  %v5617_v5 = vld [vmem:[#allocation8 + $0x98] sm:$0xff]   ;;  %v5871_v45 = vmov 0.0  }
 0x285   :  { %5428 = vmatpush3.bf16.msra.mxu1 %v5605_v46  ;;  %4583 = vmatprep.mubr.bf16.mxu1 %v6116_v10  ;;  %v5620_v10 = vld [vmem:[#allocation8 + $0x20] sm:$0xff]   ;;  %v5665_v11 = vld [vmem:[#allocation8 + $0x1b8] sm:$0xff]   ;;  %v657_v46 = vsub.s32 4, %v6098_v60 }
 0x286   :  { %5407 = vmatprep.subr.bf16.mxu0 %v5606_v12  ;;  %5429 = vmatprep.subr.bf16.mxu1 %v5607_v13  ;;  %v665_v12 = vsub.s32 6, %v6098_v60  ;;  %v661_v13 = vsub.s32 5, %v6098_v60 }
 0x288   :  { %5408 = vmatpush3.bf16.msra.mxu0 %v5608_v14  ;;  %v669_v14 = vsub.s32 7, %v6098_v60 }
 0x289   :  { %5430 = vmatpush3.bf16.msra.mxu1 %v5609_v16  ;;  %5409 = vmatprep.subr.bf16.mxu0 %v5610_v19  ;;  %v658_v16 = vrot.slane %v6101_v7, %v657_v46  ;;  %v666_v19 = vrot.slane %v6101_v7, %v665_v12 }
 0x28a   :  { %5431 = vmatprep.subr.bf16.mxu1 %v5611_v20  ;;  %v662_v20 = vrot.slane %v6101_v7, %v661_v13 }
 0x28c   :  { %5410 = vmatpush3.bf16.msra.mxu0 %v5612_v21  ;;  %v670_v21 = vrot.slane %v6101_v7, %v669_v14 }
 0x28d   :  { %5432 = vmatpush3.bf16.msra.mxu1 %v5613_v22  ;;  %5411 = vmatprep.subr.bf16.mxu0 %v5614_v23 }
 0x28e   :  { %5433 = vmatprep.subr.bf16.mxu1 %v5615_v1 }
 0x290   :  { %5412 = vmatpush3.bf16.msra.mxu0 %v5616_v24 }
 0x291   :  { %5434 = vmatpush3.bf16.msra.mxu1 %v5617_v5  ;;  %5413 = vmatprep.subr.bf16.mxu0 %v5618_v25 }
 0x292   :  { %5435 = vmatprep.subr.bf16.mxu1 %v5619_v54 }
 0x294   :  { %5414 = vmatpush3.bf16.msra.mxu0 %v5620_v10 }
 0x295   :  { %5436 = vmatpush3.bf16.msra.mxu1 %v5621_v26  ;;  %5415 = vmatprep.subr.bf16.mxu0 %v5622_v28 }
 0x296   :  { %5437 = vmatprep.subr.bf16.mxu1 %v5623_v31 }
 0x298   :  { %5416 = vmatpush3.bf16.msra.mxu0 %v5624_v32 }
 0x299   :  { %5438 = vmatpush3.bf16.msra.mxu1 %v5625_v33  ;;  %5417 = vmatprep.subr.bf16.mxu0 %v5626_v58 }
 0x29a   :  { %5439 = vmatprep.subr.bf16.mxu1 %v5627_v34 }
 0x29c   :  { %5418 = vmatpush3.bf16.msra.mxu0 %v5628_v35 }
 0x29d   :  { %5440 = vmatpush3.bf16.msra.mxu1 %v5629_v36  ;;  %5419 = vmatprep.subr.bf16.mxu0 %v5630_v15 }
 0x29e   :  { %5441 = vmatprep.subr.bf16.mxu1 %v5631_v37 }
 0x2a0   :  { %5420 = vmatpush3.bf16.msra.mxu0 %v5632_v38 }
 0x2a1   :  { %5442 = vmatpush3.bf16.msra.mxu1 %v5633_v17  ;;  %5449 = vmatprep.subr.bf16.mxu0 %v5634_v18 }
 0x2a2   :  { %5471 = vmatprep.subr.bf16.mxu1 %v5635_v40 }
 0x2a3   :  { %4543 = vmatmul.mubr.bf16.vlgmr.msra.gmra.mrb[8].mxu0 %v6110_v0  ;;  %v5648_v0 = vld [vmem:[#allocation8 + $0x118] sm:$0xff]  }
 0x2a4   :  { %4584 = vmatmul.mubr.bf16.vlgmr.msra.gmra.mrb[8].mxu1 %v6112_v4  ;;  %5450 = vmatpush3.bf16.msra.mxu0 %v5636_v41  ;;  %v5649_v4 = vld [vmem:[#allocation8 + $0x198] sm:$0xff]  }
 0x2a5   :  { %5472 = vmatpush3.bf16.msra.mxu1 %v5637_v42  ;;  %5451 = vmatprep.subr.bf16.mxu0 %v5638_v44  ;;  %v5666_v44 = vld [vmem:[#allocation11] sm:$0xff]  }
 0x2a6   :  { %5473 = vmatprep.subr.bf16.mxu1 %v5639_v47 }
 0x2a8   :  { %5452 = vmatpush3.bf16.msra.mxu0 %v5640_v30  ;;  %v5667_v30 = vld [vmem:[#allocation11 + $0x8] sm:$0xff]  }
 0x2a9   :  { %5474 = vmatpush3.bf16.msra.mxu1 %v5641_v53  ;;  %5453 = vmatprep.subr.bf16.mxu0 %v5642_v48  ;;  %v5668_v53 = vld [vmem:[#allocation11 + $0x10] sm:$0xff]   ;;  %v5669_v48 = vld [vmem:[#allocation11 + $0x18] sm:$0xff]  }
 0x2aa   :  { %5475 = vmatprep.subr.bf16.mxu1 %v5643_v49  ;;  %v5670_v49 = vld [vmem:[#allocation11 + $0x20] sm:$0xff]  }
 0x2ac   :  { %5454 = vmatpush3.bf16.msra.mxu0 %v5644_v50 }
 0x2ad   :  { %5476 = vmatpush3.bf16.msra.mxu1 %v5645_v51  ;;  %5455 = vmatprep.subr.bf16.mxu0 %v5646_v52  ;;  %v5331_v52 = vld [vmem:[#allocation10] ss:$0 sm:$0xff] }
 0x2ae   :  { %5477 = vmatprep.subr.bf16.mxu1 %v5647_v43 }
 0x2b0   :  { %5456 = vmatpush3.bf16.msra.mxu0 %v5648_v0 }
 0x2b1   :  { %5478 = vmatpush3.bf16.msra.mxu1 %v5649_v4  ;;  %5457 = vmatprep.subr.bf16.mxu0 %v5650_v27 }
 0x2b2   :  { %5479 = vmatprep.subr.bf16.mxu1 %v5651_v29 }
 0x2b4   :  { %5458 = vmatpush3.bf16.msra.mxu0 %v5652_v56 }
 0x2b5   :  { %5480 = vmatpush3.bf16.msra.mxu1 %v5653_v39  ;;  %5459 = vmatprep.subr.bf16.mxu0 %v5654_v57 }
 0x2b6   :  { %5481 = vmatprep.subr.bf16.mxu1 %v5655_v59 }
 0x2b8   :  { %5460 = vmatpush3.bf16.msra.mxu0 %v5656_v61 }
 0x2b9   :  { %5482 = vmatpush3.bf16.msra.mxu1 %v5657_v62  ;;  %5461 = vmatprep.subr.bf16.mxu0 %v5658_v55 }
 0x2ba   :  { %5483 = vmatprep.subr.bf16.mxu1 %v5659_v63 }
 0x2bc   :  { %5462 = vmatpush3.bf16.msra.mxu0 %v5660_v2 }
 0x2bd   :  { %5484 = vmatpush3.bf16.msra.mxu1 %v5661_v3  ;;  %5463 = vmatprep.subr.bf16.mxu0 %v5662_v6  ;;  %v5671_v3 = vld [vmem:[#allocation11 + $0x28] sm:$0xff]   ;;  %v5672_v6 = vld [vmem:[#allocation11 + $0x30] sm:$0xff]  }
 0x2be   :  { %5485 = vmatprep.subr.bf16.mxu1 %v5663_v8  ;;  %v5673_v8 = vld [vmem:[#allocation11 + $0x38] sm:$0xff]  }
 0x2c0   :  { %5464 = vmatpush3.bf16.msra.mxu0 %v5664_v9 }
 0x2c1   :  { %5486 = vmatpush3.bf16.msra.mxu1 %v5665_v11  ;;  %5502 = vmatprep.subr.bf16.mxu0 %v5871_v45 }
 0x356   :  { %v3786_v22 = vpop.f32.mrb[4].mxu0  ;;  %v3958_v1 = vpop.f32.mrb[4].mxu1 }
 0x357   :  { %v5530_v23 = vadd.f32 %v3786_v22, %v658_v16  ;;  %v3788_v24 = vpop.f32.mrb[5].mxu0  ;;  %v5534_v5 = vadd.f32 %v3958_v1, %v666_v19  ;;  %v3960_v54 = vpop.f32.mrb[5].mxu1 }
 0x358   :  { %v5531_v25 = vadd.f32 %v3788_v24, %v662_v20  ;;  %v3790_v10 = vpop.f32.mrb[6].mxu0  ;;  %v5535_v26 = vadd.f32 %v3960_v54, %v670_v21  ;;  %v3962_v31 = vpop.f32.mrb[6].mxu1 }
 0x359   :  { %v5532_v28 = vadd.f32 %v3790_v10, %v658_v16  ;;  %v3792_v60 = vpop.f32.mrb[7].mxu0  ;;  %v5536_v32 = vadd.f32 %v3962_v31, %v666_v19  ;;  %v3964_v58 = vpop.f32.mrb[7].mxu1  ;;  %v3971_v34 = vmax.f32 %v5530_v23, 0.0  ;;  %v3973_v15 = vmax.f32 %v5534_v5, 0.0 }
 0x35a   :  { %v5533_v33 = vadd.f32 %v3792_v60, %v662_v20  ;;  %v5537_v36 = vadd.f32 %v3964_v58, %v670_v21  ;;  %v3972_v7 = vmax.f32 %v5531_v25, 0.0  ;;  %v3974_v17 = vmax.f32 %v5535_v26, 0.0 }
 0x35b   :  { %v3979_v35 = vmax.f32 %v5532_v28, 0.0  ;;  %v3981_v37 = vmax.f32 %v5536_v32, 0.0 }
 0x35c   :  { %v3980_v38 = vmax.f32 %v5533_v33, 0.0  ;;  %v3982_v40 = vmax.f32 %v5537_v36, 0.0 }
 0x35d   :  { %v3987_v18 = vpack.c.bf16 %v3979_v35, %v3971_v34  ;;  %v3989_v41 = vpack.c.bf16 %v3981_v37, %v3973_v15 }
 0x35e   :  { %v3988_v42 = vpack.c.bf16 %v3980_v38, %v3972_v7  ;;  %v3990_v47 = vpack.c.bf16 %v3982_v40, %v3974_v17 }
 0x360   :  { %4624 = vmatprep.mubr.bf16.mxu0 %v3988_v42  ;;  %4665 = vmatprep.mubr.bf16.mxu1 %v3990_v47 }
 0x361   :  { %4625 = vmatmul.mubr.bf16.vlgmr.msra.gmra.mrb[12].mxu0 %v3987_v18  ;;  %4666 = vmatmul.mubr.bf16.vlgmr.msra.gmra.mrb[12].mxu1 %v3989_v41 }
 0x362   :  { %5503 = vmatpush3.bf16.msra.mxu0 %v5666_v44  ;;  %5518 = vmatprep.mubr.msk.bf16.mxu0 %vm5872_vm0, %v5871_v45 }
 0x363   :  { %5504 = vmatprep.subr.bf16.mxu0 %v5871_v45 }
 0x366   :  { %5505 = vmatpush3.bf16.msra.mxu0 %v5667_v30 }
 0x367   :  { %5506 = vmatprep.subr.bf16.mxu0 %v5871_v45 }
 0x36a   :  { %5507 = vmatpush3.bf16.msra.mxu0 %v5668_v53 }
 0x36b   :  { %5508 = vmatprep.subr.bf16.mxu0 %v5871_v45 }
 0x36e   :  { %5509 = vmatpush3.bf16.msra.mxu0 %v5669_v48 }
 0x36f   :  { %5510 = vmatprep.subr.bf16.mxu0 %v5871_v45 }
 0x372   :  { %5511 = vmatpush3.bf16.msra.mxu0 %v5670_v49 }
 0x373   :  { %5512 = vmatprep.subr.bf16.mxu0 %v5871_v45 }
 0x376   :  { %v5421_v50 = vpop.f32.mrb[8].mxu0  ;;  %5513 = vmatpush3.bf16.msra.mxu0 %v5671_v3 }
 0x377   :  { %v5443_v51 = vpop.f32.mrb[8].mxu1  ;;  %v5422_v43 = vpop.f32.mrb[9].mxu0  ;;  %5514 = vmatprep.subr.bf16.mxu0 %v5871_v45 }
 0x378   :  { %v5423_v0 = vadd.f32 %v5422_v43, %v5421_v50  ;;  %v5444_v4 = vpop.f32.mrb[9].mxu1  ;;  %v5424_v27 = vpop.f32.mrb[10].mxu0 }
 0x379   :  { %v5445_v29 = vadd.f32 %v5444_v4, %v5443_v51  ;;  %v5446_v56 = vpop.f32.mrb[10].mxu1  ;;  %v5425_v39 = vpop.f32.mrb[11].mxu0 }
 0x37a   :  { %v4545_v57 = vadd.f32 %v5423_v0, %v5331_v52  ;;  %v5426_v59 = vadd.f32 %v5425_v39, %v5424_v27  ;;  %v5447_v61 = vpop.f32.mrb[11].mxu1  ;;  %5515 = vmatpush3.bf16.msra.mxu0 %v5672_v6 }
 0x37b   :  { %v5448_v62 = vadd.f32 %v5447_v61, %v5446_v56  ;;  %5516 = vmatprep.subr.bf16.mxu0 %v5871_v45  ;;  %v5396_v45 = vld [vmem:[#allocation13] ss:$0 sm:$0xff] }
 0x37c   :  { %v4586_v55 = vadd.f32 %v5445_v29, %v4545_v57  ;;  %v4548_v63 = vadd.f32 %v5426_v59, %v5331_v52 }
 0x37e   :  { %v4589_v2 = vadd.f32 %v5448_v62, %v4548_v63  ;;  %5517 = vmatpush3.bf16.msra.mxu0 %v5673_v8 }
 0x434   :  { %v5465_v9 = vpop.f32.mrb[12].mxu0  ;;  %v5487_v11 = vpop.f32.mrb[12].mxu1 }
 0x435   :  { %v5466_v46 = vpop.f32.mrb[13].mxu0  ;;  %v5488_v13 = vpop.f32.mrb[13].mxu1 }
 0x436   :  { %v5467_v12 = vadd.f32 %v5466_v46, %v5465_v9  ;;  %v5468_v14 = vpop.f32.mrb[14].mxu0  ;;  %v5489_v16 = vadd.f32 %v5488_v13, %v5487_v11  ;;  %v5490_v19 = vpop.f32.mrb[14].mxu1 }
 0x437   :  { %v5469_v20 = vpop.f32.mrb[15].mxu0  ;;  %v5491_v23 = vpop.f32.mrb[15].mxu1 }
 0x438   :  { %v4627_v21 = vadd.f32 %v5467_v12, %v4586_v55  ;;  %v5470_v22 = vadd.f32 %v5469_v20, %v5468_v14  ;;  %v5492_v1 = vadd.f32 %v5491_v23, %v5490_v19 }
 0x43a   :  { %v4668_v24 = vadd.f32 %v5489_v16, %v4627_v21  ;;  %v4630_v5 = vadd.f32 %v5470_v22, %v4589_v2 }
 0x43c   :  { %v4671_v25 = vadd.f32 %v5492_v1, %v4630_v5  ;;  %v4674_v54 = vmax.f32 %v4668_v24, 0.0 }
 0x43e   :  { %v4675_v10 = vmax.f32 %v4671_v25, 0.0 }
 0x440   :  { %v4676_v26 = vpack.c.bf16 %v4675_v10, %v4674_v54 }
 0x442   :  { %5519 = vmatmul.mubr.bf16.vlgmr.msra.gmra.mrb[16].mxu0 %v4676_v26 }
 0x515   :  { %v4782_v28 = vpop.f32.mrb[16].mxu0 }
 0x516   :  { %v4783_v31 = vadd.f32 %v5396_v45, %v4782_v28  ;;  %v5520_v60 = vpop.f32.mrb[17].mxu0 }
 0x517   :  { %v4785_v32 = vpop.f32.mrb[18].mxu0 }
 0x518   :  { %4789 = vst [vmem:[#allocation14] sm:$0xff] %v4783_v31  ;;  %v4786_v33 = vadd.f32 %v5396_v45, %v4785_v32  ;;  %v5521_v58 = vpop.f32.mrb[19].mxu0 }
 0x51a   :  { %4790 = vst [vmem:[#allocation14 + $0x8] sm:$0xff] %v4786_v33 }
 0x51b   :  { %5839 = shalt.err (!%p5836_p4)
}
 0x51c   :  { %s5840_s14 = scalar_lea.hbm %s6160_s7, 256 }
 0x51d   :  { %p5841_p5 = scmp.ne.s32.totalorder %s6160_s7, %s5840_s14  ;;  %p5844_p6 = scmp.lt.u32.totalorder %s5840_s14, %s6160_s7 }
 0x51f   :  { %p5846_p7 = pnand %p5844_p6, %p5841_p5 }
 0x521   :  { %5849 = shalt.err (!%p5846_p7)
}
 0x522   :  { %s5874_s21 = smov 128   ;;  %s5875_s22 = smov 8  }
 0x523   :  { %4802 = dma.vmem_to_hbm [thread:$0]  %s4797_s18, 256, %s6160_s7, [#allocation4], %s5874_s21, %s5874_s21, %s5875_s22  }
 0x524   :  { %5858 = dma.done.wait [#allocation4], 256  }
 0x525   :  { %5859 = vsyncadd [#allocation4], 4294967040 }
 0x526   :  { %4806 = vsyncpa [#allocation3], 1 }
 0x527   :  { %4807 = vsyncpa [#allocation6], 1 }
 0x528   :  { %4808 = vsyncpa [#allocation9], 1 }
 0x529   :  { %4809 = vsyncpa [#allocation12], 1 }
 0x52a   :  { %4810 = vsyncpa [#allocation4], 1 }

</bundles_post_ra>
